<compile_context>
chip_gen: v6e
topology: v6e:2x2x1
jax: 0.10.0
libtpu: 0.0.40
codegen_flags: <defaults>
</compile_context>

<pallas_src>
import functools

import jax
import jax.numpy as jnp
from jax import lax
from jax.experimental import pallas as pl
from jax.experimental.pallas import tpu as pltpu

INPUT_SIZE = 32
LATENT_SIZE = 16
HIDDEN = 1024

_INV_SQRT2 = 0.7071067811865476
_SQRT_2_OVER_PI = 0.7978845608028654


# --------------------------- chip dispatch ----------------------------------

def _device_kind():
    try:
        return jax.devices()[0].device_kind.lower()
    except Exception:
        return ""


def _use_bf16_tanh_gelu(kind):
    # bf16 VPU/EUP generations get the cheap EUP-routed GELU; v5e & unknown
    # chips keep the exact-erf f32 form (matches nn.GELU() semantics exactly
    # and the MXU already covers the VPU cost there).
    return ("v6" in kind) or ("v7" in kind)


def _vmem_limit_bytes(kind):
    # 48 MiB is valid on v7x (64 MiB physical VMEM); v5e/v6e have 128 MiB.
    if ("v5" in kind) or ("v6" in kind):
        return 96 << 20
    return 48 << 20


@functools.lru_cache(maxsize=None)
def _single_buffer_supported():
    """One-time probe: can this build single-buffer a grid-invariant input?

    Decided outside any user trace (cached Python bool), so the fallback to
    default double-buffering works even when the forward is wrapped in jit.
    """
    def k(w_ref, o_ref):
        o_ref[...] = w_ref[...] + 1.0

    try:
        fn = pl.pallas_call(
            k,
            out_shape=jax.ShapeDtypeStruct((16, 128), jnp.float32),
            grid_spec=pltpu.PrefetchScalarGridSpec(
                num_scalar_prefetch=0,
                grid=(2,),
                in_specs=[pl.BlockSpec((8, 128), lambda i: (0, 0),
                                       pipeline_mode=pl.Buffered(1))],
                out_specs=pl.BlockSpec((8, 128), lambda i: (i, 0)),
            ),
        )
        jax.jit(fn).lower(jnp.zeros((8, 128), jnp.float32)).compile()
        return True
    except Exception:
        return False


# ------------------------------ GELU variants --------------------------------

def _gelu_erf_f32(x):
    # Exact erf form (PyTorch nn.GELU() default), computed in f32.
    return 0.5 * x * (1.0 + lax.erf(x * _INV_SQRT2))


def _gelu_tanh_bf16(x):
    # tanh-form GELU, computed entirely in bf16 (Python float literals are
    # weakly typed, so everything stays bf16; tanh goes to the EUP).
    inner = _SQRT_2_OVER_PI * (x + 0.044715 * (x * x * x))
    return 0.5 * x * (1.0 + jnp.tanh(inner))


# ------------------------------ Pallas kernel --------------------------------

def _make_mlp_kernel(bf16_tanh_gelu):
    def act(h_f32):
        if bf16_tanh_gelu:
            return _gelu_tanh_bf16(h_f32.astype(jnp.bfloat16))
        return _gelu_erf_f32(h_f32).astype(jnp.bfloat16)

    def kernel(x_ref, w1_ref, b1_ref, w2_ref, b2_ref, w3_ref, b3_ref,
               w4_ref, b4_ref, o_ref):
        # bf16 operands into the MXU; f32 accumulation + bias add.
        h = x_ref[...]
        h = act(jnp.dot(h, w1_ref[...], preferred_element_type=jnp.float32)
                + b1_ref[...])
        h = act(jnp.dot(h, w2_ref[...], preferred_element_type=jnp.float32)
                + b2_ref[...])
        h = act(jnp.dot(h, w3_ref[...], preferred_element_type=jnp.float32)
                + b3_ref[...])
        y = (jnp.dot(h, w4_ref[...], preferred_element_type=jnp.float32)
             + b4_ref[...])
        o_ref[...] = y.astype(o_ref.dtype)

    return kernel


# ------------------------------ wrapper ---------------------------------------

def prepare_params(params):
    """One-time conversion (do NOT call per forward):
       * weights -> bf16 (in, out) layout,
       * biases  -> f32 (1, out),
       * final layer zero-padded to a lane-dense (multiple-of-128) width."""
    latent = params["w4"].shape[1]
    lat_pad = pl.cdiv(latent, 128) * 128
    prepped = {}
    for li in (1, 2, 3, 4):
        w = params[f"w{li}"]
        b = jnp.reshape(params[f"b{li}"], (1, -1))
        if li == 4 and lat_pad != latent:
            w = jnp.pad(w, ((0, 0), (0, lat_pad - latent)))
            b = jnp.pad(b, ((0, 0), (0, lat_pad - latent)))
        prepped[f"w{li}"] = w.astype(jnp.bfloat16)
        prepped[f"b{li}"] = b.astype(jnp.float32)
    return prepped


def policy_generator_forward(x, prepped, latent_size=LATENT_SIZE, *,
                             max_tile=1024):
    """x: (B, input_size) f32.  prepped: output of prepare_params()."""
    B, in_dim = x.shape
    lat_pad = prepped["w4"].shape[1]

    kind = _device_kind()
    bf16_tanh = _use_bf16_tanh_gelu(kind)
    two_tc = "v7" in kind

    # Batch tiling: single grid step for small batches (weights stream from
    # HBM exactly once); 1024-row tiles + megacore 'parallel' otherwise.
    if B <= max_tile:
        tb = max(8, pl.cdiv(B, 8) * 8)          # round up to a sublane multiple
        semantics = ("arbitrary",)              # single step; nothing to shard
    else:
        tb = max_tile
        if two_tc:
            # Shape the grid so both TensorCores get an even share.
            n_steps = pl.cdiv(B, tb)
            if n_steps % 2 == 1:
                tb = max(256, min(max_tile,
                                  pl.cdiv(pl.cdiv(B, n_steps + 1), 256) * 256))
        semantics = ("parallel",)

    B_pad = pl.cdiv(B, tb) * tb
    x_p = x.astype(jnp.bfloat16)
    if B_pad != B:
        x_p = jnp.pad(x_p, ((0, B_pad - B), (0, 0)))

    # Grid-invariant weights/biases: single-buffer when supported so VMEM holds
    # one ~4.3 MiB bf16 copy instead of a double-buffered pair (matters on v7x).
    wkw = ({"pipeline_mode": pl.Buffered(1)}
           if _single_buffer_supported() else {})

    def w_spec(shape):
        return pl.BlockSpec(shape, lambda i: (0, 0), **wkw)

    grid_spec = pltpu.PrefetchScalarGridSpec(
        num_scalar_prefetch=0,
        grid=(B_pad // tb,),
        in_specs=[
            pl.BlockSpec((tb, in_dim), lambda i: (i, 0)),      # x tile
            w_spec((in_dim, HIDDEN)), w_spec((1, HIDDEN)),     # layer 1
            w_spec((HIDDEN, HIDDEN)), w_spec((1, HIDDEN)),     # layer 2
            w_spec((HIDDEN, HIDDEN)), w_spec((1, HIDDEN)),     # layer 3
            w_spec((HIDDEN, lat_pad)), w_spec((1, lat_pad)),   # layer 4 (lane-dense)
        ],
        out_specs=pl.BlockSpec((tb, lat_pad), lambda i: (i, 0)),
    )

    out = pl.pallas_call(
        _make_mlp_kernel(bf16_tanh),
        out_shape=jax.ShapeDtypeStruct((B_pad, lat_pad), jnp.float32),
        grid_spec=grid_spec,
        compiler_params=pltpu.CompilerParams(
            dimension_semantics=semantics,
            vmem_limit_bytes=_vmem_limit_bytes(kind),
        ),
    )(x_p, prepped["w1"], prepped["b1"], prepped["w2"], prepped["b2"],
      prepped["w3"], prepped["b3"], prepped["w4"], prepped["b4"])

    # Drop the zero-padded batch rows (garbage after bias+GELU, never read
    # before this slice) and the lane-padding columns (exactly zero).
    return out[:B, :latent_size]


# ------------------------------ init & references ----------------------------

def init_params(key, input_size=INPUT_SIZE, latent_size=LATENT_SIZE):
    """Deterministic synthetic init (Kaiming-uniform-ish, like nn.Linear)."""
    dims = [(input_size, HIDDEN), (HIDDEN, HIDDEN), (HIDDEN, HIDDEN),
            (HIDDEN, latent_size)]
    params = {}
    keys = jax.random.split(key, 2 * len(dims))
    for li, (fan_in, fan_out) in enumerate(dims):
        bound = 1.0 / float(jnp.sqrt(jnp.float32(fan_in)))
        params[f"w{li+1}"] = jax.random.uniform(
            keys[2 * li], (fan_in, fan_out), jnp.float32, -bound, bound)
        params[f"b{li+1}"] = jax.random.uniform(
            keys[2 * li + 1], (fan_out,), jnp.float32, -bound, bound)
    return params


def _reference_forward_f32(x, params):
    """Exact f32 reference: semantics of the PyTorch module."""
    h = x
    for li in (1, 2, 3):
        h = _gelu_erf_f32(h @ params[f"w{li}"] + params[f"b{li}"])
    return h @ params["w4"] + params["b4"]


def _reference_forward_mixed(x, params, bf16_tanh_gelu):
    """Reference mirroring the kernel's precision / GELU routing."""
    h = x.astype(jnp.bfloat16)
    for li in (1, 2, 3):
        h = (jnp.dot(h, params[f"w{li}"].astype(jnp.bfloat16),
                     preferred_element_type=jnp.float32)
             + params[f"b{li}"].reshape(1, -1))
        if bf16_tanh_gelu:
            h = _gelu_tanh_bf16(h.astype(jnp.bfloat16))
        else:
            h = _gelu_erf_f32(h).astype(jnp.bfloat16)
    return (jnp.dot(h, params["w4"].astype(jnp.bfloat16),
                    preferred_element_type=jnp.float32)
            + params["b4"].reshape(1, -1))


# ------------------------------ demo / self-test -----------------------------

if __name__ == "__main__":
    key = jax.random.PRNGKey(0)
    k_x, k_p = jax.random.split(key)

    B = 8
    x = jax.random.normal(k_x, (B, INPUT_SIZE), jnp.float32)
    params = init_params(k_p)
    prepped = prepare_params(params)          # one-time bf16 + lane-pad

    out = jax.block_until_ready(policy_generator_forward(x, prepped))
    assert out.shape == (B, LATENT_SIZE)

    # Tight check against a reference using the kernel's own mixed precision.
    bf16_tanh = _use_bf16_tanh_gelu(_device_kind())
    ref_mixed = _reference_forward_mixed(x, params, bf16_tanh)
    assert jnp.allclose(out, ref_mixed, atol=2.5e-2, rtol=2.5e-2), (
        "mixed-precision mismatch, max abs diff = "
        f"{float(jnp.max(jnp.abs(out - ref_mixed)))}")

    # Looser check against the exact f32 (PyTorch-equivalent) reference.
    ref_f32 = _reference_forward_f32(x, params)
    assert jnp.allclose(out, ref_f32, atol=6e-2, rtol=6e-2), (
        "f32-reference mismatch, max abs diff = "
        f"{float(jnp.max(jnp.abs(out - ref_f32)))}")

    # Exercise the "B not divisible by the tile" pad + slice path.
    out5 = jax.block_until_ready(policy_generator_forward(x[:5], prepped))
    assert out5.shape == (5, LATENT_SIZE)
    assert jnp.allclose(out5, out[:5], atol=1e-5, rtol=1e-5)

    print("KERNEL_OK")
</pallas_src>

<mosaic_0001>
module attributes {stable_mosaic.version = 11 : i64} {
  func.func @kernel(%arg0: i32, %arg1: memref<8x32xbf16, #tpu.memory_space<vmem>>, %arg2: memref<32x1024xbf16, #tpu.memory_space<vmem>>, %arg3: memref<1x1024xf32, #tpu.memory_space<vmem>>, %arg4: memref<1024x1024xbf16, #tpu.memory_space<vmem>>, %arg5: memref<1x1024xf32, #tpu.memory_space<vmem>>, %arg6: memref<1024x1024xbf16, #tpu.memory_space<vmem>>, %arg7: memref<1x1024xf32, #tpu.memory_space<vmem>>, %arg8: memref<1024x128xbf16, #tpu.memory_space<vmem>>, %arg9: memref<1x128xf32, #tpu.memory_space<vmem>>, %arg10: memref<8x128xf32, #tpu.memory_space<vmem>>) attributes {dimension_semantics = [#tpu.dimension_semantics<arbitrary>], iteration_bounds = array<i64: 1>, scalar_prefetch = 0 : i64, scratch_operands = 0 : i64, tpu.core_type = #tpu.core_type<tc>, window_params = [{transform_indices = @transform_0, window_bounds = array<i64: 8, 32>}, {pipeline_mode = #tpu.pipeline_mode<synchronous>, transform_indices = @transform_1, window_bounds = array<i64: 32, 1024>}, {pipeline_mode = #tpu.pipeline_mode<synchronous>, transform_indices = @transform_2, window_bounds = array<i64: 1, 1024>}, {pipeline_mode = #tpu.pipeline_mode<synchronous>, transform_indices = @transform_3, window_bounds = array<i64: 1024, 1024>}, {pipeline_mode = #tpu.pipeline_mode<synchronous>, transform_indices = @transform_4, window_bounds = array<i64: 1, 1024>}, {pipeline_mode = #tpu.pipeline_mode<synchronous>, transform_indices = @transform_5, window_bounds = array<i64: 1024, 1024>}, {pipeline_mode = #tpu.pipeline_mode<synchronous>, transform_indices = @transform_6, window_bounds = array<i64: 1, 1024>}, {pipeline_mode = #tpu.pipeline_mode<synchronous>, transform_indices = @transform_7, window_bounds = array<i64: 1024, 128>}, {pipeline_mode = #tpu.pipeline_mode<synchronous>, transform_indices = @transform_8, window_bounds = array<i64: 1, 128>}, {transform_indices = @transform_9, window_bounds = array<i64: 8, 128>}]} {
    %c0 = arith.constant 0 : index
    %c0_0 = arith.constant 0 : index
    %0 = vector.load %arg1[%c0, %c0_0] : memref<8x32xbf16, #tpu.memory_space<vmem>>, vector<8x32xbf16>
    %c0_1 = arith.constant 0 : index
    %c0_2 = arith.constant 0 : index
    %1 = vector.load %arg2[%c0_1, %c0_2] : memref<32x1024xbf16, #tpu.memory_space<vmem>>, vector<32x1024xbf16>
    %cst = arith.constant dense<0.000000e+00> : vector<8x1024xf32>
    %2 = tpu.matmul %0, %1, %cst {dimension_numbers = #tpu.dot_dimension_numbers<[1], [0], [0], [1], [0, 0, 1, 1], [], []>} : vector<8x32xbf16>, vector<32x1024xbf16>, vector<8x1024xf32> -> vector<8x1024xf32>
    %c0_3 = arith.constant 0 : index
    %c0_4 = arith.constant 0 : index
    %3 = vector.load %arg3[%c0_3, %c0_4] : memref<1x1024xf32, #tpu.memory_space<vmem>>, vector<1x1024xf32>
    %4 = vector.broadcast %3 : vector<1x1024xf32> to vector<8x1024xf32>
    %5 = arith.addf %2, %4 : vector<8x1024xf32>
    %cst_5 = arith.constant 5.000000e-01 : f32
    %6 = vector.broadcast %cst_5 : f32 to vector<8x1024xf32>
    %7 = arith.mulf %6, %5 : vector<8x1024xf32>
    %cst_6 = arith.constant 0.707106769 : f32
    %8 = vector.broadcast %cst_6 : f32 to vector<8x1024xf32>
    %9 = arith.mulf %5, %8 : vector<8x1024xf32>
    %10 = math.erf %9 : vector<8x1024xf32>
    %cst_7 = arith.constant 1.000000e+00 : f32
    %11 = vector.broadcast %cst_7 : f32 to vector<8x1024xf32>
    %12 = arith.addf %11, %10 : vector<8x1024xf32>
    %13 = arith.mulf %7, %12 : vector<8x1024xf32>
    %14 = arith.truncf %13 : vector<8x1024xf32> to vector<8x1024xbf16>
    %c0_8 = arith.constant 0 : index
    %c0_9 = arith.constant 0 : index
    %15 = vector.load %arg4[%c0_8, %c0_9] : memref<1024x1024xbf16, #tpu.memory_space<vmem>>, vector<1024x1024xbf16>
    %cst_10 = arith.constant dense<0.000000e+00> : vector<8x1024xf32>
    %16 = tpu.matmul %14, %15, %cst_10 {dimension_numbers = #tpu.dot_dimension_numbers<[1], [0], [0], [1], [0, 0, 1, 1], [], []>} : vector<8x1024xbf16>, vector<1024x1024xbf16>, vector<8x1024xf32> -> vector<8x1024xf32>
    %c0_11 = arith.constant 0 : index
    %c0_12 = arith.constant 0 : index
    %17 = vector.load %arg5[%c0_11, %c0_12] : memref<1x1024xf32, #tpu.memory_space<vmem>>, vector<1x1024xf32>
    %18 = vector.broadcast %17 : vector<1x1024xf32> to vector<8x1024xf32>
    %19 = arith.addf %16, %18 : vector<8x1024xf32>
    %cst_13 = arith.constant 5.000000e-01 : f32
    %20 = vector.broadcast %cst_13 : f32 to vector<8x1024xf32>
    %21 = arith.mulf %20, %19 : vector<8x1024xf32>
    %cst_14 = arith.constant 0.707106769 : f32
    %22 = vector.broadcast %cst_14 : f32 to vector<8x1024xf32>
    %23 = arith.mulf %19, %22 : vector<8x1024xf32>
    %24 = math.erf %23 : vector<8x1024xf32>
    %cst_15 = arith.constant 1.000000e+00 : f32
    %25 = vector.broadcast %cst_15 : f32 to vector<8x1024xf32>
    %26 = arith.addf %25, %24 : vector<8x1024xf32>
    %27 = arith.mulf %21, %26 : vector<8x1024xf32>
    %28 = arith.truncf %27 : vector<8x1024xf32> to vector<8x1024xbf16>
    %c0_16 = arith.constant 0 : index
    %c0_17 = arith.constant 0 : index
    %29 = vector.load %arg6[%c0_16, %c0_17] : memref<1024x1024xbf16, #tpu.memory_space<vmem>>, vector<1024x1024xbf16>
    %cst_18 = arith.constant dense<0.000000e+00> : vector<8x1024xf32>
    %30 = tpu.matmul %28, %29, %cst_18 {dimension_numbers = #tpu.dot_dimension_numbers<[1], [0], [0], [1], [0, 0, 1, 1], [], []>} : vector<8x1024xbf16>, vector<1024x1024xbf16>, vector<8x1024xf32> -> vector<8x1024xf32>
    %c0_19 = arith.constant 0 : index
    %c0_20 = arith.constant 0 : index
    %31 = vector.load %arg7[%c0_19, %c0_20] : memref<1x1024xf32, #tpu.memory_space<vmem>>, vector<1x1024xf32>
    %32 = vector.broadcast %31 : vector<1x1024xf32> to vector<8x1024xf32>
    %33 = arith.addf %30, %32 : vector<8x1024xf32>
    %cst_21 = arith.constant 5.000000e-01 : f32
    %34 = vector.broadcast %cst_21 : f32 to vector<8x1024xf32>
    %35 = arith.mulf %34, %33 : vector<8x1024xf32>
    %cst_22 = arith.constant 0.707106769 : f32
    %36 = vector.broadcast %cst_22 : f32 to vector<8x1024xf32>
    %37 = arith.mulf %33, %36 : vector<8x1024xf32>
    %38 = math.erf %37 : vector<8x1024xf32>
    %cst_23 = arith.constant 1.000000e+00 : f32
    %39 = vector.broadcast %cst_23 : f32 to vector<8x1024xf32>
    %40 = arith.addf %39, %38 : vector<8x1024xf32>
    %41 = arith.mulf %35, %40 : vector<8x1024xf32>
    %42 = arith.truncf %41 : vector<8x1024xf32> to vector<8x1024xbf16>
    %c0_24 = arith.constant 0 : index
    %c0_25 = arith.constant 0 : index
    %43 = vector.load %arg8[%c0_24, %c0_25] : memref<1024x128xbf16, #tpu.memory_space<vmem>>, vector<1024x128xbf16>
    %cst_26 = arith.constant dense<0.000000e+00> : vector<8x128xf32>
    %44 = tpu.matmul %42, %43, %cst_26 {dimension_numbers = #tpu.dot_dimension_numbers<[1], [0], [0], [1], [0, 0, 1, 1], [], []>} : vector<8x1024xbf16>, vector<1024x128xbf16>, vector<8x128xf32> -> vector<8x128xf32>
    %c0_27 = arith.constant 0 : index
    %c0_28 = arith.constant 0 : index
    %45 = vector.load %arg9[%c0_27, %c0_28] : memref<1x128xf32, #tpu.memory_space<vmem>>, vector<1x128xf32>
    %46 = vector.broadcast %45 : vector<1x128xf32> to vector<8x128xf32>
    %47 = arith.addf %44, %46 : vector<8x128xf32>
    %c0_29 = arith.constant 0 : index
    %c0_30 = arith.constant 0 : index
    %48 = vector.load %arg10[%c0_29, %c0_30] : memref<8x128xf32, #tpu.memory_space<vmem>>, vector<8x128xf32>
    tpu.vector_store %arg10[%c0_29, %c0_30], %47 {strides = array<i32>} : memref<8x128xf32, #tpu.memory_space<vmem>>, vector<8x128xf32>,
    return
  }
  func.func @transform_0(%arg0: i32) -> (i32, i32) {
    %c0_i32 = arith.constant 0 : i32
    %c0_i32_0 = arith.constant 0 : i32
    return %arg0, %c0_i32 : i32, i32
  }
  func.func @transform_1(%arg0: i32) -> (i32, i32) {
    %c0_i32 = arith.constant 0 : i32
    %c0_i32_0 = arith.constant 0 : i32
    %c0_i32_1 = arith.constant 0 : i32
    return %c0_i32, %c0_i32_0 : i32, i32
  }
  func.func @transform_2(%arg0: i32) -> (i32, i32) {
    %c0_i32 = arith.constant 0 : i32
    %c0_i32_0 = arith.constant 0 : i32
    %c0_i32_1 = arith.constant 0 : i32
    return %c0_i32, %c0_i32_0 : i32, i32
  }
  func.func @transform_3(%arg0: i32) -> (i32, i32) {
    %c0_i32 = arith.constant 0 : i32
    %c0_i32_0 = arith.constant 0 : i32
    %c0_i32_1 = arith.constant 0 : i32
    return %c0_i32, %c0_i32_0 : i32, i32
  }
  func.func @transform_4(%arg0: i32) -> (i32, i32) {
    %c0_i32 = arith.constant 0 : i32
    %c0_i32_0 = arith.constant 0 : i32
    %c0_i32_1 = arith.constant 0 : i32
    return %c0_i32, %c0_i32_0 : i32, i32
  }
  func.func @transform_5(%arg0: i32) -> (i32, i32) {
    %c0_i32 = arith.constant 0 : i32
    %c0_i32_0 = arith.constant 0 : i32
    %c0_i32_1 = arith.constant 0 : i32
    return %c0_i32, %c0_i32_0 : i32, i32
  }
  func.func @transform_6(%arg0: i32) -> (i32, i32) {
    %c0_i32 = arith.constant 0 : i32
    %c0_i32_0 = arith.constant 0 : i32
    %c0_i32_1 = arith.constant 0 : i32
    return %c0_i32, %c0_i32_0 : i32, i32
  }
  func.func @transform_7(%arg0: i32) -> (i32, i32) {
    %c0_i32 = arith.constant 0 : i32
    %c0_i32_0 = arith.constant 0 : i32
    %c0_i32_1 = arith.constant 0 : i32
    return %c0_i32, %c0_i32_0 : i32, i32
  }
  func.func @transform_8(%arg0: i32) -> (i32, i32) {
    %c0_i32 = arith.constant 0 : i32
    %c0_i32_0 = arith.constant 0 : i32
    %c0_i32_1 = arith.constant 0 : i32
    return %c0_i32, %c0_i32_0 : i32, i32
  }
  func.func @transform_9(%arg0: i32) -> (i32, i32) {
    %c0_i32 = arith.constant 0 : i32
    %c0_i32_0 = arith.constant 0 : i32
    return %arg0, %c0_i32 : i32, i32
  }
}

</mosaic_0001>

<bundles_post_ra>
// kernel: tpu_custom_call.1
= control target key start
LH: loop header
LB: loop body
LE: loop exit
PB: predicated region body
PF: predicated region fallthrough
CT: control target
= control target key end

     0   :  { %14 = vsyncpa [#allocation3], 0  ;;  %s10817_s0 = inlined_call_operand.hbm [shape: bf16[8,32], index: 0, kind: input, shape index: {}]   ;;  %s10818_s1 = inlined_call_operand.hbm [shape: bf16[32,1024], index: 1, kind: input, shape index: {}]   ;;  %s10819_s2 = inlined_call_operand.hbm [shape: f32[1,1024], index: 2, kind: input, shape index: {}]   ;;  %s10820_s3 = inlined_call_operand.hbm [shape: bf16[1024,1024], index: 3, kind: input, shape index: {}]   ;;  %s10821_s4 = inlined_call_operand.hbm [shape: f32[1,1024], index: 4, kind: input, shape index: {}]   ;;  %s10822_s5 = inlined_call_operand.hbm [shape: bf16[1024,1024], index: 5, kind: input, shape index: {}]   ;;  %s10823_s6 = inlined_call_operand.hbm [shape: f32[1,1024], index: 6, kind: input, shape index: {}]   ;;  %s10824_s7 = inlined_call_operand.hbm [shape: bf16[1024,128], index: 7, kind: input, shape index: {}]   ;;  %s10825_s8 = inlined_call_operand.hbm [shape: f32[1,128], index: 8, kind: input, shape index: {}]   ;;  %s10826_s9 = inlined_call_operand.hbm [shape: f32[8,128], index: 9, kind: output, shape index: {}]  }
   0x1   :  { %15 = vsyncpa [#allocation6], 0 }
   0x2   :  { %16 = vsyncpa [#allocation9], 0 }
   0x3   :  { %17 = vsyncpa [#allocation12], 0 }
   0x4   :  { %18 = vsyncpa [#allocation15], 0 }
   0x5   :  { %19 = vsyncpa [#allocation4], 0  ;;  %s10375_s30 = smov [#allocation5]  }
   0x6   :  { %s35_s10 = sshll.u32 %s10375_s30, 4  ;;  %s36_s10 = int_to_ptr.vmem [resolvable:$true] %s35_s10 }
   0x7   :  { %s10171_s11 = scalar_lea.vmem %s36_s10, 2048  ;;  %p10176_p1 = scmp.lt.s32.totalorder %s36_s10, %s36_s10 }
   0x8   :  { %p10172_p0 = scmp.ne.s32.totalorder %s36_s10, %s10171_s11  ;;  %p10177_p2 = scmp.lt.s32.totalorder %s10171_s11, %s10171_s11 }
   0xa   :  { %p10178_p3 = por %p10177_p2, %p10176_p1 }
   0xc   :  { %p10179_p4 = pnand %p10178_p3, %p10172_p0 }
   0xe   :  { %10182 = shalt.err (!%p10179_p4)
}
   0xf   :  { %s10376_s12 = smov 512   ;;  %s10377_s13 = smov 32  }
  0x10   :  { %41 = dma.hbm_to_vmem [thread:$0]  %s10818_s1, 2048, %s36_s10, [#allocation6], %s10376_s12, %s10376_s12, %s10377_s13  }
  0x11   :  { %s10378_s16 = smov [#allocation8]   ;;  %s10379_s18 = smov [#allocation11]  }
  0x12   :  { %s57_s17 = sshll.u32 %s10378_s16, 4  ;;  %s79_s19 = sshll.u32 %s10379_s18, 4  ;;  %s58_s17 = int_to_ptr.vmem [resolvable:$true] %s57_s17  ;;  %s80_s19 = int_to_ptr.vmem [resolvable:$true] %s79_s19 }
  0x13   :  { %s10191_s20 = scalar_lea.vmem %s58_s17, 65536  ;;  %p10196_p6 = scmp.lt.s32.totalorder %s58_s17, %s58_s17 }
  0x14   :  { %p10192_p5 = scmp.ne.s32.totalorder %s58_s17, %s10191_s20  ;;  %p10197_p7 = scmp.lt.s32.totalorder %s10191_s20, %s10191_s20 }
  0x16   :  { %p10198_p8 = por %p10197_p7, %p10196_p6 }
  0x18   :  { %p10199_p9 = pnand %p10198_p8, %p10192_p5 }
  0x1a   :  { %10202 = shalt.err (!%p10199_p9)
}
  0x1b   :  { %63 = dma.hbm_to_vmem [thread:$0]  %s10820_s3, 65536, %s58_s17, [#allocation9], %s10376_s12, %s10376_s12, %s10377_s13  }
  0x1c   :  { %s10211_s23 = scalar_lea.vmem %s80_s19, 65536  ;;  %p10216_p11 = scmp.lt.s32.totalorder %s80_s19, %s80_s19 }
  0x1d   :  { %p10212_p10 = scmp.ne.s32.totalorder %s80_s19, %s10211_s23  ;;  %p10217_p12 = scmp.lt.s32.totalorder %s10211_s23, %s10211_s23 }
  0x1f   :  { %p10218_p13 = por %p10217_p12, %p10216_p11 }
  0x21   :  { %p10219_p0 = pnand %p10218_p13, %p10212_p10 }
  0x23   :  { %10222 = shalt.err (!%p10219_p0)
}
  0x24   :  { %85 = dma.hbm_to_vmem [thread:$0]  %s10822_s5, 65536, %s80_s19, [#allocation12], %s10376_s12, %s10376_s12, %s10377_s13  }
  0x25   :  { %s10380_s25 = smov [#allocation14]  }
  0x26   :  { %s101_s26 = sshll.u32 %s10380_s25, 4  ;;  %s102_s26 = int_to_ptr.vmem [resolvable:$true] %s101_s26 }
  0x27   :  { %s10231_s27 = scalar_lea.vmem %s102_s26, 8192  ;;  %p10236_p2 = scmp.lt.s32.totalorder %s102_s26, %s102_s26 }
  0x28   :  { %p10232_p1 = scmp.ne.s32.totalorder %s102_s26, %s10231_s27  ;;  %p10237_p3 = scmp.lt.s32.totalorder %s10231_s27, %s10231_s27 }
  0x2a   :  { %p10238_p4 = por %p10237_p3, %p10236_p2 }
  0x2c   :  { %p10239_p5 = pnand %p10238_p4, %p10232_p1 }
  0x2e   :  { %10242 = shalt.err (!%p10239_p5)
}
  0x2f   :  { %s10381_s3 = smov 64   ;;  %s10382_s28 = smov 4  }
  0x30   :  { %107 = dma.hbm_to_vmem [thread:$0]  %s10824_s7, 8192, %s102_s26, [#allocation15], %s10381_s3, %s10381_s3, %s10382_s28  }
  0x31   :  { %s10383_s10 = smov [#allocation2]   ;;  %s10384_s14 = smov [#allocation7]  }
  0x32   :  { %s26_s11 = sshll.u32 %s10383_s10, 4  ;;  %s48_s5 = sshll.u32 %s10384_s14, 4  ;;  %s27_s11 = int_to_ptr.vmem [resolvable:$true] %s26_s11  ;;  %s49_s5 = int_to_ptr.vmem [resolvable:$true] %s48_s5 }
  0x33   :  { %s10251_s12 = scalar_lea.vmem %s27_s11, 64  ;;  %p10256_p7 = scmp.lt.s32.totalorder %s27_s11, %s27_s11 }
  0x34   :  { %p10252_p6 = scmp.ne.s32.totalorder %s27_s11, %s10251_s12  ;;  %p10257_p8 = scmp.lt.s32.totalorder %s10251_s12, %s10251_s12 }
  0x36   :  { %p10258_p9 = por %p10257_p8, %p10256_p7 }
  0x38   :  { %p10259_p10 = pnand %p10258_p9, %p10252_p6 }
  0x3a   :  { %10262 = shalt.err (!%p10259_p10)
}
  0x3b   :  { %29 = dma.hbm_to_vmem [thread:$0]  %s10817_s0, 64, %s27_s11, [#allocation3]  }
  0x3c   :  { %s10271_s16 = scalar_lea.vmem %s49_s5, 128  ;;  %p10276_p12 = scmp.lt.s32.totalorder %s49_s5, %s49_s5 }
  0x3d   :  { %p10272_p11 = scmp.ne.s32.totalorder %s49_s5, %s10271_s16  ;;  %p10277_p13 = scmp.lt.s32.totalorder %s10271_s16, %s10271_s16 }
  0x3f   :  { %p10278_p0 = por %p10277_p13, %p10276_p12 }
  0x41   :  { %p10279_p1 = pnand %p10278_p0, %p10272_p11 }
  0x43   :  { %10282 = shalt.err (!%p10279_p1)
}
  0x44   :  { %51 = dma.hbm_to_vmem [thread:$0]  %s10819_s2, 128, %s49_s5, [#allocation6]  }
  0x45   :  { %s10385_s18 = smov [#allocation10]   ;;  %s10386_s20 = smov [#allocation13]  }
  0x46   :  { %s70_s19 = sshll.u32 %s10385_s18, 4  ;;  %s92_s21 = sshll.u32 %s10386_s20, 4  ;;  %s71_s19 = int_to_ptr.vmem [resolvable:$true] %s70_s19  ;;  %s93_s21 = int_to_ptr.vmem [resolvable:$true] %s92_s21 }
  0x47   :  { %s10291_s22 = scalar_lea.vmem %s71_s19, 128  ;;  %p10296_p3 = scmp.lt.s32.totalorder %s71_s19, %s71_s19 }
  0x48   :  { %p10292_p2 = scmp.ne.s32.totalorder %s71_s19, %s10291_s22  ;;  %p10297_p4 = scmp.lt.s32.totalorder %s10291_s22, %s10291_s22 }
  0x4a   :  { %p10298_p5 = por %p10297_p4, %p10296_p3 }
  0x4c   :  { %p10299_p6 = pnand %p10298_p5, %p10292_p2 }
  0x4e   :  { %10302 = shalt.err (!%p10299_p6)
}
  0x4f   :  { %73 = dma.hbm_to_vmem [thread:$0]  %s10821_s4, 128, %s71_s19, [#allocation9]  }
  0x50   :  { %s10311_s1 = scalar_lea.vmem %s93_s21, 128  ;;  %p10316_p8 = scmp.lt.s32.totalorder %s93_s21, %s93_s21 }
  0x51   :  { %p10312_p7 = scmp.ne.s32.totalorder %s93_s21, %s10311_s1  ;;  %p10317_p9 = scmp.lt.s32.totalorder %s10311_s1, %s10311_s1 }
  0x53   :  { %p10318_p10 = por %p10317_p9, %p10316_p8 }
  0x55   :  { %p10319_p11 = pnand %p10318_p10, %p10312_p7 }
  0x57   :  { %10322 = shalt.err (!%p10319_p11)
}
  0x58   :  { %95 = dma.hbm_to_vmem [thread:$0]  %s10823_s6, 128, %s93_s21, [#allocation12]  }
  0x59   :  { %s10387_s25 = smov [#allocation16]  }
  0x5a   :  { %s114_s26 = sshll.u32 %s10387_s25, 4  ;;  %s115_s26 = int_to_ptr.vmem [resolvable:$true] %s114_s26 }
  0x5b   :  { %s10331_s27 = scalar_lea.vmem %s115_s26, 16  ;;  %s10335_s3 = scalar_lea.vmem %s115_s26, 32 }
  0x5c   :  { %p10332_p12 = scmp.ne.s32.totalorder %s115_s26, %s10331_s27  ;;  %p10336_p13 = scmp.lt.s32.totalorder %s115_s26, %s115_s26 }
  0x5d   :  { %p10337_p0 = scmp.lt.s32.totalorder %s10335_s3, %s10331_s27 }
  0x5f   :  { %p10338_p1 = por %p10337_p0, %p10336_p13 }
  0x61   :  { %p10339_p2 = pnand %p10338_p1, %p10332_p12 }
  0x63   :  { %10342 = shalt.err (!%p10339_p2)
}
  0x64   :  { %117 = dma.hbm_to_vmem [thread:$0]  %s10825_s8, 16, %s115_s26, [#allocation15]  }
  0x65   :  { %10363 = dma.done.wait [#allocation3], 64  }
  0x66   :  { %10364 = vsyncadd [#allocation3], 4294967232 }
  0x67   :  { %10365 = dma.done.wait [#allocation6], 2176  }
  0x68   :  { %10366 = vsyncadd [#allocation6], 4294965120 }
  0x69   :  { %10367 = dma.done.wait [#allocation9], 65664  }
  0x6a   :  { %10368 = vsyncadd [#allocation9], 4294901632 }
  0x6b   :  { %10369 = dma.done.wait [#allocation12], 65664  }
  0x6c   :  { %10370 = vsyncadd [#allocation12], 4294901632 }
  0x6d   :  { %10371 = dma.done.wait [#allocation15], 8208  }
  0x6e   :  { %10372 = vsyncadd [#allocation15], 4294959088  ;;  %v10388_v0 = vmov 0   ;;  %v155_v1 = vld [vmem:[#allocation5 + $0x40] sm:$0xff]  ;;  %v156_v3 = vld [vmem:[#allocation5 + $0x48] sm:$0xff]  ;;  %vm285_vm0 = vcmask 261120  }
  0x6f   :  { %321 = vmatprep.mubr.bf16.mxu0 %v10388_v0  ;;  %362 = vmatprep.mubr.bf16.mxu1 %v10388_v0  ;;  %v159_v2 = vld [vmem:[#allocation5 + $0x60] sm:$0xff]  ;;  %v160_v5 = vld [vmem:[#allocation5 + $0x68] sm:$0xff]  ;;  %v157_v15 = vld [vmem:[#allocation5 + $0x50] sm:$0xff]  ;;  %s10389_s6 = smov [#allocation17]  }
  0x70   :  { %v8845_v4 = vcombine.high %v155_v1, %v159_v2  ;;  %v8844_v6 = vcombine.low %v155_v1, %v159_v2  ;;  %v147_v7 = vld [vmem:[#allocation5] sm:$0xff]  ;;  %v8847_v9 = vcombine.high %v156_v3, %v160_v5  ;;  %v8846_v10 = vcombine.low %v156_v3, %v160_v5  ;;  %v148_v12 = vld [vmem:[#allocation5 + $0x8] sm:$0xff]  ;;  %v161_v16 = vld [vmem:[#allocation5 + $0x70] sm:$0xff]  ;;  %s8823_s8 = sshll.u32 %s10389_s6, 4  ;;  %s8824_s8 = int_to_ptr.vmem [resolvable:$true] %s8823_s8 }
  0x71   :  { %v151_v8 = vld [vmem:[#allocation5 + $0x20] sm:$0xff]  ;;  %v152_v13 = vld [vmem:[#allocation5 + $0x28] sm:$0xff]  ;;  %v158_v17 = vld [vmem:[#allocation5 + $0x58] sm:$0xff]  ;;  %v8849_v21 = vcombine.high %v157_v15, %v161_v16  ;;  %v8848_v28 = vcombine.low %v157_v15, %v161_v16  ;;  %s10343_s29 = scalar_lea.vmem %s8824_s8, 128  ;;  %p10348_p4 = scmp.lt.s32.totalorder %s8824_s8, %s8824_s8 }
  0x72   :  { %v8837_v11 = vcombine.high %v147_v7, %v151_v8  ;;  %301 = vmatprep.subr.bf16.mxu0 %v8845_v4  ;;  %v8839_v14 = vcombine.high %v148_v12, %v152_v13  ;;  %342 = vmatprep.subr.bf16.mxu1 %v8847_v9  ;;  %v8836_v18 = vcombine.low %v147_v7, %v151_v8  ;;  %v162_v19 = vld [vmem:[#allocation5 + $0x78] sm:$0xff]  ;;  %v149_v23 = vld [vmem:[#allocation5 + $0x10] sm:$0xff]  ;;  %v557_v32 = vld [vmem:[#allocation8 + $0x1c0] sm:$0xff]  ;;  %p10344_p3 = scmp.ne.s32.totalorder %s8824_s8, %s10343_s29  ;;  %p10349_p5 = scmp.lt.s32.totalorder %s10343_s29, %s10343_s29 }
  0x73   :  { %302 = vmatpush1.bf16.msra.mxu0 %v8844_v6  ;;  %343 = vmatpush1.bf16.msra.mxu1 %v8846_v10  ;;  %v8838_v20 = vcombine.low %v148_v12, %v152_v13  ;;  %v8851_v22 = vcombine.high %v158_v17, %v162_v19  ;;  %v153_v24 = vld [vmem:[#allocation5 + $0x30] sm:$0xff]  ;;  %v150_v25 = vld [vmem:[#allocation5 + $0x18] sm:$0xff]  ;;  %v8850_v29 = vcombine.low %v158_v17, %v162_v19  ;;  %v561_v33 = vld [vmem:[#allocation8 + $0x1e0] sm:$0xff] }
  0x74   :  { %303 = vmatprep.subr.bf16.mxu0 %v8837_v11  ;;  %344 = vmatprep.subr.bf16.mxu1 %v8839_v14  ;;  %v154_v26 = vld [vmem:[#allocation5 + $0x38] sm:$0xff]  ;;  %v8841_v30 = vcombine.high %v149_v23, %v153_v24  ;;  %v685_v34 = vld [vmem:[#allocation8 + $0x5c0] sm:$0xff]  ;;  %v8840_v36 = vcombine.low %v149_v23, %v153_v24  ;;  %v8913_v38 = vcombine.high %v557_v32, %v561_v33  ;;  %p10350_p6 = por %p10349_p5, %p10348_p4 }
  0x75   :  { %v146_v27 = vld [vmem:[#allocation2] sm:$0xf]  ;;  %v8843_v31 = vcombine.high %v150_v25, %v154_v26  ;;  %v689_v35 = vld [vmem:[#allocation8 + $0x5e0] sm:$0xff]  ;;  %v8842_v37 = vcombine.low %v150_v25, %v154_v26  ;;  %v8912_v44 = vcombine.low %v557_v32, %v561_v33 }
  0x76   :  { %v9041_v39 = vcombine.high %v685_v34, %v689_v35  ;;  %v549_v40 = vld [vmem:[#allocation8 + $0x180] sm:$0xff]  ;;  %v9040_v45 = vcombine.low %v685_v34, %v689_v35  ;;  %p10351_p7 = pnand %p10350_p6, %p10344_p3 }
  0x77   :  { %304 = vmatpush1.bf16.msra.mxu0 %v8836_v18  ;;  %345 = vmatpush1.bf16.msra.mxu1 %v8838_v20  ;;  %v553_v41 = vld [vmem:[#allocation8 + $0x1a0] sm:$0xff] }
  0x78   :  { %383 = vmatprep.subr.bf16.mxu0 %v8849_v21  ;;  %424 = vmatprep.subr.bf16.mxu1 %v8851_v22  ;;  %v677_v42 = vld [vmem:[#allocation8 + $0x580] sm:$0xff]  ;;  %v8905_v46 = vcombine.high %v549_v40, %v553_v41  ;;  %v8904_v52 = vcombine.low %v549_v40, %v553_v41 }
  0x79   :  { %v681_v43 = vld [vmem:[#allocation8 + $0x5a0] sm:$0xff] }
  0x7a   :  { %8852 = vmatmul.mubr.msk.bf16.vlgmr.msra.gmra.mxu0 %vm285_vm0, %v146_v27  ;;  %8853 = vmatmul.mubr.msk.bf16.vlgmr.msra.gmra.mxu1 %vm285_vm0, %v146_v27  ;;  %v9033_v47 = vcombine.high %v677_v42, %v681_v43  ;;  %v541_v48 = vld [vmem:[#allocation8 + $0x140] sm:$0xff]  ;;  %v9032_v55 = vcombine.low %v677_v42, %v681_v43 }
  0x7b   :  { %384 = vmatpush1.bf16.msra.mxu0 %v8848_v28  ;;  %425 = vmatpush1.bf16.msra.mxu1 %v8850_v29  ;;  %v545_v49 = vld [vmem:[#allocation8 + $0x160] sm:$0xff] }
  0x7c   :  { %385 = vmatprep.subr.bf16.mxu0 %v8841_v30  ;;  %426 = vmatprep.subr.bf16.mxu1 %v8843_v31  ;;  %v669_v50 = vld [vmem:[#allocation8 + $0x540] sm:$0xff]  ;;  %v8897_v56 = vcombine.high %v541_v48, %v545_v49  ;;  %v8896_v60 = vcombine.low %v541_v48, %v545_v49 }
  0x7d   :  { %403 = vmatprep.mubr.bf16.mxu0 %v10388_v0  ;;  %444 = vmatprep.mubr.bf16.mxu1 %v10388_v0  ;;  %v673_v51 = vld [vmem:[#allocation8 + $0x560] sm:$0xff] }
  0x7e   :  { %v533_v53 = vld [vmem:[#allocation8 + $0x100] sm:$0xff]  ;;  %v9025_v59 = vcombine.high %v669_v50, %v673_v51  ;;  %v9024_v63 = vcombine.low %v669_v50, %v673_v51 }
  0x7f   :  { %386 = vmatpush1.bf16.msra.mxu0 %v8840_v36  ;;  %427 = vmatpush1.bf16.msra.mxu1 %v8842_v37  ;;  %v537_v54 = vld [vmem:[#allocation8 + $0x120] sm:$0xff] }
  0x80   :  { %3615 = vmatprep.subr.bf16.mxu0 %v8913_v38  ;;  %3656 = vmatprep.subr.bf16.mxu1 %v9041_v39  ;;  %v661_v57 = vld [vmem:[#allocation8 + $0x500] sm:$0xff]  ;;  %v8889_v0 = vcombine.high %v533_v53, %v537_v54  ;;  %v8888_v4 = vcombine.low %v533_v53, %v537_v54 }
  0x81   :  { %v665_v58 = vld [vmem:[#allocation8 + $0x520] sm:$0xff] }
  0x82   :  { %8854 = vmatmul.mubr.msk.bf16.vlgmr.msra.gmra.mxu0 %vm285_vm0, %v146_v27  ;;  %8855 = vmatmul.mubr.msk.bf16.vlgmr.msra.gmra.mxu1 %vm285_vm0, %v146_v27  ;;  %v525_v61 = vld [vmem:[#allocation8 + $0xc0] sm:$0xff]  ;;  %v9017_v3 = vcombine.high %v661_v57, %v665_v58  ;;  %v9016_v7 = vcombine.low %v661_v57, %v665_v58 }
  0x83   :  { %3616 = vmatpush1.bf16.msra.mxu0 %v8912_v44  ;;  %3657 = vmatpush1.bf16.msra.mxu1 %v9040_v45  ;;  %v529_v62 = vld [vmem:[#allocation8 + $0xe0] sm:$0xff] }
  0x84   :  { %3617 = vmatprep.subr.bf16.mxu0 %v8905_v46  ;;  %3658 = vmatprep.subr.bf16.mxu1 %v9033_v47  ;;  %v653_v1 = vld [vmem:[#allocation8 + $0x4c0] sm:$0xff]  ;;  %v8881_v8 = vcombine.high %v525_v61, %v529_v62  ;;  %v8880_v12 = vcombine.low %v525_v61, %v529_v62 }
  0x85   :  { %v657_v2 = vld [vmem:[#allocation8 + $0x4e0] sm:$0xff] }
  0x86   :  { %v517_v5 = vld [vmem:[#allocation8 + $0x80] sm:$0xff]  ;;  %v9009_v11 = vcombine.high %v653_v1, %v657_v2  ;;  %v9008_v15 = vcombine.low %v653_v1, %v657_v2 }
  0x87   :  { %3618 = vmatpush1.bf16.msra.mxu0 %v8904_v52  ;;  %3659 = vmatpush1.bf16.msra.mxu1 %v9032_v55  ;;  %v521_v6 = vld [vmem:[#allocation8 + $0xa0] sm:$0xff] }
  0x88   :  { %3619 = vmatprep.subr.bf16.mxu0 %v8897_v56  ;;  %3660 = vmatprep.subr.bf16.mxu1 %v9025_v59  ;;  %v645_v9 = vld [vmem:[#allocation8 + $0x480] sm:$0xff]  ;;  %v8873_v16 = vcombine.high %v517_v5, %v521_v6  ;;  %v8872_v20 = vcombine.low %v517_v5, %v521_v6 }
  0x89   :  { %v649_v10 = vld [vmem:[#allocation8 + $0x4a0] sm:$0xff] }
  0x8a   :  { %v509_v13 = vld [vmem:[#allocation8 + $0x40] sm:$0xff]  ;;  %v9001_v19 = vcombine.high %v645_v9, %v649_v10  ;;  %v9000_v23 = vcombine.low %v645_v9, %v649_v10 }
  0x8b   :  { %3620 = vmatpush1.bf16.msra.mxu0 %v8896_v60  ;;  %3661 = vmatpush1.bf16.msra.mxu1 %v9024_v63  ;;  %v513_v14 = vld [vmem:[#allocation8 + $0x60] sm:$0xff] }
  0x8c   :  { %3621 = vmatprep.subr.bf16.mxu0 %v8889_v0  ;;  %3662 = vmatprep.subr.bf16.mxu1 %v9017_v3  ;;  %v637_v17 = vld [vmem:[#allocation8 + $0x440] sm:$0xff]  ;;  %v8865_v24 = vcombine.high %v509_v13, %v513_v14  ;;  %v8864_v28 = vcombine.low %v509_v13, %v513_v14 }
  0x8d   :  { %v641_v18 = vld [vmem:[#allocation8 + $0x460] sm:$0xff] }
  0x8e   :  { %v501_v21 = vld [vmem:[#allocation8] sm:$0xff]  ;;  %v8993_v27 = vcombine.high %v637_v17, %v641_v18  ;;  %v8992_v31 = vcombine.low %v637_v17, %v641_v18 }
  0x8f   :  { %3622 = vmatpush1.bf16.msra.mxu0 %v8888_v4  ;;  %3663 = vmatpush1.bf16.msra.mxu1 %v9016_v7  ;;  %v505_v22 = vld [vmem:[#allocation8 + $0x20] sm:$0xff] }
  0x90   :  { %3623 = vmatprep.subr.bf16.mxu0 %v8881_v8  ;;  %3664 = vmatprep.subr.bf16.mxu1 %v9009_v11  ;;  %v629_v25 = vld [vmem:[#allocation8 + $0x400] sm:$0xff]  ;;  %v8857_v32 = vcombine.high %v501_v21, %v505_v22  ;;  %v8856_v36 = vcombine.low %v501_v21, %v505_v22 }
  0x91   :  { %v633_v26 = vld [vmem:[#allocation8 + $0x420] sm:$0xff] }
  0x92   :  { %v621_v29 = vld [vmem:[#allocation8 + $0x3c0] sm:$0xff]  ;;  %v8985_v35 = vcombine.high %v629_v25, %v633_v26  ;;  %v8984_v39 = vcombine.low %v629_v25, %v633_v26 }
  0x93   :  { %3624 = vmatpush1.bf16.msra.mxu0 %v8880_v12  ;;  %3665 = vmatpush1.bf16.msra.mxu1 %v9008_v15  ;;  %v625_v30 = vld [vmem:[#allocation8 + $0x3e0] sm:$0xff] }
  0x94   :  { %3625 = vmatprep.subr.bf16.mxu0 %v8873_v16  ;;  %3666 = vmatprep.subr.bf16.mxu1 %v9001_v19  ;;  %v749_v33 = vld [vmem:[#allocation8 + $0x7c0] sm:$0xff]  ;;  %v8977_v40 = vcombine.high %v621_v29, %v625_v30  ;;  %v8976_v44 = vcombine.low %v621_v29, %v625_v30 }
  0x95   :  { %v753_v34 = vld [vmem:[#allocation8 + $0x7e0] sm:$0xff] }
  0x96   :  { %v613_v37 = vld [vmem:[#allocation8 + $0x380] sm:$0xff]  ;;  %v9105_v43 = vcombine.high %v749_v33, %v753_v34  ;;  %v9104_v45 = vcombine.low %v749_v33, %v753_v34 }
  0x97   :  { %3626 = vmatpush1.bf16.msra.mxu0 %v8872_v20  ;;  %3667 = vmatpush1.bf16.msra.mxu1 %v9000_v23  ;;  %v617_v38 = vld [vmem:[#allocation8 + $0x3a0] sm:$0xff] }
  0x98   :  { %3627 = vmatprep.subr.bf16.mxu0 %v8865_v24  ;;  %3668 = vmatprep.subr.bf16.mxu1 %v8993_v27  ;;  %v741_v41 = vld [vmem:[#allocation8 + $0x780] sm:$0xff]  ;;  %v8969_v46 = vcombine.high %v613_v37, %v617_v38  ;;  %v8968_v48 = vcombine.low %v613_v37, %v617_v38 }
  0x99   :  { %v745_v42 = vld [vmem:[#allocation8 + $0x7a0] sm:$0xff] }
  0x9a   :  { %v9097_v47 = vcombine.high %v741_v41, %v745_v42  ;;  %v9096_v49 = vcombine.low %v741_v41, %v745_v42  ;;  %v605_v50 = vld [vmem:[#allocation8 + $0x340] sm:$0xff]  ;;  %v165_v42 = vlaneseq }
  0x9b   :  { %3628 = vmatpush1.bf16.msra.mxu0 %v8864_v28  ;;  %3669 = vmatpush1.bf16.msra.mxu1 %v8992_v31  ;;  %v609_v51 = vld [vmem:[#allocation8 + $0x360] sm:$0xff] }
  0x9c   :  { %3629 = vmatprep.subr.bf16.mxu0 %v8857_v32  ;;  %3670 = vmatprep.subr.bf16.mxu1 %v8985_v35  ;;  %v733_v52 = vld [vmem:[#allocation8 + $0x740] sm:$0xff]  ;;  %v8961_v53 = vcombine.high %v605_v50, %v609_v51  ;;  %v8960_v55 = vcombine.low %v605_v50, %v609_v51 }
  0x9d   :  { %v737_v54 = vld [vmem:[#allocation8 + $0x760] sm:$0xff] }
  0x9e   :  { %v9088_v56 = vcombine.low %v733_v52, %v737_v54  ;;  %v9089_v57 = vcombine.high %v733_v52, %v737_v54  ;;  %v597_v58 = vld [vmem:[#allocation8 + $0x300] sm:$0xff] }
  0x9f   :  { %3630 = vmatpush1.bf16.msra.mxu0 %v8856_v36  ;;  %3671 = vmatpush1.bf16.msra.mxu1 %v8984_v39  ;;  %v601_v59 = vld [vmem:[#allocation8 + $0x320] sm:$0xff] }
  0xa0   :  { %3631 = vmatprep.subr.bf16.mxu0 %v8977_v40  ;;  %3672 = vmatprep.subr.bf16.mxu1 %v9105_v43  ;;  %v725_v60 = vld [vmem:[#allocation8 + $0x700] sm:$0xff]  ;;  %v8953_v61 = vcombine.high %v597_v58, %v601_v59  ;;  %v8952_v63 = vcombine.low %v597_v58, %v601_v59  ;;  %v10487_v43 = vshrl.u32 %v165_v42, 7 }
  0xa1   :  { %v729_v62 = vld [vmem:[#allocation8 + $0x720] sm:$0xff] }
  0xa2   :  { %v9080_v0 = vcombine.low %v725_v60, %v729_v62  ;;  %v9081_v1 = vcombine.high %v725_v60, %v729_v62  ;;  %v589_v2 = vld [vmem:[#allocation8 + $0x2c0] sm:$0xff] }
  0xa3   :  { %3632 = vmatpush2.bf16.msra.mxu0 %v8976_v44  ;;  %3673 = vmatpush2.bf16.msra.mxu1 %v9104_v45  ;;  %v593_v3 = vld [vmem:[#allocation8 + $0x2e0] sm:$0xff]  ;;  %v10490_v44 = vsub.s32 0, %v10487_v43  ;;  %v10492_v45 = vld [vmem:[#allocation7] sm:$0xff] }
  0xa4   :  { %3633 = vmatprep.subr.bf16.mxu0 %v8969_v46  ;;  %3674 = vmatprep.subr.bf16.mxu1 %v9097_v47  ;;  %v717_v4 = vld [vmem:[#allocation8 + $0x6c0] sm:$0xff]  ;;  %v8945_v5 = vcombine.high %v589_v2, %v593_v3  ;;  %v8944_v7 = vcombine.low %v589_v2, %v593_v3  ;;  %v10495_v46 = vsub.s32 2, %v10487_v43  ;;  %v10498_v47 = vsub.s32 1, %v10487_v43 }
  0xa5   :  { %v721_v6 = vld [vmem:[#allocation8 + $0x6e0] sm:$0xff] }
  0xa6   :  { %v9072_v8 = vcombine.low %v717_v4, %v721_v6  ;;  %v9073_v9 = vcombine.high %v717_v4, %v721_v6  ;;  %v581_v10 = vld [vmem:[#allocation8 + $0x280] sm:$0xff]  ;;  %v176_v50 = vrot.slane %v10492_v45, %v10495_v46  ;;  %v172_v51 = vrot.slane %v10492_v45, %v10498_v47 }
  0xa7   :  { %3634 = vmatpush2.bf16.msra.mxu0 %v8968_v48  ;;  %3675 = vmatpush2.bf16.msra.mxu1 %v9096_v49  ;;  %v585_v11 = vld [vmem:[#allocation8 + $0x2a0] sm:$0xff]  ;;  %v10501_v48 = vsub.s32 3, %v10487_v43  ;;  %v168_v49 = vrot.slane %v10492_v45, %v10490_v44 }
  0xa8   :  { %3635 = vmatprep.subr.bf16.mxu0 %v8961_v53  ;;  %3676 = vmatprep.subr.bf16.mxu1 %v9089_v57  ;;  %v709_v12 = vld [vmem:[#allocation8 + $0x680] sm:$0xff]  ;;  %v8937_v13 = vcombine.high %v581_v10, %v585_v11  ;;  %v8936_v15 = vcombine.low %v581_v10, %v585_v11 }
  0xa9   :  { %v713_v14 = vld [vmem:[#allocation8 + $0x6a0] sm:$0xff]  ;;  %v180_v53 = vrot.slane %v10492_v45, %v10501_v48 }
  0xaa   :  { %v9064_v16 = vcombine.low %v709_v12, %v713_v14  ;;  %v9065_v17 = vcombine.high %v709_v12, %v713_v14  ;;  %v573_v18 = vld [vmem:[#allocation8 + $0x240] sm:$0xff] }
  0xab   :  { %3636 = vmatpush2.bf16.msra.mxu0 %v8960_v55  ;;  %3677 = vmatpush2.bf16.msra.mxu1 %v9088_v56  ;;  %v577_v19 = vld [vmem:[#allocation8 + $0x260] sm:$0xff] }
  0xac   :  { %3637 = vmatprep.subr.bf16.mxu0 %v8953_v61  ;;  %3678 = vmatprep.subr.bf16.mxu1 %v9081_v1  ;;  %v701_v20 = vld [vmem:[#allocation8 + $0x640] sm:$0xff]  ;;  %v8929_v21 = vcombine.high %v573_v18, %v577_v19  ;;  %v8928_v23 = vcombine.low %v573_v18, %v577_v19  ;;  %v10512_v61 = vsub.s32 5, %v10487_v43  ;;  %v10515_v1 = vsub.s32 7, %v10487_v43 }
  0xad   :  { %v705_v22 = vld [vmem:[#allocation8 + $0x660] sm:$0xff] }
  0xae   :  { %v9056_v24 = vcombine.low %v701_v20, %v705_v22  ;;  %v9057_v25 = vcombine.high %v701_v20, %v705_v22  ;;  %v565_v26 = vld [vmem:[#allocation8 + $0x200] sm:$0xff] }
  0xaf   :  { %3638 = vmatpush2.bf16.msra.mxu0 %v8952_v63  ;;  %3679 = vmatpush2.bf16.msra.mxu1 %v9080_v0  ;;  %v569_v27 = vld [vmem:[#allocation8 + $0x220] sm:$0xff] }
  0xb0   :  { %3639 = vmatprep.subr.bf16.mxu0 %v8945_v5  ;;  %3680 = vmatprep.subr.bf16.mxu1 %v9073_v9  ;;  %v693_v28 = vld [vmem:[#allocation8 + $0x600] sm:$0xff]  ;;  %v8921_v29 = vcombine.high %v565_v26, %v569_v27  ;;  %v8920_v31 = vcombine.low %v565_v26, %v569_v27  ;;  %v196_v9 = vrot.slane %v10492_v45, %v10515_v1 }
  0xb1   :  { %v697_v30 = vld [vmem:[#allocation8 + $0x620] sm:$0xff] }
  0xb2   :  { %v9048_v32 = vcombine.low %v693_v28, %v697_v30  ;;  %v9049_v33 = vcombine.high %v693_v28, %v697_v30  ;;  %v10471_v34 = vld [vmem:[#allocation8 + $0x9c0] sm:$0xff] }
  0xb3   :  { %3640 = vmatpush2.bf16.msra.mxu0 %v8944_v7  ;;  %3681 = vmatpush2.bf16.msra.mxu1 %v9072_v8  ;;  %v10473_v35 = vld [vmem:[#allocation8 + $0x9e0] sm:$0xff]  ;;  %v188_v7 = vrot.slane %v10492_v45, %v10512_v61 }
  0xb4   :  { %3641 = vmatprep.subr.bf16.mxu0 %v8937_v13  ;;  %3682 = vmatprep.subr.bf16.mxu1 %v9065_v17  ;;  %v10475_v36 = vld [vmem:[#allocation8 + $0xdc0] sm:$0xff]  ;;  %v9169_v37 = vcombine.high %v10471_v34, %v10473_v35  ;;  %v9168_v39 = vcombine.low %v10471_v34, %v10473_v35 }
  0xb5   :  { %v10479_v38 = vld [vmem:[#allocation8 + $0xde0] sm:$0xff] }
  0xb6   :  { %v9296_v40 = vcombine.low %v10475_v36, %v10479_v38  ;;  %v9297_v41 = vcombine.high %v10475_v36, %v10479_v38  ;;  %v805_v42 = vld [vmem:[#allocation8 + $0x980] sm:$0xff] }
  0xb7   :  { %3642 = vmatpush2.bf16.msra.mxu0 %v8936_v15  ;;  %3683 = vmatpush2.bf16.msra.mxu1 %v9064_v16 }
  0xb8   :  { %3643 = vmatprep.subr.bf16.mxu0 %v8929_v21  ;;  %3684 = vmatprep.subr.bf16.mxu1 %v9057_v25 }
  0xbb   :  { %3644 = vmatpush2.bf16.msra.mxu0 %v8928_v23  ;;  %3685 = vmatpush2.bf16.msra.mxu1 %v9056_v24 }
  0xbc   :  { %3645 = vmatprep.subr.bf16.mxu0 %v8921_v29  ;;  %3686 = vmatprep.subr.bf16.mxu1 %v9049_v33 }
  0xbf   :  { %3646 = vmatpush2.bf16.msra.mxu0 %v8920_v31  ;;  %3687 = vmatpush2.bf16.msra.mxu1 %v9048_v32 }
  0xc0   :  { %3697 = vmatprep.subr.bf16.mxu0 %v9169_v37  ;;  %3738 = vmatprep.subr.bf16.mxu1 %v9297_v41 }
 0x13a   :  { %v323_v52 = vpop.f32.mrf.mxu0  ;;  %v364_v55 = vpop.f32.mrf.mxu1 }
 0x13b   :  { %v324_v54 = vadd.f32 %v323_v52, %v168_v49  ;;  %v365_v56 = vadd.f32 %v364_v55, %v176_v50  ;;  %v809_v49 = vld [vmem:[#allocation8 + $0x9a0] sm:$0xff] }
 0x13c   :  { %v325_v57 = vpop.f32.mrf.mxu0  ;;  %v366_v60 = vpop.f32.mrf.mxu1  ;;  %v937_v52 = vld [vmem:[#allocation8 + $0xda0] sm:$0xff] }
 0x13d   :  { %v461_v58 = vmul.f32 0.70710677, %v324_v54  ;;  %v326_v59 = vadd.f32 %v325_v57, %v172_v51  ;;  %v463_v62 = vmul.f32 0.70710677, %v365_v56  ;;  %v367_v63 = vadd.f32 %v366_v60, %v180_v53  ;;  %v933_v51 = vld [vmem:[#allocation8 + $0xd80] sm:$0xff] }
 0x13e   :  { %v327_v0 = vpop.f32.mrf.mxu0  ;;  %v368_v3 = vpop.f32.mrf.mxu1  ;;  %v453_v25 = vmul.f32 0.5, %v324_v54  ;;  %v455_v28 = vmul.f32 0.5, %v365_v56  ;;  %v9161_v57 = vcombine.high %v805_v42, %v809_v49  ;;  %v801_v60 = vld [vmem:[#allocation8 + $0x960] sm:$0xff] }
 0x13f   :  { %10112 = verf.f32 %v461_v58  ;;  %v462_v2 = vmul.f32 0.70710677, %v326_v59  ;;  %v464_v4 = vmul.f32 0.70710677, %v367_v63  ;;  %v454_v29 = vmul.f32 0.5, %v326_v59  ;;  %v797_v59 = vld [vmem:[#allocation8 + $0x940] sm:$0xff] }
 0x140   :  { %10114 = verf.f32 %v463_v62  ;;  %v328_v5 = vpop.f32.mrf.mxu0  ;;  %v369_v6 = vpop.f32.mrf.mxu1  ;;  %v456_v32 = vmul.f32 0.5, %v367_v63  ;;  %v9289_v58 = vcombine.high %v933_v51, %v937_v52  ;;  %v925_v0 = vld [vmem:[#allocation8 + $0xd40] sm:$0xff]  ;;  %v9152_v34 = vcombine.low %v797_v59, %v801_v60 }
 0x141   :  { %10116 = verf.f32 %v462_v2  ;;  %v929_v2 = vld [vmem:[#allocation8 + $0xd60] sm:$0xff]  ;;  %v9160_v5 = vcombine.low %v805_v42, %v809_v49 }
 0x142   :  { %10118 = verf.f32 %v464_v4  ;;  %v10519_v8 = vpop.f32.mrf.mxu0  ;;  %v10523_v10 = vpop.f32.mrf.mxu1  ;;  %v9280_v36 = vcombine.low %v925_v0, %v929_v2  ;;  %v769_v42 = vld [vmem:[#allocation8 + $0x860] sm:$0xff] }
 0x143   :  { %v893_v49 = vld [vmem:[#allocation8 + $0xc40] sm:$0xff] }
 0x144   :  { %v407_v11 = vpop.f32.mrf.mxu0  ;;  %v448_v13 = vpop.f32.mrf.mxu1 }
 0x145   :  { %v408_v12 = vadd.f32 %v407_v11, %v188_v7  ;;  %v449_v14 = vadd.f32 %v448_v13, %v196_v9  ;;  %v9288_v7 = vcombine.low %v933_v51, %v937_v52  ;;  %v9153_v9 = vcombine.high %v797_v59, %v801_v60  ;;  %v789_v13 = vld [vmem:[#allocation8 + $0x900] sm:$0xff] }
 0x146   :  { %v409_v15 = vpop.f32.mrf.mxu0  ;;  %v450_v17 = vpop.f32.mrf.mxu1  ;;  %v757_v59 = vld [vmem:[#allocation8 + $0x800] sm:$0xff] }
 0x147   :  { %v466_v16 = vmul.f32 0.70710677, %v408_v12  ;;  %v468_v18 = vmul.f32 0.70710677, %v449_v14  ;;  %v458_v62 = vmul.f32 0.5, %v408_v12  ;;  %v460_v3 = vmul.f32 0.5, %v449_v14 }
 0x148   :  { %v410_v19 = vpop.f32.mrf.mxu0  ;;  %v451_v20 = vpop.f32.mrf.mxu1  ;;  %v9281_v12 = vcombine.high %v925_v0, %v929_v2  ;;  %v793_v14 = vld [vmem:[#allocation8 + $0x920] sm:$0xff]  ;;  %v10550_v2 = vsub.s32 4, %v10487_v43 }
 0x149   :  { %10120 = verf.f32 %v466_v16  ;;  %v917_v16 = vld [vmem:[#allocation8 + $0xd00] sm:$0xff]  ;;  %v9145_v38 = vcombine.high %v789_v13, %v793_v14 }
 0x14a   :  { %10122 = verf.f32 %v468_v18  ;;  %v921_v17 = vld [vmem:[#allocation8 + $0xd20] sm:$0xff] }
 0x14b   :  { %v781_v19 = vld [vmem:[#allocation8 + $0x8c0] sm:$0xff] }
 0x14c   :  { %v10113_v21 = vpop.eup %10112  ;;  %v785_v20 = vld [vmem:[#allocation8 + $0x8e0] sm:$0xff] }
 0x14d   :  { %v10115_v22 = vpop.eup %10114  ;;  %v477_v23 = vadd.f32 1.0, %v10113_v21  ;;  %v909_v21 = vld [vmem:[#allocation8 + $0xcc0] sm:$0xff] }
 0x14e   :  { %v10117_v24 = vpop.eup %10116  ;;  %v479_v26 = vadd.f32 1.0, %v10115_v22  ;;  %v913_v22 = vld [vmem:[#allocation8 + $0xce0] sm:$0xff] }
 0x14f   :  { %v10119_v27 = vpop.eup %10118  ;;  %v478_v30 = vadd.f32 1.0, %v10117_v24  ;;  %v485_v31 = vmul.f32 %v477_v23, %v453_v25  ;;  %v9144_v23 = vcombine.low %v789_v13, %v793_v14  ;;  %v9272_v24 = vcombine.low %v917_v16, %v921_v17  ;;  %v761_v60 = vld [vmem:[#allocation8 + $0x820] sm:$0xff] }
 0x150   :  { %v480_v33 = vadd.f32 1.0, %v10119_v27  ;;  %v487_v37 = vmul.f32 %v479_v26, %v455_v28  ;;  %v9137_v25 = vcombine.high %v781_v19, %v785_v20  ;;  %v9265_v26 = vcombine.high %v909_v21, %v913_v22  ;;  %v773_v27 = vld [vmem:[#allocation8 + $0x880] sm:$0xff] }
 0x151   :  { %v486_v41 = vmul.f32 %v478_v30, %v454_v29  ;;  %v10527_v55 = vpack.c.bf16 %v485_v31, %v485_v31  ;;  %v777_v28 = vld [vmem:[#allocation8 + $0x8a0] sm:$0xff]  ;;  %v9136_v31 = vcombine.low %v781_v19, %v785_v20  ;;  %v9112_v13 = vcombine.low %v757_v59, %v761_v60 }
 0x152   :  { %v488_v50 = vmul.f32 %v480_v33, %v456_v32  ;;  %v10531_v56 = vpack.c.bf16 %v487_v37, %v487_v37  ;;  %v901_v29 = vld [vmem:[#allocation8 + $0xc80] sm:$0xff]  ;;  %v9264_v32 = vcombine.low %v909_v21, %v913_v22  ;;  %v9129_v33 = vcombine.high %v773_v27, %v777_v28 }
 0x153   :  { %v10525_v53 = vpack.c.bf16 %v486_v41, %v486_v41  ;;  %v905_v30 = vld [vmem:[#allocation8 + $0xca0] sm:$0xff]  ;;  %v9128_v51 = vcombine.low %v773_v27, %v777_v28  ;;  %v184_v14 = vrot.slane %v10492_v45, %v10550_v2 }
 0x154   :  { %v10529_v54 = vpack.c.bf16 %v488_v50, %v488_v50  ;;  %v9257_v37 = vcombine.high %v901_v29, %v905_v30  ;;  %v765_v41 = vld [vmem:[#allocation8 + $0x840] sm:$0xff]  ;;  %v9256_v52 = vcombine.low %v901_v29, %v905_v30 }
 0x155   :  { %3647 = vmatprep.mubr.bf16.mxu0 %v10525_v53  ;;  %v897_v50 = vld [vmem:[#allocation8 + $0xc60] sm:$0xff]  ;;  %v9120_v0 = vcombine.low %v765_v41, %v769_v42  ;;  %v10560_v19 = vadd.f32 %v10519_v8, %v184_v14 }
 0x156   :  { %v10121_v63 = vpop.eup %10120  ;;  %3688 = vmatprep.mubr.bf16.mxu1 %v10529_v54  ;;  %3648 = vmatmul.mubr.bf16.vlgmr.msra.gmra.mxu0 %v10527_v55  ;;  %v833_v14 = vld [vmem:[#allocation8 + $0xa60] sm:$0xff] }
 0x157   :  { %v10123_v4 = vpop.eup %10122  ;;  %3689 = vmatmul.mubr.bf16.vlgmr.msra.gmra.mxu1 %v10531_v56  ;;  %3698 = vmatpush1.bf16.msra.mxu0 %v9168_v39  ;;  %v482_v6 = vadd.f32 1.0, %v10121_v63  ;;  %v889_v63 = vld [vmem:[#allocation8 + $0xc20] sm:$0xff]  ;;  %v465_v28 = vmul.f32 0.70710677, %v10560_v19 }
 0x158   :  { %3739 = vmatpush1.bf16.msra.mxu1 %v9296_v40  ;;  %3699 = vmatprep.subr.bf16.mxu0 %v9161_v57  ;;  %v484_v11 = vadd.f32 1.0, %v10123_v4  ;;  %v9273_v40 = vcombine.high %v917_v16, %v921_v17  ;;  %v9121_v57 = vcombine.high %v765_v41, %v769_v42  ;;  %v9113_v4 = vcombine.high %v757_v59, %v761_v60 }
 0x159   :  { %3740 = vmatprep.subr.bf16.mxu1 %v9289_v58  ;;  %v490_v15 = vmul.f32 %v482_v6, %v458_v62  ;;  %v9249_v58 = vcombine.high %v893_v49, %v897_v50  ;;  %v885_v62 = vld [vmem:[#allocation8 + $0xc00] sm:$0xff]  ;;  %10124 = verf.f32 %v465_v28 }
 0x15a   :  { %v492_v18 = vmul.f32 %v484_v11, %v460_v3  ;;  %v9248_v3 = vcombine.low %v893_v49, %v897_v50  ;;  %v9241_v6 = vcombine.high %v885_v62, %v889_v63  ;;  %v1005_v11 = vld [vmem:[#allocation8 + $0xfc0] sm:$0xff] }
 0x15b   :  { %3700 = vmatpush1.bf16.msra.mxu0 %v9160_v5  ;;  %v10543_v35 = vpack.c.bf16 %v490_v15, %v490_v15  ;;  %v10553_v5 = vsub.s32 6, %v10487_v43  ;;  %v9240_v15 = vcombine.low %v885_v62, %v889_v63 }
 0x15c   :  { %3741 = vmatpush1.bf16.msra.mxu1 %v9288_v7  ;;  %3701 = vmatprep.subr.bf16.mxu0 %v9153_v9  ;;  %v10545_v39 = vpack.c.bf16 %v492_v18, %v492_v18  ;;  %v877_v7 = vld [vmem:[#allocation8 + $0xbc0] sm:$0xff] }
 0x15d   :  { %3742 = vmatprep.subr.bf16.mxu1 %v9281_v12  ;;  %3729 = vmatprep.mubr.bf16.mxu0 %v10543_v35  ;;  %v881_v9 = vld [vmem:[#allocation8 + $0xbe0] sm:$0xff]  ;;  %v192_v17 = vrot.slane %v10492_v45, %v10553_v5 }
 0x15e   :  { %3770 = vmatprep.mubr.bf16.mxu1 %v10545_v39  ;;  %v1009_v12 = vld [vmem:[#allocation8 + $0xfe0] sm:$0xff]  ;;  %v9233_v16 = vcombine.high %v877_v7, %v881_v9 }
 0x15f   :  { %3702 = vmatpush1.bf16.msra.mxu0 %v9152_v34  ;;  %v9361_v43 = vcombine.high %v1005_v11, %v1009_v12  ;;  %v869_v18 = vld [vmem:[#allocation8 + $0xb80] sm:$0xff]  ;;  %v9360_v20 = vcombine.low %v1005_v11, %v1009_v12  ;;  %v10563_v22 = vadd.f32 %v10523_v10, %v192_v17 }
 0x160   :  { %3743 = vmatpush1.bf16.msra.mxu1 %v9280_v36  ;;  %3703 = vmatprep.subr.bf16.mxu0 %v9145_v38  ;;  %v873_v34 = vld [vmem:[#allocation8 + $0xba0] sm:$0xff] }
 0x161   :  { %3744 = vmatprep.subr.bf16.mxu1 %v9273_v40  ;;  %v997_v36 = vld [vmem:[#allocation8 + $0xf80] sm:$0xff]  ;;  %v9232_v40 = vcombine.low %v877_v7, %v881_v9  ;;  %v9225_v21 = vcombine.high %v869_v18, %v873_v34  ;;  %v9224_v27 = vcombine.low %v869_v18, %v873_v34  ;;  %v467_v30 = vmul.f32 0.70710677, %v10563_v22 }
 0x162   :  { %v1001_v38 = vld [vmem:[#allocation8 + $0xfa0] sm:$0xff]  ;;  %v459_v28 = vmul.f32 0.5, %v10563_v22 }
 0x163   :  { %3704 = vmatpush1.bf16.msra.mxu0 %v9144_v23  ;;  %v9353_v45 = vcombine.high %v997_v36, %v1001_v38  ;;  %v861_v23 = vld [vmem:[#allocation8 + $0xb40] sm:$0xff]  ;;  %v9352_v8 = vcombine.low %v997_v36, %v1001_v38  ;;  %10126 = verf.f32 %v467_v30  ;;  %v558_v30 = vld [vmem:[#allocation8 + $0x1c8] sm:$0xff] }
 0x164   :  { %3745 = vmatpush1.bf16.msra.mxu1 %v9272_v24  ;;  %3705 = vmatprep.subr.bf16.mxu0 %v9137_v25  ;;  %v865_v24 = vld [vmem:[#allocation8 + $0xb60] sm:$0xff] }
 0x165   :  { %3746 = vmatprep.subr.bf16.mxu1 %v9265_v26  ;;  %v989_v25 = vld [vmem:[#allocation8 + $0xf40] sm:$0xff]  ;;  %v9217_v29 = vcombine.high %v861_v23, %v865_v24  ;;  %v9216_v41 = vcombine.low %v861_v23, %v865_v24  ;;  %v457_v24 = vmul.f32 0.5, %v10560_v19 }
 0x166   :  { %v993_v26 = vld [vmem:[#allocation8 + $0xf60] sm:$0xff]  ;;  %v10125_v34 = vpop.eup %10124 }
 0x167   :  { %3706 = vmatpush1.bf16.msra.mxu0 %v9136_v31  ;;  %v9345_v31 = vcombine.high %v989_v25, %v993_v26  ;;  %v853_v10 = vld [vmem:[#allocation8 + $0xb00] sm:$0xff]  ;;  %v9344_v42 = vcombine.low %v989_v25, %v993_v26  ;;  %v481_v25 = vadd.f32 1.0, %v10125_v34 }
 0x168   :  { %3747 = vmatpush1.bf16.msra.mxu1 %v9264_v32  ;;  %3707 = vmatprep.subr.bf16.mxu0 %v9129_v33  ;;  %v857_v32 = vld [vmem:[#allocation8 + $0xb20] sm:$0xff] }
 0x169   :  { %3748 = vmatprep.subr.bf16.mxu1 %v9257_v37  ;;  %v981_v33 = vld [vmem:[#allocation8 + $0xf00] sm:$0xff]  ;;  %v9209_v49 = vcombine.high %v853_v10, %v857_v32  ;;  %v9208_v59 = vcombine.low %v853_v10, %v857_v32  ;;  %v686_v10 = vld [vmem:[#allocation8 + $0x5c8] sm:$0xff] }
 0x16a   :  { %v985_v37 = vld [vmem:[#allocation8 + $0xf20] sm:$0xff]  ;;  %v690_v32 = vld [vmem:[#allocation8 + $0x5e8] sm:$0xff] }
 0x16b   :  { %3708 = vmatpush1.bf16.msra.mxu0 %v9128_v51  ;;  %v9337_v50 = vcombine.high %v981_v33, %v985_v37  ;;  %v845_v51 = vld [vmem:[#allocation8 + $0xac0] sm:$0xff]  ;;  %v9336_v60 = vcombine.low %v981_v33, %v985_v37  ;;  %v489_v37 = vmul.f32 %v481_v25, %v457_v24  ;;  %v518_v25 = vld [vmem:[#allocation8 + $0x88] sm:$0xff] }
 0x16c   :  { %3749 = vmatpush1.bf16.msra.mxu1 %v9256_v52  ;;  %3709 = vmatprep.subr.bf16.mxu0 %v9121_v57  ;;  %v849_v52 = vld [vmem:[#allocation8 + $0xae0] sm:$0xff] }
 0x16d   :  { %3750 = vmatprep.subr.bf16.mxu1 %v9249_v58  ;;  %v973_v57 = vld [vmem:[#allocation8 + $0xec0] sm:$0xff]  ;;  %v9201_v62 = vcombine.high %v845_v51, %v849_v52  ;;  %v9200_v7 = vcombine.low %v845_v51, %v849_v52  ;;  %v554_v51 = vld [vmem:[#allocation8 + $0x1a8] sm:$0xff] }
 0x16e   :  { %v977_v58 = vld [vmem:[#allocation8 + $0xee0] sm:$0xff]  ;;  %v678_v52 = vld [vmem:[#allocation8 + $0x588] sm:$0xff] }
 0x16f   :  { %3710 = vmatpush1.bf16.msra.mxu0 %v9120_v0  ;;  %v9329_v63 = vcombine.high %v973_v57, %v977_v58  ;;  %v837_v0 = vld [vmem:[#allocation8 + $0xa80] sm:$0xff]  ;;  %v9328_v9 = vcombine.low %v973_v57, %v977_v58  ;;  %v682_v57 = vld [vmem:[#allocation8 + $0x5a8] sm:$0xff]  ;;  %v10569_v58 = vpack.c.bf16 %v489_v37, %v489_v37 }
 0x170   :  { %3751 = vmatpush1.bf16.msra.mxu1 %v9248_v3  ;;  %3711 = vmatprep.subr.bf16.mxu0 %v9113_v4  ;;  %v841_v3 = vld [vmem:[#allocation8 + $0xaa0] sm:$0xff]  ;;  %v642_v37 = vld [vmem:[#allocation8 + $0x468] sm:$0xff] }
 0x171   :  { %3752 = vmatprep.subr.bf16.mxu1 %v9241_v6  ;;  %v965_v4 = vld [vmem:[#allocation8 + $0xe80] sm:$0xff]  ;;  %v9193_v11 = vcombine.high %v837_v0, %v841_v3  ;;  %v9192_v17 = vcombine.low %v837_v0, %v841_v3  ;;  %v546_v0 = vld [vmem:[#allocation8 + $0x168] sm:$0xff]  ;;  %v9035_v3 = vcombine.high %v678_v52, %v682_v57 }
 0x172   :  { %v969_v6 = vld [vmem:[#allocation8 + $0xea0] sm:$0xff] }
 0x173   :  { %3712 = vmatpush1.bf16.msra.mxu0 %v9112_v13  ;;  %v9321_v12 = vcombine.high %v965_v4, %v969_v6  ;;  %v829_v13 = vld [vmem:[#allocation8 + $0xa40] sm:$0xff] }
 0x174   :  { %3753 = vmatpush1.bf16.msra.mxu1 %v9240_v15  ;;  %3713 = vmatprep.subr.bf16.mxu0 %v9233_v16  ;;  %v957_v15 = vld [vmem:[#allocation8 + $0xe40] sm:$0xff]  ;;  %v9185_v18 = vcombine.high %v829_v13, %v833_v14  ;;  %v9184_v23 = vcombine.low %v829_v13, %v833_v14  ;;  %v534_v13 = vld [vmem:[#allocation8 + $0x108] sm:$0xff] }
 0x175   :  { %3754 = vmatprep.subr.bf16.mxu1 %v9361_v43  ;;  %v961_v16 = vld [vmem:[#allocation8 + $0xe60] sm:$0xff]  ;;  %v9320_v43 = vcombine.low %v965_v4, %v969_v6  ;;  %v670_v4 = vld [vmem:[#allocation8 + $0x548] sm:$0xff] }
 0x176   :  { %v9313_v36 = vcombine.high %v957_v15, %v961_v16  ;;  %v821_v38 = vld [vmem:[#allocation8 + $0xa00] sm:$0xff]  ;;  %v9312_v26 = vcombine.low %v957_v15, %v961_v16  ;;  %v674_v6 = vld [vmem:[#allocation8 + $0x568] sm:$0xff] }
 0x177   :  { %3714 = vmatpush2.bf16.msra.mxu0 %v9232_v40  ;;  %v825_v40 = vld [vmem:[#allocation8 + $0xa20] sm:$0xff]  ;;  %v538_v14 = vld [vmem:[#allocation8 + $0x128] sm:$0xff] }
 0x178   :  { %3755 = vmatpush2.bf16.msra.mxu1 %v9360_v20  ;;  %3715 = vmatprep.subr.bf16.mxu0 %v9225_v21  ;;  %v10127_v20 = vpop.eup %10126  ;;  %v949_v21 = vld [vmem:[#allocation8 + $0xe00] sm:$0xff]  ;;  %v9176_v33 = vcombine.low %v821_v38, %v825_v40  ;;  %v662_v15 = vld [vmem:[#allocation8 + $0x508] sm:$0xff] }
 0x179   :  { %3756 = vmatprep.subr.bf16.mxu1 %v9353_v45  ;;  %v953_v45 = vld [vmem:[#allocation8 + $0xe20] sm:$0xff]  ;;  %v666_v16 = vld [vmem:[#allocation8 + $0x528] sm:$0xff] }
 0x17a   :  { %v9304_v19 = vcombine.low %v949_v21, %v953_v45  ;;  %v9019_v34 = vcombine.high %v662_v15, %v666_v16 }
 0x17b   :  { %3716 = vmatpush2.bf16.msra.mxu0 %v9224_v27  ;;  %v9177_v27 = vcombine.high %v821_v38, %v825_v40  ;;  %v530_v38 = vld [vmem:[#allocation8 + $0xe8] sm:$0xff] }
 0x17c   :  { %3757 = vmatpush2.bf16.msra.mxu1 %v9352_v8  ;;  %3717 = vmatprep.subr.bf16.mxu0 %v9217_v29  ;;  %v483_v8 = vadd.f32 1.0, %v10127_v20  ;;  %v9305_v29 = vcombine.high %v949_v21, %v953_v45  ;;  %v654_v40 = vld [vmem:[#allocation8 + $0x4c8] sm:$0xff]  ;;  %v8890_v21 = vcombine.low %v534_v13, %v538_v14  ;;  %v9018_v45 = vcombine.low %v662_v15, %v666_v16 }
 0x17d   :  { %3758 = vmatprep.subr.bf16.mxu1 %v9345_v31  ;;  %v562_v31 = vld [vmem:[#allocation8 + $0x1e8] sm:$0xff] }
 0x17e   :  { %v8914_v22 = vcombine.low %v558_v30, %v562_v31  ;;  %v658_v20 = vld [vmem:[#allocation8 + $0x4e8] sm:$0xff] }
 0x17f   :  { %3718 = vmatpush2.bf16.msra.mxu0 %v9216_v41  ;;  %v8915_v41 = vcombine.high %v558_v30, %v562_v31  ;;  %v9011_v24 = vcombine.high %v654_v40, %v658_v20  ;;  %v742_v15 = vld [vmem:[#allocation8 + $0x788] sm:$0xff] }
 0x180   :  { %3759 = vmatpush2.bf16.msra.mxu1 %v9344_v42  ;;  %3719 = vmatprep.subr.bf16.mxu0 %v9209_v49  ;;  %v491_v42 = vmul.f32 %v483_v8, %v459_v28  ;;  %v9043_v49 = vcombine.high %v686_v10, %v690_v32  ;;  %v650_v28 = vld [vmem:[#allocation8 + $0x4a8] sm:$0xff] }
 0x181   :  { %3760 = vmatprep.subr.bf16.mxu1 %v9337_v50  ;;  %v550_v50 = vld [vmem:[#allocation8 + $0x188] sm:$0xff] }
 0x182   :  { %v746_v16 = vld [vmem:[#allocation8 + $0x7a8] sm:$0xff] }
 0x183   :  { %3720 = vmatpush2.bf16.msra.mxu0 %v9208_v59  ;;  %v9042_v59 = vcombine.low %v686_v10, %v690_v32  ;;  %v510_v10 = vld [vmem:[#allocation8 + $0x48] sm:$0xff] }
 0x184   :  { %3761 = vmatpush2.bf16.msra.mxu1 %v9336_v60  ;;  %3721 = vmatprep.subr.bf16.mxu0 %v9201_v62  ;;  %v10571_v60 = vpack.c.bf16 %v491_v42, %v491_v42  ;;  %v8907_v62 = vcombine.high %v550_v50, %v554_v51  ;;  %v514_v32 = vld [vmem:[#allocation8 + $0x68] sm:$0xff] }
 0x185   :  { %3762 = vmatprep.subr.bf16.mxu1 %v9329_v63  ;;  %v542_v63 = vld [vmem:[#allocation8 + $0x148] sm:$0xff]  ;;  %v8867_v42 = vcombine.high %v510_v10, %v514_v32 }
 0x187   :  { %3722 = vmatpush2.bf16.msra.mxu0 %v9200_v7  ;;  %v8906_v7 = vcombine.low %v550_v50, %v554_v51  ;;  %v502_v50 = vld [vmem:[#allocation8 + $0x8] sm:$0xff] }
 0x188   :  { %3763 = vmatpush2.bf16.msra.mxu1 %v9328_v9  ;;  %3723 = vmatprep.subr.bf16.mxu0 %v9193_v11  ;;  %v9034_v9 = vcombine.low %v678_v52, %v682_v57  ;;  %v8899_v11 = vcombine.high %v542_v63, %v546_v0  ;;  %v506_v51 = vld [vmem:[#allocation8 + $0x28] sm:$0xff]  ;;  %v8866_v57 = vcombine.low %v510_v10, %v514_v32 }
 0x189   :  { %3764 = vmatprep.subr.bf16.mxu1 %v9321_v12  ;;  %v9027_v12 = vcombine.high %v670_v4, %v674_v6  ;;  %v634_v52 = vld [vmem:[#allocation8 + $0x428] sm:$0xff] }
 0x18a   :  { %v590_v10 = vld [vmem:[#allocation8 + $0x2c8] sm:$0xff] }
 0x18b   :  { %3724 = vmatpush2.bf16.msra.mxu0 %v9192_v17  ;;  %v8898_v17 = vcombine.low %v542_v63, %v546_v0  ;;  %v622_v0 = vld [vmem:[#allocation8 + $0x3c8] sm:$0xff] }
 0x18c   :  { %3765 = vmatpush2.bf16.msra.mxu1 %v9320_v43  ;;  %3725 = vmatprep.subr.bf16.mxu0 %v9185_v18  ;;  %v9026_v43 = vcombine.low %v670_v4, %v674_v6  ;;  %v8891_v18 = vcombine.high %v534_v13, %v538_v14  ;;  %v750_v4 = vld [vmem:[#allocation8 + $0x7c8] sm:$0xff] }
 0x18d   :  { %3766 = vmatprep.subr.bf16.mxu1 %v9313_v36  ;;  %v526_v36 = vld [vmem:[#allocation8 + $0xc8] sm:$0xff] }
 0x18e   :  { %v8882_v8 = vcombine.low %v526_v36, %v530_v38  ;;  %v754_v6 = vld [vmem:[#allocation8 + $0x7e8] sm:$0xff] }
 0x18f   :  { %3726 = vmatpush2.bf16.msra.mxu0 %v9184_v23  ;;  %v8883_v23 = vcombine.high %v526_v36, %v530_v38  ;;  %v614_v13 = vld [vmem:[#allocation8 + $0x388] sm:$0xff] }
 0x190   :  { %3767 = vmatpush2.bf16.msra.mxu1 %v9312_v26  ;;  %3727 = vmatprep.subr.bf16.mxu0 %v9177_v27  ;;  %v522_v26 = vld [vmem:[#allocation8 + $0xa8] sm:$0xff] }
 0x191   :  { %3768 = vmatprep.subr.bf16.mxu1 %v9305_v29  ;;  %v646_v27 = vld [vmem:[#allocation8 + $0x488] sm:$0xff]  ;;  %v9010_v29 = vcombine.low %v654_v40, %v658_v20  ;;  %v8875_v30 = vcombine.high %v518_v25, %v522_v26 }
 0x192   :  { %v9003_v31 = vcombine.high %v646_v27, %v650_v28  ;;  %v618_v14 = vld [vmem:[#allocation8 + $0x3a8] sm:$0xff] }
 0x193   :  { %3728 = vmatpush2.bf16.msra.mxu0 %v9176_v33  ;;  %v638_v33 = vld [vmem:[#allocation8 + $0x448] sm:$0xff] }
 0x194   :  { %3769 = vmatpush2.bf16.msra.mxu1 %v9304_v19  ;;  %3779 = vmatprep.subr.bf16.mxu0 %v8915_v41  ;;  %v8874_v19 = vcombine.low %v518_v25, %v522_v26  ;;  %v9002_v41 = vcombine.low %v646_v27, %v650_v28  ;;  %v606_v36 = vld [vmem:[#allocation8 + $0x348] sm:$0xff] }
 0x195   :  { %3820 = vmatprep.subr.bf16.mxu1 %v9043_v49  ;;  %v8995_v49 = vcombine.high %v638_v33, %v642_v37  ;;  %v610_v38 = vld [vmem:[#allocation8 + $0x368] sm:$0xff] }
 0x196   :  { %3730 = vmatmul.mubr.bf16.vlgmr.msra.gmra.mxu0 %v10569_v58  ;;  %v734_v40 = vld [vmem:[#allocation8 + $0x748] sm:$0xff] }
 0x197   :  { %3771 = vmatmul.mubr.bf16.vlgmr.msra.gmra.mxu1 %v10571_v60  ;;  %3780 = vmatpush1.bf16.msra.mxu0 %v8914_v22  ;;  %v630_v22 = vld [vmem:[#allocation8 + $0x408] sm:$0xff] }
 0x198   :  { %3811 = vmatprep.mubr.bf16.mxu0 %v10525_v53  ;;  %3821 = vmatpush1.bf16.msra.mxu1 %v9042_v59  ;;  %v8994_v59 = vcombine.low %v638_v33, %v642_v37  ;;  %v8987_v63 = vcombine.high %v630_v22, %v634_v52  ;;  %v738_v20 = vld [vmem:[#allocation8 + $0x768] sm:$0xff] }
 0x199   :  { %3852 = vmatprep.mubr.bf16.mxu1 %v10529_v54  ;;  %3781 = vmatprep.subr.bf16.mxu0 %v8907_v62  ;;  %v8859_v62 = vcombine.high %v502_v50, %v506_v51  ;;  %v598_v25 = vld [vmem:[#allocation8 + $0x308] sm:$0xff] }
 0x19a   :  { %3822 = vmatprep.subr.bf16.mxu1 %v9035_v3  ;;  %v626_v3 = vld [vmem:[#allocation8 + $0x3e8] sm:$0xff] }
 0x19b   :  { %3782 = vmatpush1.bf16.msra.mxu0 %v8906_v7  ;;  %v8858_v7 = vcombine.low %v502_v50, %v506_v51  ;;  %v602_v26 = vld [vmem:[#allocation8 + $0x328] sm:$0xff] }
 0x19c   :  { %3823 = vmatpush1.bf16.msra.mxu1 %v9034_v9  ;;  %3783 = vmatprep.subr.bf16.mxu0 %v8899_v11  ;;  %v8986_v9 = vcombine.low %v630_v22, %v634_v52  ;;  %v8979_v11 = vcombine.high %v622_v0, %v626_v3  ;;  %v726_v27 = vld [vmem:[#allocation8 + $0x708] sm:$0xff] }
 0x19d   :  { %3824 = vmatprep.subr.bf16.mxu1 %v9027_v12  ;;  %v9107_v12 = vcombine.high %v750_v4, %v754_v6  ;;  %v730_v28 = vld [vmem:[#allocation8 + $0x728] sm:$0xff] }
 0x19e   :  { %v594_v32 = vld [vmem:[#allocation8 + $0x2e8] sm:$0xff] }
 0x19f   :  { %3784 = vmatpush1.bf16.msra.mxu0 %v8898_v17  ;;  %v8978_v17 = vcombine.low %v622_v0, %v626_v3  ;;  %v718_v33 = vld [vmem:[#allocation8 + $0x6c8] sm:$0xff] }
 0x1a0   :  { %3825 = vmatpush1.bf16.msra.mxu1 %v9026_v43  ;;  %3785 = vmatprep.subr.bf16.mxu0 %v8891_v18  ;;  %v9106_v43 = vcombine.low %v750_v4, %v754_v6  ;;  %v8971_v18 = vcombine.high %v614_v13, %v618_v14  ;;  %v722_v37 = vld [vmem:[#allocation8 + $0x6e8] sm:$0xff] }
 0x1a1   :  { %3826 = vmatprep.subr.bf16.mxu1 %v9019_v34  ;;  %v9099_v34 = vcombine.high %v742_v15, %v746_v16  ;;  %v582_v50 = vld [vmem:[#allocation8 + $0x288] sm:$0xff] }
 0x1a2   :  { %v586_v51 = vld [vmem:[#allocation8 + $0x2a8] sm:$0xff] }
 0x1a3   :  { %3786 = vmatpush1.bf16.msra.mxu0 %v8890_v21  ;;  %v8970_v21 = vcombine.low %v614_v13, %v618_v14  ;;  %v710_v22 = vld [vmem:[#allocation8 + $0x688] sm:$0xff] }
 0x1a4   :  { %3827 = vmatpush1.bf16.msra.mxu1 %v9018_v45  ;;  %3787 = vmatprep.subr.bf16.mxu0 %v8883_v23  ;;  %v9098_v45 = vcombine.low %v742_v15, %v746_v16  ;;  %v8963_v23 = vcombine.high %v606_v36, %v610_v38  ;;  %v714_v52 = vld [vmem:[#allocation8 + $0x6a8] sm:$0xff] }
 0x1a5   :  { %3828 = vmatprep.subr.bf16.mxu1 %v9011_v24  ;;  %v9091_v24 = vcombine.high %v734_v40, %v738_v20  ;;  %v574_v0 = vld [vmem:[#allocation8 + $0x248] sm:$0xff] }
 0x1a6   :  { %v578_v3 = vld [vmem:[#allocation8 + $0x268] sm:$0xff] }
 0x1a7   :  { %3788 = vmatpush1.bf16.msra.mxu0 %v8882_v8  ;;  %v8962_v8 = vcombine.low %v606_v36, %v610_v38  ;;  %v702_v4 = vld [vmem:[#allocation8 + $0x648] sm:$0xff] }
 0x1a8   :  { %3829 = vmatpush1.bf16.msra.mxu1 %v9010_v29  ;;  %3789 = vmatprep.subr.bf16.mxu0 %v8875_v30  ;;  %v9090_v29 = vcombine.low %v734_v40, %v738_v20  ;;  %v8955_v30 = vcombine.high %v598_v25, %v602_v26  ;;  %v706_v6 = vld [vmem:[#allocation8 + $0x668] sm:$0xff] }
 0x1a9   :  { %3830 = vmatprep.subr.bf16.mxu1 %v9003_v31  ;;  %v9083_v31 = vcombine.high %v726_v27, %v730_v28  ;;  %v566_v13 = vld [vmem:[#allocation8 + $0x208] sm:$0xff] }
 0x1aa   :  { %v570_v14 = vld [vmem:[#allocation8 + $0x228] sm:$0xff] }
 0x1ab   :  { %3790 = vmatpush1.bf16.msra.mxu0 %v8874_v19  ;;  %v8954_v19 = vcombine.low %v598_v25, %v602_v26  ;;  %v694_v15 = vld [vmem:[#allocation8 + $0x608] sm:$0xff] }
 0x1ac   :  { %3831 = vmatpush1.bf16.msra.mxu1 %v9002_v41  ;;  %3791 = vmatprep.subr.bf16.mxu0 %v8867_v42  ;;  %v9082_v41 = vcombine.low %v726_v27, %v730_v28  ;;  %v8947_v42 = vcombine.high %v590_v10, %v594_v32  ;;  %v698_v16 = vld [vmem:[#allocation8 + $0x628] sm:$0xff] }
 0x1ad   :  { %3832 = vmatprep.subr.bf16.mxu1 %v8995_v49  ;;  %v9075_v49 = vcombine.high %v718_v33, %v722_v37  ;;  %v814_v36 = vld [vmem:[#allocation8 + $0x9c8] sm:$0xff] }
 0x1ae   :  { %v818_v38 = vld [vmem:[#allocation8 + $0x9e8] sm:$0xff] }
 0x1af   :  { %3792 = vmatpush1.bf16.msra.mxu0 %v8866_v57  ;;  %v8946_v57 = vcombine.low %v590_v10, %v594_v32  ;;  %v942_v40 = vld [vmem:[#allocation8 + $0xdc8] sm:$0xff]  ;;  %v9170_v27 = vcombine.low %v814_v36, %v818_v38 }
 0x1b0   :  { %3833 = vmatpush1.bf16.msra.mxu1 %v8994_v59  ;;  %3793 = vmatprep.subr.bf16.mxu0 %v8859_v62  ;;  %v9074_v59 = vcombine.low %v718_v33, %v722_v37  ;;  %v8939_v62 = vcombine.high %v582_v50, %v586_v51  ;;  %v946_v20 = vld [vmem:[#allocation8 + $0xde8] sm:$0xff] }
 0x1b1   :  { %3834 = vmatprep.subr.bf16.mxu1 %v8987_v63  ;;  %v9067_v63 = vcombine.high %v710_v22, %v714_v52  ;;  %v806_v25 = vld [vmem:[#allocation8 + $0x988] sm:$0xff] }
 0x1b2   :  { %v810_v26 = vld [vmem:[#allocation8 + $0x9a8] sm:$0xff] }
 0x1b3   :  { %3794 = vmatpush1.bf16.msra.mxu0 %v8858_v7  ;;  %v8938_v7 = vcombine.low %v582_v50, %v586_v51  ;;  %v934_v28 = vld [vmem:[#allocation8 + $0xd88] sm:$0xff] }
 0x1b4   :  { %3835 = vmatpush1.bf16.msra.mxu1 %v8986_v9  ;;  %3795 = vmatprep.subr.bf16.mxu0 %v8979_v11  ;;  %v9066_v9 = vcombine.low %v710_v22, %v714_v52  ;;  %v8931_v11 = vcombine.high %v574_v0, %v578_v3  ;;  %v802_v10 = vld [vmem:[#allocation8 + $0x968] sm:$0xff] }
 0x1b5   :  { %3836 = vmatprep.subr.bf16.mxu1 %v9107_v12  ;;  %v9059_v12 = vcombine.high %v702_v4, %v706_v6  ;;  %v926_v33 = vld [vmem:[#allocation8 + $0xd48] sm:$0xff] }
 0x1b6   :  { %v930_v37 = vld [vmem:[#allocation8 + $0xd68] sm:$0xff] }
 0x1b7   :  { %3796 = vmatpush2.bf16.msra.mxu0 %v8978_v17  ;;  %v8930_v17 = vcombine.low %v574_v0, %v578_v3  ;;  %v790_v50 = vld [vmem:[#allocation8 + $0x908] sm:$0xff] }
 0x1b8   :  { %3837 = vmatpush2.bf16.msra.mxu1 %v9106_v43  ;;  %3797 = vmatprep.subr.bf16.mxu0 %v8971_v18  ;;  %v9058_v43 = vcombine.low %v702_v4, %v706_v6  ;;  %v8923_v18 = vcombine.high %v566_v13, %v570_v14  ;;  %v794_v51 = vld [vmem:[#allocation8 + $0x928] sm:$0xff] }
 0x1b9   :  { %3838 = vmatprep.subr.bf16.mxu1 %v9099_v34  ;;  %v9051_v34 = vcombine.high %v694_v15, %v698_v16  ;;  %v918_v22 = vld [vmem:[#allocation8 + $0xd08] sm:$0xff] }
 0x1ba   :  { %v922_v52 = vld [vmem:[#allocation8 + $0xd28] sm:$0xff] }
 0x1bb   :  { %3798 = vmatpush2.bf16.msra.mxu0 %v8970_v21  ;;  %v8922_v21 = vcombine.low %v566_v13, %v570_v14  ;;  %v782_v0 = vld [vmem:[#allocation8 + $0x8c8] sm:$0xff] }
 0x1bc   :  { %3839 = vmatpush2.bf16.msra.mxu1 %v9098_v45  ;;  %3799 = vmatprep.subr.bf16.mxu0 %v8963_v23  ;;  %v9050_v45 = vcombine.low %v694_v15, %v698_v16  ;;  %v9171_v23 = vcombine.high %v814_v36, %v818_v38  ;;  %v786_v3 = vld [vmem:[#allocation8 + $0x8e8] sm:$0xff] }
 0x1bd   :  { %3840 = vmatprep.subr.bf16.mxu1 %v9091_v24  ;;  %v9299_v24 = vcombine.high %v942_v40, %v946_v20  ;;  %v910_v4 = vld [vmem:[#allocation8 + $0xcc8] sm:$0xff] }
 0x1be   :  { %v914_v6 = vld [vmem:[#allocation8 + $0xce8] sm:$0xff] }
 0x1bf   :  { %3800 = vmatpush2.bf16.msra.mxu0 %v8962_v8  ;;  %v938_v8 = vld [vmem:[#allocation8 + $0xda8] sm:$0xff] }
 0x1c0   :  { %3841 = vmatpush2.bf16.msra.mxu1 %v9090_v29  ;;  %3801 = vmatprep.subr.bf16.mxu0 %v8955_v30  ;;  %v9298_v29 = vcombine.low %v942_v40, %v946_v20  ;;  %v9163_v30 = vcombine.high %v806_v25, %v810_v26  ;;  %v9291_v32 = vcombine.high %v934_v28, %v938_v8  ;;  %v774_v13 = vld [vmem:[#allocation8 + $0x888] sm:$0xff] }
 0x1c1   :  { %3842 = vmatprep.subr.bf16.mxu1 %v9083_v31  ;;  %v798_v31 = vld [vmem:[#allocation8 + $0x948] sm:$0xff] }
 0x1c2   :  { %v778_v14 = vld [vmem:[#allocation8 + $0x8a8] sm:$0xff] }
 0x1c3   :  { %3802 = vmatpush2.bf16.msra.mxu0 %v8954_v19  ;;  %v9162_v19 = vcombine.low %v806_v25, %v810_v26  ;;  %v902_v15 = vld [vmem:[#allocation8 + $0xc88] sm:$0xff] }
 0x1c4   :  { %3843 = vmatpush2.bf16.msra.mxu1 %v9082_v41  ;;  %3803 = vmatprep.subr.bf16.mxu0 %v8947_v42  ;;  %v9290_v41 = vcombine.low %v934_v28, %v938_v8  ;;  %v9155_v42 = vcombine.high %v798_v31, %v802_v10  ;;  %v906_v16 = vld [vmem:[#allocation8 + $0xca8] sm:$0xff] }
 0x1c5   :  { %3844 = vmatprep.subr.bf16.mxu1 %v9075_v49  ;;  %v9283_v49 = vcombine.high %v926_v33, %v930_v37  ;;  %v766_v36 = vld [vmem:[#allocation8 + $0x848] sm:$0xff] }
 0x1c6   :  { %v770_v38 = vld [vmem:[#allocation8 + $0x868] sm:$0xff] }
 0x1c7   :  { %3804 = vmatpush2.bf16.msra.mxu0 %v8946_v57  ;;  %v9154_v57 = vcombine.low %v798_v31, %v802_v10  ;;  %v894_v40 = vld [vmem:[#allocation8 + $0xc48] sm:$0xff]  ;;  %v9122_v8 = vcombine.low %v766_v36, %v770_v38 }
 0x1c8   :  { %3845 = vmatpush2.bf16.msra.mxu1 %v9074_v59  ;;  %3805 = vmatprep.subr.bf16.mxu0 %v8939_v62  ;;  %v9282_v59 = vcombine.low %v926_v33, %v930_v37  ;;  %v9147_v62 = vcombine.high %v790_v50, %v794_v51  ;;  %v898_v20 = vld [vmem:[#allocation8 + $0xc68] sm:$0xff] }
 0x1c9   :  { %3846 = vmatprep.subr.bf16.mxu1 %v9067_v63  ;;  %v9275_v63 = vcombine.high %v918_v22, %v922_v52  ;;  %v758_v25 = vld [vmem:[#allocation8 + $0x808] sm:$0xff] }
 0x1ca   :  { %v762_v26 = vld [vmem:[#allocation8 + $0x828] sm:$0xff] }
 0x1cb   :  { %3806 = vmatpush2.bf16.msra.mxu0 %v8938_v7  ;;  %v9146_v7 = vcombine.low %v790_v50, %v794_v51  ;;  %v890_v28 = vld [vmem:[#allocation8 + $0xc28] sm:$0xff] }
 0x1cc   :  { %3847 = vmatpush2.bf16.msra.mxu1 %v9066_v9  ;;  %3807 = vmatprep.subr.bf16.mxu0 %v8931_v11  ;;  %v9274_v9 = vcombine.low %v918_v22, %v922_v52  ;;  %v9139_v11 = vcombine.high %v782_v0, %v786_v3  ;;  %v878_v10 = vld [vmem:[#allocation8 + $0xbc8] sm:$0xff] }
 0x1cd   :  { %3848 = vmatprep.subr.bf16.mxu1 %v9059_v12  ;;  %v9267_v12 = vcombine.high %v910_v4, %v914_v6  ;;  %v1006_v33 = vld [vmem:[#allocation8 + $0xfc8] sm:$0xff] }
 0x1ce   :  { %v1010_v37 = vld [vmem:[#allocation8 + $0xfe8] sm:$0xff] }
 0x1cf   :  { %3808 = vmatpush2.bf16.msra.mxu0 %v8930_v17  ;;  %v9138_v17 = vcombine.low %v782_v0, %v786_v3  ;;  %v870_v50 = vld [vmem:[#allocation8 + $0xb88] sm:$0xff] }
 0x1d0   :  { %3849 = vmatpush2.bf16.msra.mxu1 %v9058_v43  ;;  %3809 = vmatprep.subr.bf16.mxu0 %v8923_v18  ;;  %v9266_v43 = vcombine.low %v910_v4, %v914_v6  ;;  %v9131_v18 = vcombine.high %v774_v13, %v778_v14  ;;  %v874_v51 = vld [vmem:[#allocation8 + $0xba8] sm:$0xff] }
 0x1d1   :  { %3850 = vmatprep.subr.bf16.mxu1 %v9051_v34  ;;  %v9259_v34 = vcombine.high %v902_v15, %v906_v16  ;;  %v998_v22 = vld [vmem:[#allocation8 + $0xf88] sm:$0xff] }
 0x1d2   :  { %v1002_v52 = vld [vmem:[#allocation8 + $0xfa8] sm:$0xff] }
 0x1d3   :  { %3810 = vmatpush2.bf16.msra.mxu0 %v8922_v21  ;;  %v9130_v21 = vcombine.low %v774_v13, %v778_v14  ;;  %v862_v0 = vld [vmem:[#allocation8 + $0xb48] sm:$0xff] }
 0x1d4   :  { %3851 = vmatpush2.bf16.msra.mxu1 %v9050_v45  ;;  %3861 = vmatprep.subr.bf16.mxu0 %v9171_v23  ;;  %v9258_v45 = vcombine.low %v902_v15, %v906_v16  ;;  %v9123_v23 = vcombine.high %v766_v36, %v770_v38  ;;  %v866_v3 = vld [vmem:[#allocation8 + $0xb68] sm:$0xff] }
 0x1d5   :  { %3902 = vmatprep.subr.bf16.mxu1 %v9299_v24  ;;  %v9251_v24 = vcombine.high %v894_v40, %v898_v20  ;;  %v990_v4 = vld [vmem:[#allocation8 + $0xf48] sm:$0xff] }
 0x1d6   :  { %3812 = vmatmul.mubr.bf16.vlgmr.msra.gmra.mxu0 %v10527_v55  ;;  %v994_v6 = vld [vmem:[#allocation8 + $0xf68] sm:$0xff] }
 0x1d7   :  { %3853 = vmatmul.mubr.bf16.vlgmr.msra.gmra.mxu1 %v10531_v56  ;;  %3862 = vmatpush1.bf16.msra.mxu0 %v9170_v27  ;;  %v886_v27 = vld [vmem:[#allocation8 + $0xc08] sm:$0xff] }
 0x1d8   :  { %3893 = vmatprep.mubr.bf16.mxu0 %v10543_v35  ;;  %3903 = vmatpush1.bf16.msra.mxu1 %v9298_v29  ;;  %v9250_v29 = vcombine.low %v894_v40, %v898_v20  ;;  %v9243_v31 = vcombine.high %v886_v27, %v890_v28  ;;  %v854_v13 = vld [vmem:[#allocation8 + $0xb08] sm:$0xff] }
 0x1d9   :  { %3934 = vmatprep.mubr.bf16.mxu1 %v10545_v39  ;;  %3863 = vmatprep.subr.bf16.mxu0 %v9163_v30  ;;  %v9115_v30 = vcombine.high %v758_v25, %v762_v26  ;;  %v858_v14 = vld [vmem:[#allocation8 + $0xb28] sm:$0xff] }
 0x1da   :  { %3904 = vmatprep.subr.bf16.mxu1 %v9291_v32  ;;  %v882_v32 = vld [vmem:[#allocation8 + $0xbe8] sm:$0xff] }
 0x1db   :  { %3864 = vmatpush1.bf16.msra.mxu0 %v9162_v19  ;;  %v9114_v19 = vcombine.low %v758_v25, %v762_v26  ;;  %v982_v15 = vld [vmem:[#allocation8 + $0xf08] sm:$0xff] }
 0x1dc   :  { %3905 = vmatpush1.bf16.msra.mxu1 %v9290_v41  ;;  %3865 = vmatprep.subr.bf16.mxu0 %v9155_v42  ;;  %v9242_v41 = vcombine.low %v886_v27, %v890_v28  ;;  %v9235_v42 = vcombine.high %v878_v10, %v882_v32  ;;  %v986_v16 = vld [vmem:[#allocation8 + $0xf28] sm:$0xff] }
 0x1dd   :  { %3906 = vmatprep.subr.bf16.mxu1 %v9283_v49  ;;  %v9363_v49 = vcombine.high %v1006_v33, %v1010_v37  ;;  %v846_v36 = vld [vmem:[#allocation8 + $0xac8] sm:$0xff] }
 0x1de   :  { %v850_v38 = vld [vmem:[#allocation8 + $0xae8] sm:$0xff] }
 0x1df   :  { %3866 = vmatpush1.bf16.msra.mxu0 %v9154_v57  ;;  %v9234_v57 = vcombine.low %v878_v10, %v882_v32  ;;  %v974_v40 = vld [vmem:[#allocation8 + $0xec8] sm:$0xff] }
 0x1e0   :  { %3907 = vmatpush1.bf16.msra.mxu1 %v9282_v59  ;;  %3867 = vmatprep.subr.bf16.mxu0 %v9147_v62  ;;  %v9362_v59 = vcombine.low %v1006_v33, %v1010_v37  ;;  %v9227_v62 = vcombine.high %v870_v50, %v874_v51  ;;  %v978_v20 = vld [vmem:[#allocation8 + $0xee8] sm:$0xff] }
 0x1e1   :  { %3908 = vmatprep.subr.bf16.mxu1 %v9275_v63  ;;  %v9355_v63 = vcombine.high %v998_v22, %v1002_v52  ;;  %v838_v25 = vld [vmem:[#allocation8 + $0xa88] sm:$0xff] }
 0x1e2   :  { %v842_v26 = vld [vmem:[#allocation8 + $0xaa8] sm:$0xff] }
 0x1e3   :  { %3868 = vmatpush1.bf16.msra.mxu0 %v9146_v7  ;;  %v9226_v7 = vcombine.low %v870_v50, %v874_v51  ;;  %v966_v27 = vld [vmem:[#allocation8 + $0xe88] sm:$0xff] }
 0x1e4   :  { %3909 = vmatpush1.bf16.msra.mxu1 %v9274_v9  ;;  %3869 = vmatprep.subr.bf16.mxu0 %v9139_v11  ;;  %v9354_v9 = vcombine.low %v998_v22, %v1002_v52  ;;  %v9219_v11 = vcombine.high %v862_v0, %v866_v3  ;;  %v970_v28 = vld [vmem:[#allocation8 + $0xea8] sm:$0xff] }
 0x1e5   :  { %3910 = vmatprep.subr.bf16.mxu1 %v9267_v12  ;;  %v9347_v12 = vcombine.high %v990_v4, %v994_v6  ;;  %v830_v10 = vld [vmem:[#allocation8 + $0xa48] sm:$0xff] }
 0x1e6   :  { %v834_v32 = vld [vmem:[#allocation8 + $0xa68] sm:$0xff] }
 0x1e7   :  { %3870 = vmatpush1.bf16.msra.mxu0 %v9138_v17  ;;  %v9218_v17 = vcombine.low %v862_v0, %v866_v3  ;;  %v958_v33 = vld [vmem:[#allocation8 + $0xe48] sm:$0xff]  ;;  %v559_v0 = vld [vmem:[#allocation8 + $0x1d0] sm:$0xff] }
 0x1e8   :  { %3911 = vmatpush1.bf16.msra.mxu1 %v9266_v43  ;;  %3871 = vmatprep.subr.bf16.mxu0 %v9131_v18  ;;  %v9346_v43 = vcombine.low %v990_v4, %v994_v6  ;;  %v9211_v18 = vcombine.high %v854_v13, %v858_v14  ;;  %v962_v37 = vld [vmem:[#allocation8 + $0xe68] sm:$0xff]  ;;  %v563_v3 = vld [vmem:[#allocation8 + $0x1f0] sm:$0xff] }
 0x1e9   :  { %3912 = vmatprep.subr.bf16.mxu1 %v9259_v34  ;;  %v9339_v34 = vcombine.high %v982_v15, %v986_v16  ;;  %v822_v50 = vld [vmem:[#allocation8 + $0xa08] sm:$0xff]  ;;  %v687_v4 = vld [vmem:[#allocation8 + $0x5d0] sm:$0xff] }
 0x1ea   :  { %v826_v51 = vld [vmem:[#allocation8 + $0xa28] sm:$0xff]  ;;  %v691_v6 = vld [vmem:[#allocation8 + $0x5f0] sm:$0xff] }
 0x1eb   :  { %3872 = vmatpush1.bf16.msra.mxu0 %v9130_v21  ;;  %v9210_v21 = vcombine.low %v854_v13, %v858_v14  ;;  %v950_v22 = vld [vmem:[#allocation8 + $0xe08] sm:$0xff]  ;;  %v9045_v13 = vcombine.high %v687_v4, %v691_v6  ;;  %v551_v14 = vld [vmem:[#allocation8 + $0x190] sm:$0xff] }
 0x1ec   :  { %3913 = vmatpush1.bf16.msra.mxu1 %v9258_v45  ;;  %3873 = vmatprep.subr.bf16.mxu0 %v9123_v23  ;;  %v9338_v45 = vcombine.low %v982_v15, %v986_v16  ;;  %v9203_v23 = vcombine.high %v846_v36, %v850_v38  ;;  %v954_v52 = vld [vmem:[#allocation8 + $0xe28] sm:$0xff]  ;;  %v555_v15 = vld [vmem:[#allocation8 + $0x1b0] sm:$0xff]  ;;  %v8916_v16 = vcombine.low %v559_v0, %v563_v3 }
 0x1ed   :  { %3914 = vmatprep.subr.bf16.mxu1 %v9251_v24  ;;  %v9331_v24 = vcombine.high %v974_v40, %v978_v20 }
 0x1ef   :  { %3874 = vmatpush1.bf16.msra.mxu0 %v9122_v8  ;;  %v9202_v8 = vcombine.low %v846_v36, %v850_v38  ;;  %v8909_v38 = vcombine.high %v551_v14, %v555_v15 }
 0x1f0   :  { %3915 = vmatpush1.bf16.msra.mxu1 %v9250_v29  ;;  %3875 = vmatprep.subr.bf16.mxu0 %v9115_v30  ;;  %v9330_v29 = vcombine.low %v974_v40, %v978_v20  ;;  %v9195_v30 = vcombine.high %v838_v25, %v842_v26  ;;  %v543_v40 = vld [vmem:[#allocation8 + $0x150] sm:$0xff] }
 0x1f1   :  { %3916 = vmatprep.subr.bf16.mxu1 %v9243_v31  ;;  %v9323_v31 = vcombine.high %v966_v27, %v970_v28  ;;  %v547_v20 = vld [vmem:[#allocation8 + $0x170] sm:$0xff] }
 0x1f3   :  { %3876 = vmatpush1.bf16.msra.mxu0 %v9114_v19  ;;  %v9194_v19 = vcombine.low %v838_v25, %v842_v26 }
 0x1f4   :  { %3917 = vmatpush1.bf16.msra.mxu1 %v9242_v41  ;;  %3877 = vmatprep.subr.bf16.mxu0 %v9235_v42  ;;  %v9322_v41 = vcombine.low %v966_v27, %v970_v28  ;;  %v9187_v42 = vcombine.high %v830_v10, %v834_v32  ;;  %v8908_v27 = vcombine.low %v551_v14, %v555_v15  ;;  %v523_v14 = vld [vmem:[#allocation8 + $0xb0] sm:$0xff] }
 0x1f5   :  { %3918 = vmatprep.subr.bf16.mxu1 %v9363_v49  ;;  %v9315_v49 = vcombine.high %v958_v33, %v962_v37  ;;  %v647_v15 = vld [vmem:[#allocation8 + $0x490] sm:$0xff] }
 0x1f7   :  { %3878 = vmatpush2.bf16.msra.mxu0 %v9234_v57  ;;  %v9186_v57 = vcombine.low %v830_v10, %v834_v32 }
 0x1f8   :  { %3919 = vmatpush2.bf16.msra.mxu1 %v9362_v59  ;;  %3879 = vmatprep.subr.bf16.mxu0 %v9227_v62  ;;  %v9314_v59 = vcombine.low %v958_v33, %v962_v37  ;;  %v9179_v62 = vcombine.high %v822_v50, %v826_v51  ;;  %v535_v33 = vld [vmem:[#allocation8 + $0x110] sm:$0xff] }
 0x1f9   :  { %3920 = vmatprep.subr.bf16.mxu1 %v9355_v63  ;;  %v9307_v63 = vcombine.high %v950_v22, %v954_v52  ;;  %v539_v37 = vld [vmem:[#allocation8 + $0x130] sm:$0xff] }
 0x1fb   :  { %3880 = vmatpush2.bf16.msra.mxu0 %v9226_v7  ;;  %v9178_v7 = vcombine.low %v822_v50, %v826_v51  ;;  %v8900_v51 = vcombine.low %v543_v40, %v547_v20 }
 0x1fc   :  { %3921 = vmatpush2.bf16.msra.mxu1 %v9354_v9  ;;  %3881 = vmatprep.subr.bf16.mxu0 %v9219_v11  ;;  %v9306_v9 = vcombine.low %v950_v22, %v954_v52  ;;  %v8917_v11 = vcombine.high %v559_v0, %v563_v3  ;;  %v531_v0 = vld [vmem:[#allocation8 + $0xf0] sm:$0xff] }
 0x1fd   :  { %3922 = vmatprep.subr.bf16.mxu1 %v9347_v12  ;;  %v10581_v12 = vld [vmem:[#allocation10] sm:$0xff]  ;;  %v655_v3 = vld [vmem:[#allocation8 + $0x4d0] sm:$0xff] }
 0x1fe   :  { %v1022_v36 = vrot.slane %v10581_v12, %v10498_v47 }
 0x1ff   :  { %3882 = vmatpush2.bf16.msra.mxu0 %v9218_v17  ;;  %v1018_v17 = vrot.slane %v10581_v12, %v10490_v44 }
 0x200   :  { %3923 = vmatpush2.bf16.msra.mxu1 %v9346_v43  ;;  %3883 = vmatprep.subr.bf16.mxu0 %v9211_v18  ;;  %v679_v43 = vld [vmem:[#allocation8 + $0x590] sm:$0xff] }
 0x201   :  { %3924 = vmatprep.subr.bf16.mxu1 %v9339_v34  ;;  %v683_v18 = vld [vmem:[#allocation8 + $0x5b0] sm:$0xff]  ;;  %v9044_v34 = vcombine.low %v687_v4, %v691_v6  ;;  %v8892_v6 = vcombine.low %v535_v33, %v539_v37 }
 0x202   :  { %v659_v4 = vld [vmem:[#allocation8 + $0x4f0] sm:$0xff] }
 0x203   :  { %3884 = vmatpush2.bf16.msra.mxu0 %v9210_v21 }
 0x204   :  { %3925 = vmatpush2.bf16.msra.mxu1 %v9338_v45  ;;  %3885 = vmatprep.subr.bf16.mxu0 %v9203_v23  ;;  %v9037_v45 = vcombine.high %v679_v43, %v683_v18  ;;  %v671_v23 = vld [vmem:[#allocation8 + $0x550] sm:$0xff] }
 0x205   :  { %3926 = vmatprep.subr.bf16.mxu1 %v9331_v24  ;;  %v675_v24 = vld [vmem:[#allocation8 + $0x570] sm:$0xff] }
 0x206   :  { %v9029_v32 = vcombine.high %v671_v23, %v675_v24  ;;  %v9028_v52 = vcombine.low %v671_v23, %v675_v24 }
 0x207   :  { %3886 = vmatpush2.bf16.msra.mxu0 %v9202_v8  ;;  %v9036_v8 = vcombine.low %v679_v43, %v683_v18  ;;  %v9012_v43 = vcombine.low %v655_v3, %v659_v4 }
 0x208   :  { %3927 = vmatpush2.bf16.msra.mxu1 %v9330_v29  ;;  %3887 = vmatprep.subr.bf16.mxu0 %v9195_v30  ;;  %v8901_v29 = vcombine.high %v543_v40, %v547_v20  ;;  %v639_v40 = vld [vmem:[#allocation8 + $0x450] sm:$0xff] }
 0x209   :  { %3928 = vmatprep.subr.bf16.mxu1 %v9323_v31  ;;  %v643_v20 = vld [vmem:[#allocation8 + $0x470] sm:$0xff] }
 0x20a   :  { %v8997_v24 = vcombine.high %v639_v40, %v643_v20 }
 0x20b   :  { %3888 = vmatpush2.bf16.msra.mxu0 %v9194_v19 }
 0x20c   :  { %3929 = vmatpush2.bf16.msra.mxu1 %v9322_v41  ;;  %3889 = vmatprep.subr.bf16.mxu0 %v9187_v42  ;;  %v663_v41 = vld [vmem:[#allocation8 + $0x510] sm:$0xff] }
 0x20d   :  { %3930 = vmatprep.subr.bf16.mxu1 %v9315_v49  ;;  %v667_v42 = vld [vmem:[#allocation8 + $0x530] sm:$0xff] }
 0x20f   :  { %3890 = vmatpush2.bf16.msra.mxu0 %v9186_v57  ;;  %v8893_v57 = vcombine.high %v535_v33, %v539_v37  ;;  %v627_v33 = vld [vmem:[#allocation8 + $0x3f0] sm:$0xff] }
 0x210   :  { %3931 = vmatpush2.bf16.msra.mxu1 %v9314_v59  ;;  %3891 = vmatprep.subr.bf16.mxu0 %v9179_v62  ;;  %v9021_v62 = vcombine.high %v663_v41, %v667_v42  ;;  %v751_v37 = vld [vmem:[#allocation8 + $0x7d0] sm:$0xff] }
 0x211   :  { %3932 = vmatprep.subr.bf16.mxu1 %v9307_v63  ;;  %v527_v63 = vld [vmem:[#allocation8 + $0xd0] sm:$0xff] }
 0x213   :  { %3892 = vmatpush2.bf16.msra.mxu0 %v9178_v7  ;;  %v9020_v7 = vcombine.low %v663_v41, %v667_v42 }
 0x214   :  { %3933 = vmatpush2.bf16.msra.mxu1 %v9306_v9  ;;  %3943 = vmatprep.subr.bf16.mxu0 %v8917_v11  ;;  %v8885_v9 = vcombine.high %v527_v63, %v531_v0  ;;  %v9013_v11 = vcombine.high %v655_v3, %v659_v4  ;;  %v607_v4 = vld [vmem:[#allocation8 + $0x350] sm:$0xff] }
 0x215   :  { %3984 = vmatprep.subr.bf16.mxu1 %v9045_v13  ;;  %v519_v13 = vld [vmem:[#allocation8 + $0x90] sm:$0xff] }
 0x216   :  { %3894 = vmatmul.mubr.bf16.vlgmr.msra.gmra.mxu0 %v10569_v58  ;;  %v3649_v21 = vpop.f32.mrf.mxu0  ;;  %v8877_v18 = vcombine.high %v519_v13, %v523_v14 }
 0x217   :  { %3935 = vmatmul.mubr.bf16.vlgmr.msra.gmra.mxu1 %v10571_v60  ;;  %v3650_v25 = vadd.f32 %v3649_v21, %v1018_v17  ;;  %v3690_v26 = vpop.f32.mrf.mxu1  ;;  %3944 = vmatpush1.bf16.msra.mxu0 %v8916_v16  ;;  %v651_v16 = vld [vmem:[#allocation8 + $0x4b0] sm:$0xff]  ;;  %v8884_v17 = vcombine.low %v527_v63, %v531_v0  ;;  %v8876_v21 = vcombine.low %v519_v13, %v523_v14 }
 0x218   :  { %3975 = vmatprep.mubr.bf16.mxu0 %v10525_v53  ;;  %3985 = vmatpush1.bf16.msra.mxu1 %v9044_v34  ;;  %v3651_v28 = vpop.f32.mrf.mxu0  ;;  %v9005_v34 = vcombine.high %v647_v15, %v651_v16 }
 0x219   :  { %v10590_v30 = vadd.f32 %v3690_v26, %v3650_v25  ;;  %4016 = vmatprep.mubr.bf16.mxu1 %v10529_v54  ;;  %v3652_v31 = vadd.f32 %v3651_v28, %v1022_v36  ;;  %v3692_v10 = vpop.f32.mrf.mxu1  ;;  %3945 = vmatprep.subr.bf16.mxu0 %v8909_v38  ;;  %v511_v36 = vld [vmem:[#allocation8 + $0x50] sm:$0xff] }
 0x21a   :  { %3986 = vmatprep.subr.bf16.mxu1 %v9037_v45  ;;  %v3653_v19 = vpop.f32.mrf.mxu0  ;;  %v515_v38 = vld [vmem:[#allocation8 + $0x70] sm:$0xff]  ;;  %v9004_v45 = vcombine.low %v647_v15, %v651_v16 }
 0x21b   :  { %v10593_v49 = vadd.f32 %v3692_v10, %v3652_v31  ;;  %v3694_v50 = vpop.f32.mrf.mxu1  ;;  %3946 = vmatpush1.bf16.msra.mxu0 %v8908_v27  ;;  %v8869_v23 = vcombine.high %v511_v36, %v515_v38  ;;  %v503_v25 = vld [vmem:[#allocation8 + $0x10] sm:$0xff] }
 0x21c   :  { %3987 = vmatpush1.bf16.msra.mxu1 %v9036_v8  ;;  %v3654_v22 = vpop.f32.mrf.mxu0  ;;  %3947 = vmatprep.subr.bf16.mxu0 %v8901_v29  ;;  %v507_v26 = vld [vmem:[#allocation8 + $0x30] sm:$0xff]  ;;  %v8868_v8 = vcombine.low %v511_v36, %v515_v38  ;;  %v8996_v29 = vcombine.low %v639_v40, %v643_v20 }
 0x21d   :  { %v3695_v59 = vpop.f32.mrf.mxu1  ;;  %3988 = vmatprep.subr.bf16.mxu1 %v9029_v32  ;;  %v631_v27 = vld [vmem:[#allocation8 + $0x410] sm:$0xff]  ;;  %v8861_v31 = vcombine.high %v503_v25, %v507_v26  ;;  %v8860_v41 = vcombine.low %v503_v25, %v507_v26 }
 0x21e   :  { %v635_v28 = vld [vmem:[#allocation8 + $0x430] sm:$0xff] }
 0x21f   :  { %3948 = vmatpush1.bf16.msra.mxu0 %v8900_v51  ;;  %v8989_v10 = vcombine.high %v631_v27, %v635_v28  ;;  %v623_v32 = vld [vmem:[#allocation8 + $0x3d0] sm:$0xff]  ;;  %v8988_v42 = vcombine.low %v631_v27, %v635_v28 }
 0x220   :  { %3989 = vmatpush1.bf16.msra.mxu1 %v9028_v52  ;;  %3949 = vmatprep.subr.bf16.mxu0 %v8893_v57  ;;  %v755_v19 = vld [vmem:[#allocation8 + $0x7f0] sm:$0xff]  ;;  %v8981_v50 = vcombine.high %v623_v32, %v627_v33 }
 0x221   :  { %3990 = vmatprep.subr.bf16.mxu1 %v9021_v62  ;;  %v9109_v51 = vcombine.high %v751_v37, %v755_v19  ;;  %v615_v22 = vld [vmem:[#allocation8 + $0x390] sm:$0xff]  ;;  %v8980_v62 = vcombine.low %v623_v32, %v627_v33  ;;  %v9108_v63 = vcombine.low %v751_v37, %v755_v19 }
 0x222   :  { %v619_v52 = vld [vmem:[#allocation8 + $0x3b0] sm:$0xff] }
 0x223   :  { %3950 = vmatpush1.bf16.msra.mxu0 %v8892_v6  ;;  %v743_v57 = vld [vmem:[#allocation8 + $0x790] sm:$0xff]  ;;  %v8973_v0 = vcombine.high %v615_v22, %v619_v52 }
 0x224   :  { %3991 = vmatpush1.bf16.msra.mxu1 %v9020_v7  ;;  %3951 = vmatprep.subr.bf16.mxu0 %v8885_v9  ;;  %v747_v59 = vld [vmem:[#allocation8 + $0x7b0] sm:$0xff] }
 0x225   :  { %3992 = vmatprep.subr.bf16.mxu1 %v9013_v11  ;;  %v9101_v3 = vcombine.high %v743_v57, %v747_v59  ;;  %v611_v6 = vld [vmem:[#allocation8 + $0x370] sm:$0xff]  ;;  %v8972_v11 = vcombine.low %v615_v22, %v619_v52  ;;  %v9100_v13 = vcombine.low %v743_v57, %v747_v59 }
 0x226   :  { %v735_v7 = vld [vmem:[#allocation8 + $0x750] sm:$0xff]  ;;  %v8965_v14 = vcombine.high %v607_v4, %v611_v6 }
 0x227   :  { %3952 = vmatpush1.bf16.msra.mxu0 %v8884_v17  ;;  %v739_v9 = vld [vmem:[#allocation8 + $0x770] sm:$0xff] }
 0x228   :  { %3993 = vmatpush1.bf16.msra.mxu1 %v9012_v43  ;;  %3953 = vmatprep.subr.bf16.mxu0 %v8877_v18  ;;  %v9093_v15 = vcombine.high %v735_v7, %v739_v9  ;;  %v599_v16 = vld [vmem:[#allocation8 + $0x310] sm:$0xff]  ;;  %v9092_v36 = vcombine.low %v735_v7, %v739_v9 }
 0x229   :  { %3994 = vmatprep.subr.bf16.mxu1 %v9005_v34  ;;  %v603_v17 = vld [vmem:[#allocation8 + $0x330] sm:$0xff]  ;;  %v8964_v34 = vcombine.low %v607_v4, %v611_v6 }
 0x22a   :  { %v727_v43 = vld [vmem:[#allocation8 + $0x710] sm:$0xff]  ;;  %v8957_v38 = vcombine.high %v599_v16, %v603_v17 }
 0x22b   :  { %3954 = vmatpush1.bf16.msra.mxu0 %v8876_v21  ;;  %v731_v18 = vld [vmem:[#allocation8 + $0x730] sm:$0xff] }
 0x22c   :  { %3995 = vmatpush1.bf16.msra.mxu1 %v9004_v45  ;;  %3955 = vmatprep.subr.bf16.mxu0 %v8869_v23  ;;  %v9085_v40 = vcombine.high %v727_v43, %v731_v18  ;;  %v591_v20 = vld [vmem:[#allocation8 + $0x2d0] sm:$0xff]  ;;  %v9084_v25 = vcombine.low %v727_v43, %v731_v18 }
 0x22d   :  { %3996 = vmatprep.subr.bf16.mxu1 %v8997_v24  ;;  %v595_v21 = vld [vmem:[#allocation8 + $0x2f0] sm:$0xff]  ;;  %v8956_v24 = vcombine.low %v599_v16, %v603_v17 }
 0x22e   :  { %v719_v45 = vld [vmem:[#allocation8 + $0x6d0] sm:$0xff]  ;;  %v8949_v26 = vcombine.high %v591_v20, %v595_v21 }
 0x22f   :  { %3956 = vmatpush1.bf16.msra.mxu0 %v8868_v8  ;;  %v723_v23 = vld [vmem:[#allocation8 + $0x6f0] sm:$0xff] }
 0x230   :  { %3997 = vmatpush1.bf16.msra.mxu1 %v8996_v29  ;;  %3957 = vmatprep.subr.bf16.mxu0 %v8861_v31  ;;  %v9077_v27 = vcombine.high %v719_v45, %v723_v23  ;;  %v583_v28 = vld [vmem:[#allocation8 + $0x290] sm:$0xff]  ;;  %v9076_v32 = vcombine.low %v719_v45, %v723_v23 }
 0x231   :  { %3998 = vmatprep.subr.bf16.mxu1 %v8989_v10  ;;  %v587_v8 = vld [vmem:[#allocation8 + $0x2b0] sm:$0xff]  ;;  %v8948_v10 = vcombine.low %v591_v20, %v595_v21 }
 0x232   :  { %v711_v29 = vld [vmem:[#allocation8 + $0x690] sm:$0xff]  ;;  %v8941_v33 = vcombine.high %v583_v28, %v587_v8 }
 0x233   :  { %3958 = vmatpush1.bf16.msra.mxu0 %v8860_v41  ;;  %v715_v31 = vld [vmem:[#allocation8 + $0x6b0] sm:$0xff] }
 0x234   :  { %3999 = vmatpush1.bf16.msra.mxu1 %v8988_v42  ;;  %3959 = vmatprep.subr.bf16.mxu0 %v8981_v50  ;;  %v9069_v37 = vcombine.high %v711_v29, %v715_v31  ;;  %v575_v19 = vld [vmem:[#allocation8 + $0x250] sm:$0xff]  ;;  %v9068_v22 = vcombine.low %v711_v29, %v715_v31 }
 0x235   :  { %4000 = vmatprep.subr.bf16.mxu1 %v9109_v51  ;;  %v579_v41 = vld [vmem:[#allocation8 + $0x270] sm:$0xff]  ;;  %v8940_v51 = vcombine.low %v583_v28, %v587_v8 }
 0x236   :  { %v703_v42 = vld [vmem:[#allocation8 + $0x650] sm:$0xff]  ;;  %v8933_v52 = vcombine.high %v575_v19, %v579_v41 }
 0x237   :  { %3960 = vmatpush2.bf16.msra.mxu0 %v8980_v62  ;;  %v707_v50 = vld [vmem:[#allocation8 + $0x670] sm:$0xff] }
 0x238   :  { %4001 = vmatpush2.bf16.msra.mxu1 %v9108_v63  ;;  %3961 = vmatprep.subr.bf16.mxu0 %v8973_v0  ;;  %v9061_v57 = vcombine.high %v703_v42, %v707_v50  ;;  %v567_v59 = vld [vmem:[#allocation8 + $0x210] sm:$0xff]  ;;  %v9060_v4 = vcombine.low %v703_v42, %v707_v50 }
 0x239   :  { %4002 = vmatprep.subr.bf16.mxu1 %v9101_v3  ;;  %v571_v62 = vld [vmem:[#allocation8 + $0x230] sm:$0xff]  ;;  %v8932_v3 = vcombine.low %v575_v19, %v579_v41 }
 0x23a   :  { %v695_v63 = vld [vmem:[#allocation8 + $0x610] sm:$0xff]  ;;  %v8925_v6 = vcombine.high %v567_v59, %v571_v62 }
 0x23b   :  { %3962 = vmatpush2.bf16.msra.mxu0 %v8972_v11  ;;  %v699_v0 = vld [vmem:[#allocation8 + $0x630] sm:$0xff] }
 0x23c   :  { %4003 = vmatpush2.bf16.msra.mxu1 %v9100_v13  ;;  %3963 = vmatprep.subr.bf16.mxu0 %v8965_v14  ;;  %v9053_v7 = vcombine.high %v695_v63, %v699_v0  ;;  %v815_v9 = vld [vmem:[#allocation8 + $0x9d0] sm:$0xff]  ;;  %v9052_v16 = vcombine.low %v695_v63, %v699_v0 }
 0x23d   :  { %4004 = vmatprep.subr.bf16.mxu1 %v9093_v15  ;;  %v819_v11 = vld [vmem:[#allocation8 + $0x9f0] sm:$0xff]  ;;  %v8924_v15 = vcombine.low %v567_v59, %v571_v62 }
 0x23e   :  { %v943_v13 = vld [vmem:[#allocation8 + $0xdd0] sm:$0xff]  ;;  %v9173_v17 = vcombine.high %v815_v9, %v819_v11 }
 0x23f   :  { %3964 = vmatpush2.bf16.msra.mxu0 %v8964_v34  ;;  %v947_v14 = vld [vmem:[#allocation8 + $0xdf0] sm:$0xff] }
 0x240   :  { %4005 = vmatpush2.bf16.msra.mxu1 %v9092_v36  ;;  %3965 = vmatprep.subr.bf16.mxu0 %v8957_v38  ;;  %v9301_v43 = vcombine.high %v943_v13, %v947_v14  ;;  %v807_v18 = vld [vmem:[#allocation8 + $0x990] sm:$0xff]  ;;  %v9172_v36 = vcombine.low %v815_v9, %v819_v11  ;;  %v9300_v20 = vcombine.low %v943_v13, %v947_v14 }
 0x241   :  { %4006 = vmatprep.subr.bf16.mxu1 %v9085_v40  ;;  %v811_v34 = vld [vmem:[#allocation8 + $0x9b0] sm:$0xff] }
 0x242   :  { %v935_v38 = vld [vmem:[#allocation8 + $0xd90] sm:$0xff]  ;;  %v9165_v21 = vcombine.high %v807_v18, %v811_v34  ;;  %v9164_v29 = vcombine.low %v807_v18, %v811_v34 }
 0x243   :  { %3966 = vmatpush2.bf16.msra.mxu0 %v8956_v24  ;;  %v939_v40 = vld [vmem:[#allocation8 + $0xdb0] sm:$0xff] }
 0x244   :  { %4007 = vmatpush2.bf16.msra.mxu1 %v9084_v25  ;;  %3967 = vmatprep.subr.bf16.mxu0 %v8949_v26  ;;  %v799_v45 = vld [vmem:[#allocation8 + $0x950] sm:$0xff]  ;;  %v9293_v25 = vcombine.high %v935_v38, %v939_v40 }
 0x245   :  { %4008 = vmatprep.subr.bf16.mxu1 %v9077_v27  ;;  %v803_v23 = vld [vmem:[#allocation8 + $0x970] sm:$0xff] }
 0x246   :  { %v927_v26 = vld [vmem:[#allocation8 + $0xd50] sm:$0xff]  ;;  %v9156_v59 = vcombine.low %v799_v45, %v803_v23 }
 0x247   :  { %3968 = vmatpush2.bf16.msra.mxu0 %v8948_v10  ;;  %v931_v27 = vld [vmem:[#allocation8 + $0xd70] sm:$0xff]  ;;  %v9292_v10 = vcombine.low %v935_v38, %v939_v40 }
 0x248   :  { %4009 = vmatpush2.bf16.msra.mxu1 %v9076_v32  ;;  %3969 = vmatprep.subr.bf16.mxu0 %v8941_v33  ;;  %v9157_v32 = vcombine.high %v799_v45, %v803_v23  ;;  %v791_v41 = vld [vmem:[#allocation8 + $0x910] sm:$0xff]  ;;  %v9284_v63 = vcombine.low %v927_v26, %v931_v27 }
 0x249   :  { %4010 = vmatprep.subr.bf16.mxu1 %v9069_v37  ;;  %v795_v42 = vld [vmem:[#allocation8 + $0x930] sm:$0xff] }
 0x24a   :  { %v9149_v0 = vcombine.high %v791_v41, %v795_v42  ;;  %v915_v9 = vld [vmem:[#allocation8 + $0xcf0] sm:$0xff]  ;;  %v9148_v11 = vcombine.low %v791_v41, %v795_v42 }
 0x24b   :  { %3970 = vmatpush2.bf16.msra.mxu0 %v8940_v51  ;;  %v919_v51 = vld [vmem:[#allocation8 + $0xd10] sm:$0xff] }
 0x24c   :  { %4011 = vmatpush2.bf16.msra.mxu1 %v9068_v22  ;;  %3971 = vmatprep.subr.bf16.mxu0 %v8933_v52  ;;  %v923_v22 = vld [vmem:[#allocation8 + $0xd30] sm:$0xff] }
 0x24d   :  { %4012 = vmatprep.subr.bf16.mxu1 %v9061_v57  ;;  %v9276_v13 = vcombine.low %v919_v51, %v923_v22  ;;  %v907_v18 = vld [vmem:[#allocation8 + $0xcb0] sm:$0xff] }
 0x24e   :  { %v895_v45 = vld [vmem:[#allocation8 + $0xc50] sm:$0xff] }
 0x24f   :  { %3972 = vmatpush2.bf16.msra.mxu0 %v8932_v3  ;;  %v9277_v3 = vcombine.high %v919_v51, %v923_v22  ;;  %v899_v23 = vld [vmem:[#allocation8 + $0xc70] sm:$0xff] }
 0x250   :  { %4013 = vmatpush2.bf16.msra.mxu1 %v9060_v4  ;;  %3973 = vmatprep.subr.bf16.mxu0 %v8925_v6  ;;  %v783_v4 = vld [vmem:[#allocation8 + $0x8d0] sm:$0xff] }
 0x251   :  { %4014 = vmatprep.subr.bf16.mxu1 %v9053_v7  ;;  %v787_v6 = vld [vmem:[#allocation8 + $0x8f0] sm:$0xff] }
 0x252   :  { %v911_v7 = vld [vmem:[#allocation8 + $0xcd0] sm:$0xff]  ;;  %v9141_v14 = vcombine.high %v783_v4, %v787_v6  ;;  %v9140_v34 = vcombine.low %v783_v4, %v787_v6 }
 0x253   :  { %3974 = vmatpush2.bf16.msra.mxu0 %v8924_v15  ;;  %v9269_v15 = vcombine.high %v911_v7, %v915_v9  ;;  %v883_v41 = vld [vmem:[#allocation8 + $0xbf0] sm:$0xff] }
 0x254   :  { %4015 = vmatpush2.bf16.msra.mxu1 %v9052_v16  ;;  %4025 = vmatprep.subr.bf16.mxu0 %v9173_v17  ;;  %v775_v16 = vld [vmem:[#allocation8 + $0x890] sm:$0xff] }
 0x255   :  { %4066 = vmatprep.subr.bf16.mxu1 %v9301_v43  ;;  %v779_v17 = vld [vmem:[#allocation8 + $0x8b0] sm:$0xff] }
 0x256   :  { %v3731_v24 = vpop.f32.mrf.mxu0  ;;  %3976 = vmatmul.mubr.bf16.vlgmr.msra.gmra.mxu0 %v10527_v55  ;;  %v903_v43 = vld [vmem:[#allocation8 + $0xc90] sm:$0xff]  ;;  %v9133_v38 = vcombine.high %v775_v16, %v779_v17 }
 0x257   :  { %v3732_v28 = vadd.f32 %v3731_v24, %v10590_v30  ;;  %v3772_v8 = vpop.f32.mrf.mxu1  ;;  %4017 = vmatmul.mubr.bf16.vlgmr.msra.gmra.mxu1 %v10531_v56  ;;  %4026 = vmatpush1.bf16.msra.mxu0 %v9172_v36  ;;  %v9285_v30 = vcombine.high %v927_v26, %v931_v27  ;;  %v9268_v36 = vcombine.low %v911_v7, %v915_v9  ;;  %v1007_v42 = vld [vmem:[#allocation8 + $0xfd0] sm:$0xff] }
 0x258   :  { %4057 = vmatprep.mubr.bf16.mxu0 %v10543_v35  ;;  %4067 = vmatpush1.bf16.msra.mxu1 %v9300_v20  ;;  %v3733_v31 = vpop.f32.mrf.mxu0  ;;  %v9261_v40 = vcombine.high %v903_v43, %v907_v18  ;;  %v767_v20 = vld [vmem:[#allocation8 + $0x850] sm:$0xff]  ;;  %v9132_v24 = vcombine.low %v775_v16, %v779_v17  ;;  %v9253_v27 = vcombine.high %v895_v45, %v899_v23 }
 0x259   :  { %v10599_v33 = vadd.f32 %v3772_v8, %v3732_v28  ;;  %4098 = vmatprep.mubr.bf16.mxu1 %v10545_v39  ;;  %v3734_v37 = vadd.f32 %v3733_v31, %v10593_v49  ;;  %v3774_v19 = vpop.f32.mrf.mxu1  ;;  %4027 = vmatprep.subr.bf16.mxu0 %v9165_v21  ;;  %v771_v21 = vld [vmem:[#allocation8 + $0x870] sm:$0xff] }
 0x25a   :  { %v3735_v50 = vpop.f32.mrf.mxu0  ;;  %4068 = vmatprep.subr.bf16.mxu1 %v9293_v25  ;;  %v9260_v25 = vcombine.low %v903_v43, %v907_v18  ;;  %v9125_v26 = vcombine.high %v767_v20, %v771_v21  ;;  %v759_v28 = vld [vmem:[#allocation8 + $0x810] sm:$0xff] }
 0x25b   :  { %v10603_v52 = vadd.f32 %v3774_v19, %v3734_v37  ;;  %v3776_v57 = vpop.f32.mrf.mxu1  ;;  %4028 = vmatpush1.bf16.msra.mxu0 %v9164_v29  ;;  %v763_v8 = vld [vmem:[#allocation8 + $0x830] sm:$0xff] }
 0x25c   :  { %4069 = vmatpush1.bf16.msra.mxu1 %v9292_v10  ;;  %v3736_v62 = vpop.f32.mrf.mxu0  ;;  %4029 = vmatprep.subr.bf16.mxu0 %v9157_v32  ;;  %v887_v29 = vld [vmem:[#allocation8 + $0xc10] sm:$0xff]  ;;  %v9124_v10 = vcombine.low %v767_v20, %v771_v21  ;;  %v9252_v32 = vcombine.low %v895_v45, %v899_v23  ;;  %v9117_v37 = vcombine.high %v759_v28, %v763_v8 }
 0x25d   :  { %v3777_v49 = vpop.f32.mrf.mxu1  ;;  %4070 = vmatprep.subr.bf16.mxu1 %v9285_v30  ;;  %v891_v31 = vld [vmem:[#allocation8 + $0xc30] sm:$0xff]  ;;  %v9116_v51 = vcombine.low %v759_v28, %v763_v8 }
 0x25e   :  { %v9245_v19 = vcombine.high %v887_v29, %v891_v31  ;;  %v879_v30 = vld [vmem:[#allocation8 + $0xbd0] sm:$0xff]  ;;  %v9244_v22 = vcombine.low %v887_v29, %v891_v31 }
 0x25f   :  { %4030 = vmatpush1.bf16.msra.mxu0 %v9156_v59  ;;  %v1011_v50 = vld [vmem:[#allocation8 + $0xff0] sm:$0xff]  ;;  %v9237_v57 = vcombine.high %v879_v30, %v883_v41 }
 0x260   :  { %4071 = vmatpush1.bf16.msra.mxu1 %v9284_v63  ;;  %4031 = vmatprep.subr.bf16.mxu0 %v9149_v0  ;;  %v9365_v59 = vcombine.high %v1007_v42, %v1011_v50  ;;  %v871_v62 = vld [vmem:[#allocation8 + $0xb90] sm:$0xff]  ;;  %v9364_v4 = vcombine.low %v1007_v42, %v1011_v50 }
 0x261   :  { %4072 = vmatprep.subr.bf16.mxu1 %v9277_v3  ;;  %v875_v63 = vld [vmem:[#allocation8 + $0xbb0] sm:$0xff]  ;;  %v9236_v3 = vcombine.low %v879_v30, %v883_v41 }
 0x262   :  { %v999_v0 = vld [vmem:[#allocation8 + $0xf90] sm:$0xff]  ;;  %v9229_v6 = vcombine.high %v871_v62, %v875_v63 }
 0x263   :  { %4032 = vmatpush1.bf16.msra.mxu0 %v9148_v11  ;;  %v1003_v49 = vld [vmem:[#allocation8 + $0xfb0] sm:$0xff] }
 0x264   :  { %4073 = vmatpush1.bf16.msra.mxu1 %v9276_v13  ;;  %4033 = vmatprep.subr.bf16.mxu0 %v9141_v14  ;;  %v9357_v7 = vcombine.high %v999_v0, %v1003_v49  ;;  %v863_v9 = vld [vmem:[#allocation8 + $0xb50] sm:$0xff]  ;;  %v9356_v16 = vcombine.low %v999_v0, %v1003_v49 }
 0x265   :  { %4074 = vmatprep.subr.bf16.mxu1 %v9269_v15  ;;  %v867_v11 = vld [vmem:[#allocation8 + $0xb70] sm:$0xff]  ;;  %v9228_v15 = vcombine.low %v871_v62, %v875_v63 }
 0x266   :  { %v991_v13 = vld [vmem:[#allocation8 + $0xf50] sm:$0xff]  ;;  %v9221_v17 = vcombine.high %v863_v9, %v867_v11 }
 0x267   :  { %4034 = vmatpush1.bf16.msra.mxu0 %v9140_v34  ;;  %v995_v14 = vld [vmem:[#allocation8 + $0xf70] sm:$0xff] }
 0x268   :  { %4075 = vmatpush1.bf16.msra.mxu1 %v9268_v36  ;;  %4035 = vmatprep.subr.bf16.mxu0 %v9133_v38  ;;  %v9349_v43 = vcombine.high %v991_v13, %v995_v14  ;;  %v855_v18 = vld [vmem:[#allocation8 + $0xb10] sm:$0xff]  ;;  %v9348_v20 = vcombine.low %v991_v13, %v995_v14  ;;  %v560_v14 = vld [vmem:[#allocation8 + $0x1d8] sm:$0xff] }
 0x269   :  { %4076 = vmatprep.subr.bf16.mxu1 %v9261_v40  ;;  %v859_v34 = vld [vmem:[#allocation8 + $0xb30] sm:$0xff]  ;;  %v9220_v40 = vcombine.low %v863_v9, %v867_v11 }
 0x26a   :  { %v983_v36 = vld [vmem:[#allocation8 + $0xf10] sm:$0xff]  ;;  %v9213_v21 = vcombine.high %v855_v18, %v859_v34 }
 0x26b   :  { %4036 = vmatpush1.bf16.msra.mxu0 %v9132_v24  ;;  %v987_v38 = vld [vmem:[#allocation8 + $0xf30] sm:$0xff] }
 0x26c   :  { %4077 = vmatpush1.bf16.msra.mxu1 %v9260_v25  ;;  %4037 = vmatprep.subr.bf16.mxu0 %v9125_v26  ;;  %v9341_v45 = vcombine.high %v983_v36, %v987_v38  ;;  %v847_v23 = vld [vmem:[#allocation8 + $0xad0] sm:$0xff]  ;;  %v9340_v28 = vcombine.low %v983_v36, %v987_v38  ;;  %v552_v38 = vld [vmem:[#allocation8 + $0x198] sm:$0xff] }
 0x26d   :  { %4078 = vmatprep.subr.bf16.mxu1 %v9253_v27  ;;  %v851_v24 = vld [vmem:[#allocation8 + $0xaf0] sm:$0xff]  ;;  %v9212_v27 = vcombine.low %v855_v18, %v859_v34 }
 0x26e   :  { %v975_v25 = vld [vmem:[#allocation8 + $0xed0] sm:$0xff]  ;;  %v9205_v8 = vcombine.high %v847_v23, %v851_v24 }
 0x26f   :  { %4038 = vmatpush1.bf16.msra.mxu0 %v9124_v10  ;;  %v979_v26 = vld [vmem:[#allocation8 + $0xef0] sm:$0xff] }
 0x270   :  { %4079 = vmatpush1.bf16.msra.mxu1 %v9252_v32  ;;  %4039 = vmatprep.subr.bf16.mxu0 %v9117_v37  ;;  %v9333_v29 = vcombine.high %v975_v25, %v979_v26  ;;  %v839_v31 = vld [vmem:[#allocation8 + $0xa90] sm:$0xff]  ;;  %v9332_v30 = vcombine.low %v975_v25, %v979_v26  ;;  %v1030_v25 = vrot.slane %v10581_v12, %v10501_v48 }
 0x271   :  { %4080 = vmatprep.subr.bf16.mxu1 %v9245_v19  ;;  %v843_v10 = vld [vmem:[#allocation8 + $0xab0] sm:$0xff]  ;;  %v9204_v19 = vcombine.low %v847_v23, %v851_v24  ;;  %v684_v23 = vld [vmem:[#allocation8 + $0x5b8] sm:$0xff] }
 0x272   :  { %v967_v32 = vld [vmem:[#allocation8 + $0xe90] sm:$0xff]  ;;  %v9197_v41 = vcombine.high %v839_v31, %v843_v10 }
 0x273   :  { %4040 = vmatpush1.bf16.msra.mxu0 %v9116_v51  ;;  %v971_v37 = vld [vmem:[#allocation8 + $0xeb0] sm:$0xff] }
 0x274   :  { %4081 = vmatpush1.bf16.msra.mxu1 %v9244_v22  ;;  %4041 = vmatprep.subr.bf16.mxu0 %v9237_v57  ;;  %v9325_v42 = vcombine.high %v967_v32, %v971_v37  ;;  %v831_v50 = vld [vmem:[#allocation8 + $0xa50] sm:$0xff]  ;;  %v9324_v62 = vcombine.low %v967_v32, %v971_v37 }
 0x275   :  { %4082 = vmatprep.subr.bf16.mxu1 %v9365_v59  ;;  %v835_v51 = vld [vmem:[#allocation8 + $0xa70] sm:$0xff]  ;;  %v9196_v59 = vcombine.low %v839_v31, %v843_v10  ;;  %v672_v31 = vld [vmem:[#allocation8 + $0x558] sm:$0xff] }
 0x276   :  { %v959_v22 = vld [vmem:[#allocation8 + $0xe50] sm:$0xff]  ;;  %v9189_v63 = vcombine.high %v831_v50, %v835_v51  ;;  %v676_v10 = vld [vmem:[#allocation8 + $0x578] sm:$0xff] }
 0x277   :  { %4042 = vmatpush2.bf16.msra.mxu0 %v9236_v3  ;;  %v963_v57 = vld [vmem:[#allocation8 + $0xe70] sm:$0xff] }
 0x278   :  { %4083 = vmatpush2.bf16.msra.mxu1 %v9364_v4  ;;  %4043 = vmatprep.subr.bf16.mxu0 %v9229_v6  ;;  %v9317_v0 = vcombine.high %v959_v22, %v963_v57  ;;  %v823_v49 = vld [vmem:[#allocation8 + $0xa10] sm:$0xff]  ;;  %v9316_v9 = vcombine.low %v959_v22, %v963_v57  ;;  %v9031_v22 = vcombine.high %v672_v31, %v676_v10  ;;  %v536_v57 = vld [vmem:[#allocation8 + $0x118] sm:$0xff] }
 0x279   :  { %4084 = vmatprep.subr.bf16.mxu1 %v9357_v7  ;;  %v827_v3 = vld [vmem:[#allocation8 + $0xa30] sm:$0xff]  ;;  %v9188_v7 = vcombine.low %v831_v50, %v835_v51 }
 0x27a   :  { %v951_v4 = vld [vmem:[#allocation8 + $0xe10] sm:$0xff]  ;;  %v9181_v11 = vcombine.high %v823_v49, %v827_v3 }
 0x27b   :  { %4044 = vmatpush2.bf16.msra.mxu0 %v9228_v15  ;;  %v955_v6 = vld [vmem:[#allocation8 + $0xe30] sm:$0xff]  ;;  %v564_v15 = vld [vmem:[#allocation8 + $0x1f8] sm:$0xff] }
 0x27c   :  { %4085 = vmatpush2.bf16.msra.mxu1 %v9356_v16  ;;  %4045 = vmatprep.subr.bf16.mxu0 %v9221_v17  ;;  %v9309_v13 = vcombine.high %v951_v4, %v955_v6  ;;  %v688_v16 = vld [vmem:[#allocation8 + $0x5d8] sm:$0xff]  ;;  %v9308_v18 = vcombine.low %v951_v4, %v955_v6  ;;  %v8919_v34 = vcombine.high %v560_v14, %v564_v15 }
 0x27d   :  { %4086 = vmatprep.subr.bf16.mxu1 %v9349_v43  ;;  %v692_v17 = vld [vmem:[#allocation8 + $0x5f8] sm:$0xff]  ;;  %v9180_v43 = vcombine.low %v823_v49, %v827_v3  ;;  %v9030_v6 = vcombine.low %v672_v31, %v676_v10 }
 0x27e   :  { %v9047_v36 = vcombine.high %v688_v16, %v692_v17  ;;  %v9046_v24 = vcombine.low %v688_v16, %v692_v17  ;;  %v504_v10 = vld [vmem:[#allocation8 + $0x18] sm:$0xff] }
 0x27f   :  { %4046 = vmatpush2.bf16.msra.mxu0 %v9220_v40  ;;  %v556_v40 = vld [vmem:[#allocation8 + $0x1b8] sm:$0xff] }
 0x280   :  { %4087 = vmatpush2.bf16.msra.mxu1 %v9348_v20  ;;  %4047 = vmatprep.subr.bf16.mxu0 %v9213_v21  ;;  %v1026_v20 = vrot.slane %v10581_v12, %v10495_v46  ;;  %v8918_v21 = vcombine.low %v560_v14, %v564_v15  ;;  %v8911_v26 = vcombine.high %v552_v38, %v556_v40  ;;  %v656_v14 = vld [vmem:[#allocation8 + $0x4d8] sm:$0xff] }
 0x281   :  { %4088 = vmatprep.subr.bf16.mxu1 %v9341_v45  ;;  %v680_v45 = vld [vmem:[#allocation8 + $0x598] sm:$0xff] }
 0x282   :  { %v9038_v12 = vcombine.low %v680_v45, %v684_v23  ;;  %v660_v15 = vld [vmem:[#allocation8 + $0x4f8] sm:$0xff] }
 0x283   :  { %4048 = vmatpush2.bf16.msra.mxu0 %v9212_v27  ;;  %v544_v27 = vld [vmem:[#allocation8 + $0x158] sm:$0xff] }
 0x284   :  { %4089 = vmatpush2.bf16.msra.mxu1 %v9340_v28  ;;  %4049 = vmatprep.subr.bf16.mxu0 %v9205_v8  ;;  %v548_v28 = vld [vmem:[#allocation8 + $0x178] sm:$0xff] }
 0x285   :  { %4090 = vmatprep.subr.bf16.mxu1 %v9333_v29  ;;  %v9039_v29 = vcombine.high %v680_v45, %v684_v23  ;;  %v8902_v3 = vcombine.low %v544_v27, %v548_v28 }
 0x287   :  { %4050 = vmatpush2.bf16.msra.mxu0 %v9204_v19  ;;  %v8910_v19 = vcombine.low %v552_v38, %v556_v40  ;;  %v648_v38 = vld [vmem:[#allocation8 + $0x498] sm:$0xff] }
 0x288   :  { %4091 = vmatpush2.bf16.msra.mxu1 %v9332_v30  ;;  %4051 = vmatprep.subr.bf16.mxu0 %v9197_v41  ;;  %v8903_v41 = vcombine.high %v544_v27, %v548_v28  ;;  %v652_v40 = vld [vmem:[#allocation8 + $0x4b8] sm:$0xff] }
 0x289   :  { %4092 = vmatprep.subr.bf16.mxu1 %v9325_v42  ;;  %v9007_v23 = vcombine.high %v648_v38, %v652_v40  ;;  %v644_v27 = vld [vmem:[#allocation8 + $0x478] sm:$0xff] }
 0x28b   :  { %4052 = vmatpush2.bf16.msra.mxu0 %v9196_v59  ;;  %v540_v59 = vld [vmem:[#allocation8 + $0x138] sm:$0xff] }
 0x28c   :  { %4093 = vmatpush2.bf16.msra.mxu1 %v9324_v62  ;;  %4053 = vmatprep.subr.bf16.mxu0 %v9189_v63  ;;  %v664_v63 = vld [vmem:[#allocation8 + $0x518] sm:$0xff]  ;;  %v8894_v16 = vcombine.low %v536_v57, %v540_v59 }
 0x28d   :  { %4094 = vmatprep.subr.bf16.mxu1 %v9317_v0  ;;  %v668_v0 = vld [vmem:[#allocation8 + $0x538] sm:$0xff] }
 0x28e   :  { %v9022_v17 = vcombine.low %v664_v63, %v668_v0 }
 0x28f   :  { %4054 = vmatpush2.bf16.msra.mxu0 %v9188_v7 }
 0x290   :  { %4095 = vmatpush2.bf16.msra.mxu1 %v9316_v9  ;;  %4055 = vmatprep.subr.bf16.mxu0 %v9181_v11  ;;  %v9023_v9 = vcombine.high %v664_v63, %v668_v0  ;;  %v528_v11 = vld [vmem:[#allocation8 + $0xd8] sm:$0xff] }
 0x291   :  { %4096 = vmatprep.subr.bf16.mxu1 %v9309_v13  ;;  %v532_v13 = vld [vmem:[#allocation8 + $0xf8] sm:$0xff] }
 0x293   :  { %4056 = vmatpush2.bf16.msra.mxu0 %v9180_v43  ;;  %v8887_v43 = vcombine.high %v528_v11, %v532_v13 }
 0x294   :  { %4097 = vmatpush2.bf16.msra.mxu1 %v9308_v18  ;;  %4107 = vmatprep.subr.bf16.mxu0 %v8919_v34  ;;  %v9015_v18 = vcombine.high %v656_v14, %v660_v15  ;;  %v520_v34 = vld [vmem:[#allocation8 + $0x98] sm:$0xff] }
 0x295   :  { %4148 = vmatprep.subr.bf16.mxu1 %v9047_v36  ;;  %v524_v36 = vld [vmem:[#allocation8 + $0xb8] sm:$0xff] }
 0x296   :  { %v3813_v8 = vpop.f32.mrf.mxu0  ;;  %4058 = vmatmul.mubr.bf16.vlgmr.msra.gmra.mxu0 %v10569_v58  ;;  %v8879_v45 = vcombine.high %v520_v34, %v524_v36  ;;  %v8878_v28 = vcombine.low %v520_v34, %v524_v36 }
 0x297   :  { %v3814_v32 = vadd.f32 %v3813_v8, %v1026_v20  ;;  %v3854_v37 = vpop.f32.mrf.mxu1  ;;  %4099 = vmatmul.mubr.bf16.vlgmr.msra.gmra.mxu1 %v10571_v60  ;;  %4108 = vmatpush1.bf16.msra.mxu0 %v8918_v21  ;;  %v8886_v20 = vcombine.low %v528_v11, %v532_v13  ;;  %v9014_v21 = vcombine.low %v656_v14, %v660_v15  ;;  %v608_v14 = vld [vmem:[#allocation8 + $0x358] sm:$0xff] }
 0x298   :  { %4139 = vmatprep.mubr.bf16.mxu0 %v10525_v53  ;;  %4149 = vmatpush1.bf16.msra.mxu1 %v9046_v24  ;;  %v3815_v30 = vpop.f32.mrf.mxu0  ;;  %v512_v24 = vld [vmem:[#allocation8 + $0x58] sm:$0xff]  ;;  %v9006_v8 = vcombine.low %v648_v38, %v652_v40 }
 0x299   :  { %v10612_v42 = vadd.f32 %v3854_v37, %v3814_v32  ;;  %4180 = vmatprep.mubr.bf16.mxu1 %v10529_v54  ;;  %v3816_v50 = vadd.f32 %v3815_v30, %v1030_v25  ;;  %v3856_v51 = vpop.f32.mrf.mxu1  ;;  %4109 = vmatprep.subr.bf16.mxu0 %v8911_v26  ;;  %v8895_v54 = vcombine.high %v536_v57, %v540_v59  ;;  %v516_v25 = vld [vmem:[#allocation8 + $0x78] sm:$0xff] }
 0x29a   :  { %v3817_v62 = vpop.f32.mrf.mxu0  ;;  %4150 = vmatprep.subr.bf16.mxu1 %v9039_v29  ;;  %v640_v26 = vld [vmem:[#allocation8 + $0x458] sm:$0xff]  ;;  %v8871_v29 = vcombine.high %v512_v24, %v516_v25  ;;  %v8870_v30 = vcombine.low %v512_v24, %v516_v25 }
 0x29b   :  { %v10615_v49 = vadd.f32 %v3856_v51, %v3816_v50  ;;  %v3858_v53 = vpop.f32.mrf.mxu1  ;;  %4110 = vmatpush1.bf16.msra.mxu0 %v8910_v19  ;;  %v8999_v31 = vcombine.high %v640_v26, %v644_v27  ;;  %v508_v32 = vld [vmem:[#allocation8 + $0x38] sm:$0xff] }
 0x29c   :  { %4151 = vmatpush1.bf16.msra.mxu1 %v9038_v12  ;;  %v3818_v4 = vpop.f32.mrf.mxu0  ;;  %4111 = vmatprep.subr.bf16.mxu0 %v8903_v41  ;;  %v632_v37 = vld [vmem:[#allocation8 + $0x418] sm:$0xff]  ;;  %v8998_v12 = vcombine.low %v640_v26, %v644_v27  ;;  %v8863_v41 = vcombine.high %v504_v10, %v508_v32  ;;  %v8862_v62 = vcombine.low %v504_v10, %v508_v32 }
 0x29d   :  { %v3859_v7 = vpop.f32.mrf.mxu1  ;;  %4152 = vmatprep.subr.bf16.mxu1 %v9031_v22  ;;  %v636_v19 = vld [vmem:[#allocation8 + $0x438] sm:$0xff] }
 0x29e   :  { %v8991_v50 = vcombine.high %v632_v37, %v636_v19  ;;  %v624_v51 = vld [vmem:[#allocation8 + $0x3d8] sm:$0xff]  ;;  %v8990_v63 = vcombine.low %v632_v37, %v636_v19 }
 0x29f   :  { %4112 = vmatpush1.bf16.msra.mxu0 %v8902_v3  ;;  %v628_v22 = vld [vmem:[#allocation8 + $0x3f8] sm:$0xff] }
 0x2a0   :  { %4153 = vmatpush1.bf16.msra.mxu1 %v9030_v6  ;;  %4113 = vmatprep.subr.bf16.mxu0 %v8895_v54  ;;  %v752_v57 = vld [vmem:[#allocation8 + $0x7d8] sm:$0xff]  ;;  %v8983_v0 = vcombine.high %v624_v51, %v628_v22  ;;  %v8982_v7 = vcombine.low %v624_v51, %v628_v22 }
 0x2a1   :  { %4154 = vmatprep.subr.bf16.mxu1 %v9023_v9  ;;  %v756_v59 = vld [vmem:[#allocation8 + $0x7f8] sm:$0xff] }
 0x2a2   :  { %v9111_v53 = vcombine.high %v752_v57, %v756_v59  ;;  %v616_v3 = vld [vmem:[#allocation8 + $0x398] sm:$0xff]  ;;  %v9110_v9 = vcombine.low %v752_v57, %v756_v59 }
 0x2a3   :  { %4114 = vmatpush1.bf16.msra.mxu0 %v8894_v16  ;;  %v620_v4 = vld [vmem:[#allocation8 + $0x3b8] sm:$0xff] }
 0x2a4   :  { %4155 = vmatpush1.bf16.msra.mxu1 %v9022_v17  ;;  %4115 = vmatprep.subr.bf16.mxu0 %v8887_v43  ;;  %v744_v6 = vld [vmem:[#allocation8 + $0x798] sm:$0xff]  ;;  %v8975_v11 = vcombine.high %v616_v3, %v620_v4  ;;  %v8974_v43 = vcombine.low %v616_v3, %v620_v4 }
 0x2a5   :  { %4156 = vmatprep.subr.bf16.mxu1 %v9015_v18  ;;  %v748_v54 = vld [vmem:[#allocation8 + $0x7b8] sm:$0xff] }
 0x2a6   :  { %v9103_v13 = vcombine.high %v744_v6, %v748_v54  ;;  %v612_v15 = vld [vmem:[#allocation8 + $0x378] sm:$0xff]  ;;  %v9102_v18 = vcombine.low %v744_v6, %v748_v54 }
 0x2a7   :  { %4116 = vmatpush1.bf16.msra.mxu0 %v8886_v20  ;;  %v736_v16 = vld [vmem:[#allocation8 + $0x758] sm:$0xff]  ;;  %v8967_v34 = vcombine.high %v608_v14, %v612_v15 }
 0x2a8   :  { %4157 = vmatpush1.bf16.msra.mxu1 %v9014_v21  ;;  %4117 = vmatprep.subr.bf16.mxu0 %v8879_v45  ;;  %v740_v17 = vld [vmem:[#allocation8 + $0x778] sm:$0xff]  ;;  %v8966_v45 = vcombine.low %v608_v14, %v612_v15 }
 0x2a9   :  { %4158 = vmatprep.subr.bf16.mxu1 %v9007_v23  ;;  %v9095_v36 = vcombine.high %v736_v16, %v740_v17  ;;  %v600_v38 = vld [vmem:[#allocation8 + $0x318] sm:$0xff]  ;;  %v9094_v23 = vcombine.low %v736_v16, %v740_v17 }
 0x2aa   :  { %v604_v40 = vld [vmem:[#allocation8 + $0x338] sm:$0xff] }
 0x2ab   :  { %4118 = vmatpush1.bf16.msra.mxu0 %v8878_v28  ;;  %v728_v20 = vld [vmem:[#allocation8 + $0x718] sm:$0xff]  ;;  %v8959_v24 = vcombine.high %v600_v38, %v604_v40 }
 0x2ac   :  { %4159 = vmatpush1.bf16.msra.mxu1 %v9006_v8  ;;  %4119 = vmatprep.subr.bf16.mxu0 %v8871_v29  ;;  %v732_v21 = vld [vmem:[#allocation8 + $0x738] sm:$0xff]  ;;  %v8958_v29 = vcombine.low %v600_v38, %v604_v40 }
 0x2ad   :  { %4160 = vmatprep.subr.bf16.mxu1 %v8999_v31  ;;  %v9087_v25 = vcombine.high %v728_v20, %v732_v21  ;;  %v592_v26 = vld [vmem:[#allocation8 + $0x2d8] sm:$0xff]  ;;  %v9086_v31 = vcombine.low %v728_v20, %v732_v21 }
 0x2ae   :  { %v596_v27 = vld [vmem:[#allocation8 + $0x2f8] sm:$0xff] }
 0x2af   :  { %4120 = vmatpush1.bf16.msra.mxu0 %v8870_v30  ;;  %v720_v28 = vld [vmem:[#allocation8 + $0x6d8] sm:$0xff]  ;;  %v8951_v10 = vcombine.high %v592_v26, %v596_v27 }
 0x2b0   :  { %4161 = vmatpush1.bf16.msra.mxu1 %v8998_v12  ;;  %4121 = vmatprep.subr.bf16.mxu0 %v8863_v41  ;;  %v724_v8 = vld [vmem:[#allocation8 + $0x6f8] sm:$0xff]  ;;  %v8950_v41 = vcombine.low %v592_v26, %v596_v27 }
 0x2b1   :  { %4162 = vmatprep.subr.bf16.mxu1 %v8991_v50  ;;  %v9079_v32 = vcombine.high %v720_v28, %v724_v8  ;;  %v584_v37 = vld [vmem:[#allocation8 + $0x298] sm:$0xff]  ;;  %v9078_v50 = vcombine.low %v720_v28, %v724_v8 }
 0x2b2   :  { %v588_v19 = vld [vmem:[#allocation8 + $0x2b8] sm:$0xff] }
 0x2b3   :  { %4122 = vmatpush1.bf16.msra.mxu0 %v8862_v62  ;;  %v712_v30 = vld [vmem:[#allocation8 + $0x698] sm:$0xff]  ;;  %v8943_v51 = vcombine.high %v584_v37, %v588_v19 }
 0x2b4   :  { %4163 = vmatpush1.bf16.msra.mxu1 %v8990_v63  ;;  %4123 = vmatprep.subr.bf16.mxu0 %v8983_v0  ;;  %v716_v12 = vld [vmem:[#allocation8 + $0x6b8] sm:$0xff]  ;;  %v8942_v0 = vcombine.low %v584_v37, %v588_v19 }
 0x2b5   :  { %4164 = vmatprep.subr.bf16.mxu1 %v9111_v53  ;;  %v9071_v22 = vcombine.high %v712_v30, %v716_v12  ;;  %v576_v57 = vld [vmem:[#allocation8 + $0x258] sm:$0xff]  ;;  %v9070_v53 = vcombine.low %v712_v30, %v716_v12 }
 0x2b6   :  { %v580_v59 = vld [vmem:[#allocation8 + $0x278] sm:$0xff] }
 0x2b7   :  { %4124 = vmatpush2.bf16.msra.mxu0 %v8982_v7  ;;  %v704_v62 = vld [vmem:[#allocation8 + $0x658] sm:$0xff]  ;;  %v8935_v3 = vcombine.high %v576_v57, %v580_v59 }
 0x2b8   :  { %4165 = vmatpush2.bf16.msra.mxu1 %v9110_v9  ;;  %4125 = vmatprep.subr.bf16.mxu0 %v8975_v11  ;;  %v708_v63 = vld [vmem:[#allocation8 + $0x678] sm:$0xff]  ;;  %v8934_v11 = vcombine.low %v576_v57, %v580_v59 }
 0x2b9   :  { %4166 = vmatprep.subr.bf16.mxu1 %v9103_v13  ;;  %v9063_v4 = vcombine.high %v704_v62, %v708_v63  ;;  %v568_v6 = vld [vmem:[#allocation8 + $0x218] sm:$0xff]  ;;  %v9062_v13 = vcombine.low %v704_v62, %v708_v63 }
 0x2ba   :  { %v572_v54 = vld [vmem:[#allocation8 + $0x238] sm:$0xff] }
 0x2bb   :  { %4126 = vmatpush2.bf16.msra.mxu0 %v8974_v43  ;;  %v696_v7 = vld [vmem:[#allocation8 + $0x618] sm:$0xff]  ;;  %v8927_v14 = vcombine.high %v568_v6, %v572_v54 }
 0x2bc   :  { %4167 = vmatpush2.bf16.msra.mxu1 %v9102_v18  ;;  %4127 = vmatprep.subr.bf16.mxu0 %v8967_v34  ;;  %v700_v9 = vld [vmem:[#allocation8 + $0x638] sm:$0xff]  ;;  %v8926_v34 = vcombine.low %v568_v6, %v572_v54 }
 0x2bd   :  { %4168 = vmatprep.subr.bf16.mxu1 %v9095_v36  ;;  %v9055_v15 = vcombine.high %v696_v7, %v700_v9  ;;  %v816_v16 = vld [vmem:[#allocation8 + $0x9d8] sm:$0xff]  ;;  %v9054_v36 = vcombine.low %v696_v7, %v700_v9 }
 0x2be   :  { %v820_v17 = vld [vmem:[#allocation8 + $0x9f8] sm:$0xff] }
 0x2bf   :  { %4128 = vmatpush2.bf16.msra.mxu0 %v8966_v45  ;;  %v944_v43 = vld [vmem:[#allocation8 + $0xdd8] sm:$0xff]  ;;  %v9175_v38 = vcombine.high %v816_v16, %v820_v17  ;;  %v9174_v45 = vcombine.low %v816_v16, %v820_v17 }
 0x2c0   :  { %4169 = vmatpush2.bf16.msra.mxu1 %v9094_v23  ;;  %4129 = vmatprep.subr.bf16.mxu0 %v8959_v24  ;;  %v948_v18 = vld [vmem:[#allocation8 + $0xdf8] sm:$0xff] }
 0x2c1   :  { %4170 = vmatprep.subr.bf16.mxu1 %v9087_v25  ;;  %v9303_v40 = vcombine.high %v944_v43, %v948_v18  ;;  %v808_v20 = vld [vmem:[#allocation8 + $0x998] sm:$0xff]  ;;  %v9302_v25 = vcombine.low %v944_v43, %v948_v18 }
 0x2c2   :  { %v812_v21 = vld [vmem:[#allocation8 + $0x9b8] sm:$0xff] }
 0x2c3   :  { %4130 = vmatpush2.bf16.msra.mxu0 %v8958_v29  ;;  %v936_v23 = vld [vmem:[#allocation8 + $0xd98] sm:$0xff]  ;;  %v9167_v26 = vcombine.high %v808_v20, %v812_v21  ;;  %v9166_v19 = vcombine.low %v808_v20, %v812_v21 }
 0x2c4   :  { %4171 = vmatpush2.bf16.msra.mxu1 %v9086_v31  ;;  %4131 = vmatprep.subr.bf16.mxu0 %v8951_v10  ;;  %v940_v24 = vld [vmem:[#allocation8 + $0xdb8] sm:$0xff] }
 0x2c5   :  { %4172 = vmatprep.subr.bf16.mxu1 %v9079_v32  ;;  %v800_v27 = vld [vmem:[#allocation8 + $0x958] sm:$0xff]  ;;  %v9295_v29 = vcombine.high %v936_v23, %v940_v24  ;;  %v9294_v12 = vcombine.low %v936_v23, %v940_v24 }
 0x2c6   :  { %v804_v28 = vld [vmem:[#allocation8 + $0x978] sm:$0xff] }
 0x2c7   :  { %4132 = vmatpush2.bf16.msra.mxu0 %v8950_v41  ;;  %v928_v31 = vld [vmem:[#allocation8 + $0xd58] sm:$0xff]  ;;  %v9159_v41 = vcombine.high %v800_v27, %v804_v28  ;;  %v9158_v62 = vcombine.low %v800_v27, %v804_v28 }
 0x2c8   :  { %4173 = vmatpush2.bf16.msra.mxu1 %v9078_v50  ;;  %4133 = vmatprep.subr.bf16.mxu0 %v8943_v51  ;;  %v932_v10 = vld [vmem:[#allocation8 + $0xd78] sm:$0xff] }
 0x2c9   :  { %4174 = vmatprep.subr.bf16.mxu1 %v9071_v22  ;;  %v792_v51 = vld [vmem:[#allocation8 + $0x918] sm:$0xff] }
 0x2ca   :  { %v796_v22 = vld [vmem:[#allocation8 + $0x938] sm:$0xff] }
 0x2cb   :  { %4134 = vmatpush2.bf16.msra.mxu0 %v8942_v0  ;;  %v920_v57 = vld [vmem:[#allocation8 + $0xd18] sm:$0xff]  ;;  %v9286_v0 = vcombine.low %v928_v31, %v932_v10  ;;  %v9150_v9 = vcombine.low %v792_v51, %v796_v22 }
 0x2cc   :  { %4175 = vmatpush2.bf16.msra.mxu1 %v9070_v53  ;;  %4135 = vmatprep.subr.bf16.mxu0 %v8935_v3  ;;  %v924_v59 = vld [vmem:[#allocation8 + $0xd38] sm:$0xff]  ;;  %v9151_v53 = vcombine.high %v792_v51, %v796_v22 }
 0x2cd   :  { %4176 = vmatprep.subr.bf16.mxu1 %v9063_v4  ;;  %v784_v4 = vld [vmem:[#allocation8 + $0x8d8] sm:$0xff] }
 0x2ce   :  { %v788_v6 = vld [vmem:[#allocation8 + $0x8f8] sm:$0xff] }
 0x2cf   :  { %4136 = vmatpush2.bf16.msra.mxu0 %v8934_v11  ;;  %v912_v54 = vld [vmem:[#allocation8 + $0xcd8] sm:$0xff]  ;;  %v9278_v11 = vcombine.low %v920_v57, %v924_v59  ;;  %v9142_v18 = vcombine.low %v784_v4, %v788_v6 }
 0x2d0   :  { %4177 = vmatpush2.bf16.msra.mxu1 %v9062_v13  ;;  %4137 = vmatprep.subr.bf16.mxu0 %v8927_v14  ;;  %v916_v7 = vld [vmem:[#allocation8 + $0xcf8] sm:$0xff]  ;;  %v9143_v13 = vcombine.high %v784_v4, %v788_v6 }
 0x2d1   :  { %4178 = vmatprep.subr.bf16.mxu1 %v9055_v15  ;;  %v9271_v14 = vcombine.high %v912_v54, %v916_v7  ;;  %v776_v15 = vld [vmem:[#allocation8 + $0x898] sm:$0xff] }
 0x2d2   :  { %v780_v16 = vld [vmem:[#allocation8 + $0x8b8] sm:$0xff] }
 0x2d3   :  { %4138 = vmatpush2.bf16.msra.mxu0 %v8926_v34  ;;  %v904_v17 = vld [vmem:[#allocation8 + $0xc98] sm:$0xff]  ;;  %v9270_v34 = vcombine.low %v912_v54, %v916_v7  ;;  %v9134_v23 = vcombine.low %v776_v15, %v780_v16 }
 0x2d4   :  { %4179 = vmatpush2.bf16.msra.mxu1 %v9054_v36  ;;  %4189 = vmatprep.subr.bf16.mxu0 %v9175_v38  ;;  %v908_v43 = vld [vmem:[#allocation8 + $0xcb8] sm:$0xff]  ;;  %v9135_v36 = vcombine.high %v776_v15, %v780_v16 }
 0x2d5   :  { %4230 = vmatprep.subr.bf16.mxu1 %v9303_v40  ;;  %v9263_v38 = vcombine.high %v904_v17, %v908_v43  ;;  %v768_v40 = vld [vmem:[#allocation8 + $0x858] sm:$0xff]  ;;  %v9262_v24 = vcombine.low %v904_v17, %v908_v43  ;;  %v4280_v17 = vmul.f32 0.70710677, %v10603_v52 }
 0x2d6   :  { %v3895_v8 = vpop.f32.mrf.mxu0  ;;  %4140 = vmatmul.mubr.bf16.vlgmr.msra.gmra.mxu0 %v10527_v55  ;;  %v772_v20 = vld [vmem:[#allocation8 + $0x878] sm:$0xff] }
 0x2d7   :  { %v3896_v32 = vadd.f32 %v3895_v8, %v10612_v42  ;;  %v3936_v37 = vpop.f32.mrf.mxu1  ;;  %4181 = vmatmul.mubr.bf16.vlgmr.msra.gmra.mxu1 %v10531_v56  ;;  %4190 = vmatpush1.bf16.msra.mxu0 %v9174_v45  ;;  %v9287_v42 = vcombine.high %v928_v31, %v932_v10  ;;  %v896_v21 = vld [vmem:[#allocation8 + $0xc58] sm:$0xff]  ;;  %v9126_v31 = vcombine.low %v768_v40, %v772_v20  ;;  %10128 = verf.f32 %v4280_v17 }
 0x2d8   :  { %4221 = vmatprep.mubr.bf16.mxu0 %v10543_v35  ;;  %4231 = vmatpush1.bf16.msra.mxu1 %v9302_v25  ;;  %v10621_v30 = vpop.f32.mrf.mxu0  ;;  %v900_v45 = vld [vmem:[#allocation8 + $0xc78] sm:$0xff]  ;;  %v9127_v25 = vcombine.high %v768_v40, %v772_v20 }
 0x2d9   :  { %v10623_v50 = vadd.f32 %v3936_v37, %v3896_v32  ;;  %4262 = vmatprep.mubr.bf16.mxu1 %v10545_v39  ;;  %v10626_v55 = vpop.f32.mrf.mxu1  ;;  %4191 = vmatprep.subr.bf16.mxu0 %v9167_v26  ;;  %v9279_v39 = vcombine.high %v920_v57, %v924_v59  ;;  %v9255_v26 = vcombine.high %v896_v21, %v900_v45  ;;  %v760_v27 = vld [vmem:[#allocation8 + $0x818] sm:$0xff] }
 0x2da   :  { %v3899_v56 = vpop.f32.mrf.mxu0  ;;  %4232 = vmatprep.subr.bf16.mxu1 %v9295_v29  ;;  %v764_v28 = vld [vmem:[#allocation8 + $0x838] sm:$0xff]  ;;  %v9254_v10 = vcombine.low %v896_v21, %v900_v45 }
 0x2db   :  { %v3940_v35 = vpop.f32.mrf.mxu1  ;;  %4192 = vmatpush1.bf16.msra.mxu0 %v9166_v19  ;;  %v888_v8 = vld [vmem:[#allocation8 + $0xc18] sm:$0xff]  ;;  %v9119_v32 = vcombine.high %v760_v27, %v764_v28  ;;  %v9118_v51 = vcombine.low %v760_v27, %v764_v28 }
 0x2dc   :  { %4233 = vmatpush1.bf16.msra.mxu1 %v9294_v12  ;;  %v3900_v63 = vpop.f32.mrf.mxu0  ;;  %4193 = vmatprep.subr.bf16.mxu0 %v9159_v41  ;;  %v892_v29 = vld [vmem:[#allocation8 + $0xc38] sm:$0xff] }
 0x2dd   :  { %v3941_v3 = vpop.f32.mrf.mxu1  ;;  %4234 = vmatprep.subr.bf16.mxu1 %v9287_v42  ;;  %v9247_v37 = vcombine.high %v888_v8, %v892_v29  ;;  %v880_v19 = vld [vmem:[#allocation8 + $0xbd8] sm:$0xff]  ;;  %v9246_v22 = vcombine.low %v888_v8, %v892_v29 }
 0x2de   :  { %v884_v12 = vld [vmem:[#allocation8 + $0xbf8] sm:$0xff] }
 0x2df   :  { %4194 = vmatpush1.bf16.msra.mxu0 %v9158_v62  ;;  %v1008_v41 = vld [vmem:[#allocation8 + $0xfd8] sm:$0xff]  ;;  %v9239_v56 = vcombine.high %v880_v19, %v884_v12 }
 0x2e0   :  { %4235 = vmatpush1.bf16.msra.mxu1 %v9286_v0  ;;  %4195 = vmatprep.subr.bf16.mxu0 %v9151_v53  ;;  %v1012_v42 = vld [vmem:[#allocation8 + $0xff8] sm:$0xff]  ;;  %v3898_v0 = vadd.f32 %v10621_v30, %v10615_v49  ;;  %v9238_v53 = vcombine.low %v880_v19, %v884_v12 }
 0x2e1   :  { %4236 = vmatprep.subr.bf16.mxu1 %v9279_v39  ;;  %v9367_v57 = vcombine.high %v1008_v41, %v1012_v42  ;;  %v872_v59 = vld [vmem:[#allocation8 + $0xb98] sm:$0xff]  ;;  %v9366_v3 = vcombine.low %v1008_v41, %v1012_v42 }
 0x2e2   :  { %v876_v35 = vld [vmem:[#allocation8 + $0xbb8] sm:$0xff] }
 0x2e3   :  { %4196 = vmatpush1.bf16.msra.mxu0 %v9150_v9  ;;  %v1000_v62 = vld [vmem:[#allocation8 + $0xf98] sm:$0xff]  ;;  %v9231_v39 = vcombine.high %v872_v59, %v876_v35 }
 0x2e4   :  { %4237 = vmatpush1.bf16.msra.mxu1 %v9278_v11  ;;  %4197 = vmatprep.subr.bf16.mxu0 %v9143_v13  ;;  %v1004_v63 = vld [vmem:[#allocation8 + $0xfb8] sm:$0xff]  ;;  %v10631_v11 = vadd.f32 %v10626_v55, %v3898_v0  ;;  %v9230_v13 = vcombine.low %v872_v59, %v876_v35 }
 0x2e5   :  { %4238 = vmatprep.subr.bf16.mxu1 %v9271_v14  ;;  %v9359_v4 = vcombine.high %v1000_v62, %v1004_v63  ;;  %v864_v6 = vld [vmem:[#allocation8 + $0xb58] sm:$0xff]  ;;  %v9358_v49 = vcombine.low %v1000_v62, %v1004_v63 }
 0x2e6   :  { %v868_v54 = vld [vmem:[#allocation8 + $0xb78] sm:$0xff] }
 0x2e7   :  { %4198 = vmatpush1.bf16.msra.mxu0 %v9142_v18  ;;  %v992_v7 = vld [vmem:[#allocation8 + $0xf58] sm:$0xff]  ;;  %v9223_v30 = vcombine.high %v864_v6, %v868_v54 }
 0x2e8   :  { %4239 = vmatpush1.bf16.msra.mxu1 %v9270_v34  ;;  %4199 = vmatprep.subr.bf16.mxu0 %v9135_v36  ;;  %v996_v9 = vld [vmem:[#allocation8 + $0xf78] sm:$0xff]  ;;  %v4282_v34 = vmul.f32 0.70710677, %v10631_v11  ;;  %v9222_v36 = vcombine.low %v864_v6, %v868_v54 }
 0x2e9   :  { %4240 = vmatprep.subr.bf16.mxu1 %v9263_v38  ;;  %v9351_v14 = vcombine.high %v992_v7, %v996_v9  ;;  %v856_v15 = vld [vmem:[#allocation8 + $0xb18] sm:$0xff]  ;;  %v9350_v55 = vcombine.low %v992_v7, %v996_v9  ;;  %v4375_v7 = vld [vmem:[#allocation11 + $0x1c0] sm:$0xff] }
 0x2ea   :  { %v860_v16 = vld [vmem:[#allocation8 + $0xb38] sm:$0xff]  ;;  %10130 = verf.f32 %v4282_v34  ;;  %v4379_v9 = vld [vmem:[#allocation11 + $0x1e0] sm:$0xff] }
 0x2eb   :  { %4200 = vmatpush1.bf16.msra.mxu0 %v9134_v23  ;;  %v984_v43 = vld [vmem:[#allocation8 + $0xf18] sm:$0xff]  ;;  %v9215_v38 = vcombine.high %v856_v15, %v860_v16 }
 0x2ec   :  { %4241 = vmatpush1.bf16.msra.mxu1 %v9262_v24  ;;  %4201 = vmatprep.subr.bf16.mxu0 %v9127_v25  ;;  %v988_v18 = vld [vmem:[#allocation8 + $0xf38] sm:$0xff]  ;;  %v9214_v24 = vcombine.low %v856_v15, %v860_v16  ;;  %v4272_v16 = vmul.f32 0.5, %v10603_v52  ;;  %v4495_v52 = vld [vmem:[#allocation11 + $0x580] sm:$0xff] }
 0x2ed   :  { %4242 = vmatprep.subr.bf16.mxu1 %v9255_v26  ;;  %v9343_v40 = vcombine.high %v984_v43, %v988_v18  ;;  %v848_v20 = vld [vmem:[#allocation8 + $0xad8] sm:$0xff]  ;;  %v9342_v25 = vcombine.low %v984_v43, %v988_v18  ;;  %v9425_v43 = vcombine.high %v4375_v7, %v4379_v9  ;;  %v4274_v18 = vmul.f32 0.5, %v10631_v11 }
 0x2ee   :  { %v852_v21 = vld [vmem:[#allocation8 + $0xaf8] sm:$0xff] }
 0x2ef   :  { %4202 = vmatpush1.bf16.msra.mxu0 %v9126_v31  ;;  %v976_v45 = vld [vmem:[#allocation8 + $0xed8] sm:$0xff]  ;;  %v9207_v26 = vcombine.high %v848_v20, %v852_v21 }
 0x2f0   :  { %4243 = vmatpush1.bf16.msra.mxu1 %v9254_v10  ;;  %4203 = vmatprep.subr.bf16.mxu0 %v9119_v32  ;;  %v980_v23 = vld [vmem:[#allocation8 + $0xef8] sm:$0xff]  ;;  %v9206_v10 = vcombine.low %v848_v20, %v852_v21  ;;  %v10637_v20 = vld [vmem:[#allocation10] sm:$0xff] }
 0x2f1   :  { %4244 = vmatprep.subr.bf16.mxu1 %v9247_v37  ;;  %v9335_v27 = vcombine.high %v976_v45, %v980_v23  ;;  %v840_v28 = vld [vmem:[#allocation8 + $0xa98] sm:$0xff]  ;;  %v9334_v32 = vcombine.low %v976_v45, %v980_v23  ;;  %v1034_v21 = vrot.slane %v10637_v20, %v10550_v2  ;;  %v9424_v45 = vcombine.low %v4375_v7, %v4379_v9  ;;  %v4499_v23 = vld [vmem:[#allocation11 + $0x5a0] sm:$0xff] }
 0x2f2   :  { %v844_v8 = vld [vmem:[#allocation8 + $0xab8] sm:$0xff]  ;;  %v4471_v7 = vld [vmem:[#allocation11 + $0x4c0] sm:$0xff] }
 0x2f3   :  { %4204 = vmatpush1.bf16.msra.mxu0 %v9118_v51  ;;  %v968_v29 = vld [vmem:[#allocation8 + $0xe98] sm:$0xff]  ;;  %v9199_v37 = vcombine.high %v840_v28, %v844_v8  ;;  %v4475_v9 = vld [vmem:[#allocation11 + $0x4e0] sm:$0xff] }
 0x2f4   :  { %4245 = vmatpush1.bf16.msra.mxu1 %v9246_v22  ;;  %4205 = vmatprep.subr.bf16.mxu0 %v9239_v56  ;;  %v972_v31 = vld [vmem:[#allocation8 + $0xeb8] sm:$0xff]  ;;  %v9198_v22 = vcombine.low %v840_v28, %v844_v8  ;;  %v9545_v8 = vcombine.high %v4495_v52, %v4499_v23 }
 0x2f5   :  { %4246 = vmatprep.subr.bf16.mxu1 %v9367_v57  ;;  %v9327_v19 = vcombine.high %v968_v29, %v972_v31  ;;  %v832_v12 = vld [vmem:[#allocation8 + $0xa58] sm:$0xff]  ;;  %v9326_v56 = vcombine.low %v968_v29, %v972_v31  ;;  %v4487_v29 = vld [vmem:[#allocation11 + $0x540] sm:$0xff] }
 0x2f6   :  { %v836_v41 = vld [vmem:[#allocation8 + $0xa78] sm:$0xff]  ;;  %v4491_v31 = vld [vmem:[#allocation11 + $0x560] sm:$0xff] }
 0x2f7   :  { %4206 = vmatpush2.bf16.msra.mxu0 %v9238_v53  ;;  %v960_v42 = vld [vmem:[#allocation8 + $0xe58] sm:$0xff]  ;;  %v9191_v57 = vcombine.high %v832_v12, %v836_v41  ;;  %v10129_v53 = vpop.eup %10128 }
 0x2f8   :  { %4247 = vmatpush2.bf16.msra.mxu1 %v9366_v3  ;;  %4207 = vmatprep.subr.bf16.mxu0 %v9231_v39  ;;  %v964_v51 = vld [vmem:[#allocation8 + $0xe78] sm:$0xff]  ;;  %v9190_v3 = vcombine.low %v832_v12, %v836_v41  ;;  %v10131_v39 = vpop.eup %10130  ;;  %v9544_v41 = vcombine.low %v4495_v52, %v4499_v23 }
 0x2f9   :  { %4248 = vmatprep.subr.bf16.mxu1 %v9359_v4  ;;  %v9319_v59 = vcombine.high %v960_v42, %v964_v51  ;;  %v824_v35 = vld [vmem:[#allocation8 + $0xa18] sm:$0xff]  ;;  %v9318_v4 = vcombine.low %v960_v42, %v964_v51 }
 0x2fa   :  { %v828_v62 = vld [vmem:[#allocation8 + $0xa38] sm:$0xff] }
 0x2fb   :  { %4208 = vmatpush2.bf16.msra.mxu0 %v9230_v13  ;;  %v952_v63 = vld [vmem:[#allocation8 + $0xe18] sm:$0xff]  ;;  %v9183_v6 = vcombine.high %v824_v35, %v828_v62  ;;  %v4296_v13 = vadd.f32 1.0, %v10129_v53  ;;  %v9182_v15 = vcombine.low %v824_v35, %v828_v62  ;;  %v4483_v35 = vld [vmem:[#allocation11 + $0x520] sm:$0xff]  ;;  %v9536_v53 = vcombine.low %v4487_v29, %v4491_v31 }
 0x2fc   :  { %4249 = vmatpush2.bf16.msra.mxu1 %v9358_v49  ;;  %4209 = vmatprep.subr.bf16.mxu0 %v9223_v30  ;;  %v956_v0 = vld [vmem:[#allocation8 + $0xe38] sm:$0xff]  ;;  %v4503_v49 = vld [vmem:[#allocation11 + $0x5c0] sm:$0xff] }
 0x2fd   :  { %4250 = vmatprep.subr.bf16.mxu1 %v9351_v14  ;;  %v9311_v54 = vcombine.high %v952_v63, %v956_v0  ;;  %v4507_v30 = vld [vmem:[#allocation11 + $0x5e0] sm:$0xff]  ;;  %v4298_v14 = vadd.f32 1.0, %v10131_v39  ;;  %v9310_v17 = vcombine.low %v952_v63, %v956_v0 }
 0x2fe   :  { %v9553_v34 = vcombine.high %v4503_v49, %v4507_v30 }
 0x2ff   :  { %4210 = vmatpush2.bf16.msra.mxu0 %v9222_v36  ;;  %v4304_v36 = vmul.f32 %v4296_v13, %v4272_v16  ;;  %v4339_v16 = vld [vmem:[#allocation11 + $0xa0] sm:$0xff] }
 0x300   :  { %4251 = vmatpush2.bf16.msra.mxu1 %v9350_v55  ;;  %4211 = vmatprep.subr.bf16.mxu0 %v9215_v38  ;;  %v4367_v55 = vld [vmem:[#allocation11 + $0x180] sm:$0xff] }
 0x301   :  { %4252 = vmatprep.subr.bf16.mxu1 %v9343_v40  ;;  %v4371_v38 = vld [vmem:[#allocation11 + $0x1a0] sm:$0xff]  ;;  %v4306_v40 = vmul.f32 %v4298_v14, %v4274_v18  ;;  %v9521_v14 = vcombine.high %v4471_v7, %v4475_v9 }
 0x302   :  { %v9417_v11 = vcombine.high %v4367_v55, %v4371_v38 }
 0x303   :  { %4212 = vmatpush2.bf16.msra.mxu0 %v9214_v24  ;;  %v9552_v24 = vcombine.low %v4503_v49, %v4507_v30 }
 0x304   :  { %4253 = vmatpush2.bf16.msra.mxu1 %v9342_v25  ;;  %4213 = vmatprep.subr.bf16.mxu0 %v9207_v26  ;;  %v4359_v25 = vld [vmem:[#allocation11 + $0x140] sm:$0xff] }
 0x305   :  { %4254 = vmatprep.subr.bf16.mxu1 %v9335_v27  ;;  %v4363_v26 = vld [vmem:[#allocation11 + $0x160] sm:$0xff]  ;;  %v10641_v27 = vpack.c.bf16 %v4304_v36, %v4304_v36 }
 0x306   :  { %v9409_v42 = vcombine.high %v4359_v25, %v4363_v26  ;;  %v9408_v63 = vcombine.low %v4359_v25, %v4363_v26  ;;  %v4319_v25 = vld [vmem:[#allocation11] sm:$0xff] }
 0x307   :  { %4214 = vmatpush2.bf16.msra.mxu0 %v9206_v10  ;;  %v10644_v10 = vpack.c.bf16 %v4306_v40, %v4306_v40  ;;  %v4331_v40 = vld [vmem:[#allocation11 + $0x60] sm:$0xff] }
 0x308   :  { %4255 = vmatpush2.bf16.msra.mxu1 %v9334_v32  ;;  %4215 = vmatprep.subr.bf16.mxu0 %v9199_v37  ;;  %v4323_v26 = vld [vmem:[#allocation11 + $0x20] sm:$0xff] }
 0x309   :  { %4256 = vmatprep.subr.bf16.mxu1 %v9327_v19  ;;  %v9416_v19 = vcombine.low %v4367_v55, %v4371_v38  ;;  %v4327_v38 = vld [vmem:[#allocation11 + $0x40] sm:$0xff] }
 0x30b   :  { %4216 = vmatpush2.bf16.msra.mxu0 %v9198_v22  ;;  %v9537_v22 = vcombine.high %v4487_v29, %v4491_v31  ;;  %v9376_v29 = vcombine.low %v4327_v38, %v4331_v40 }
 0x30c   :  { %4257 = vmatpush2.bf16.msra.mxu1 %v9326_v56  ;;  %4217 = vmatprep.subr.bf16.mxu0 %v9191_v57  ;;  %v4351_v56 = vld [vmem:[#allocation11 + $0x100] sm:$0xff] }
 0x30d   :  { %4258 = vmatprep.subr.bf16.mxu1 %v9319_v59  ;;  %v4355_v57 = vld [vmem:[#allocation11 + $0x120] sm:$0xff] }
 0x30e   :  { %v4479_v59 = vld [vmem:[#allocation11 + $0x500] sm:$0xff]  ;;  %v9400_v13 = vcombine.low %v4351_v56, %v4355_v57 }
 0x30f   :  { %4218 = vmatpush2.bf16.msra.mxu0 %v9190_v3  ;;  %v9401_v3 = vcombine.high %v4351_v56, %v4355_v57  ;;  %v9528_v49 = vcombine.low %v4479_v59, %v4483_v35  ;;  %v9368_v56 = vcombine.low %v4319_v25, %v4323_v26 }
 0x310   :  { %4259 = vmatpush2.bf16.msra.mxu1 %v9318_v4  ;;  %4219 = vmatprep.subr.bf16.mxu0 %v9183_v6  ;;  %v9529_v4 = vcombine.high %v4479_v59, %v4483_v35  ;;  %v4343_v6 = vld [vmem:[#allocation11 + $0xc0] sm:$0xff] }
 0x311   :  { %4260 = vmatprep.subr.bf16.mxu1 %v9311_v54  ;;  %v4347_v54 = vld [vmem:[#allocation11 + $0xe0] sm:$0xff] }
 0x312   :  { %v9393_v30 = vcombine.high %v4343_v6, %v4347_v54  ;;  %v9392_v18 = vcombine.low %v4343_v6, %v4347_v54  ;;  %v4431_v35 = vld [vmem:[#allocation11 + $0x380] sm:$0xff] }
 0x313   :  { %4220 = vmatpush2.bf16.msra.mxu0 %v9182_v15  ;;  %v4335_v15 = vld [vmem:[#allocation11 + $0x80] sm:$0xff] }
 0x314   :  { %4261 = vmatpush2.bf16.msra.mxu1 %v9310_v17  ;;  %7433 = vmatprep.subr.bf16.mxu0 %v9425_v43  ;;  %v4463_v17 = vld [vmem:[#allocation11 + $0x480] sm:$0xff]  ;;  %v9385_v36 = vcombine.high %v4335_v15, %v4339_v16  ;;  %v9384_v52 = vcombine.low %v4335_v15, %v4339_v16  ;;  %v4281_v15 = vmul.f32 0.70710677, %v10623_v50 }
 0x315   :  { %7474 = vmatprep.subr.bf16.mxu1 %v9553_v34  ;;  %v4467_v43 = vld [vmem:[#allocation11 + $0x4a0] sm:$0xff]  ;;  %v9520_v34 = vcombine.low %v4471_v7, %v4475_v9 }
 0x316   :  { %v3977_v28 = vpop.f32.mrf.mxu0  ;;  %4222 = vmatmul.mubr.bf16.vlgmr.msra.gmra.mxu0 %v10569_v58  ;;  %v9513_v55 = vcombine.high %v4463_v17, %v4467_v43  ;;  %v9512_v23 = vcombine.low %v4463_v17, %v4467_v43  ;;  %v4423_v6 = vld [vmem:[#allocation11 + $0x340] sm:$0xff] }
 0x317   :  { %v3978_v32 = vadd.f32 %v3977_v28, %v1034_v21  ;;  %v4018_v37 = vpop.f32.mrf.mxu1  ;;  %4263 = vmatmul.mubr.bf16.vlgmr.msra.gmra.mxu1 %v10571_v60  ;;  %7434 = vmatpush1.bf16.msra.mxu0 %v9424_v45  ;;  %v4455_v21 = vld [vmem:[#allocation11 + $0x440] sm:$0xff] }
 0x318   :  { %7465 = vmatprep.mubr.bf16.mxu0 %v10641_v27  ;;  %7475 = vmatpush1.bf16.msra.mxu1 %v9552_v24  ;;  %v10648_v12 = vpop.f32.mrf.mxu0  ;;  %v4459_v45 = vld [vmem:[#allocation11 + $0x460] sm:$0xff]  ;;  %v9377_v24 = vcombine.high %v4327_v38, %v4331_v40 }
 0x319   :  { %v10650_v51 = vadd.f32 %v4018_v37, %v3978_v32  ;;  %7506 = vmatprep.mubr.bf16.mxu1 %v10644_v10  ;;  %v10653_v58 = vpop.f32.mrf.mxu1  ;;  %7435 = vmatprep.subr.bf16.mxu0 %v9417_v11  ;;  %v9505_v11 = vcombine.high %v4455_v21, %v4459_v45  ;;  %v4447_v28 = vld [vmem:[#allocation11 + $0x400] sm:$0xff]  ;;  %v9504_v31 = vcombine.low %v4455_v21, %v4459_v45 }
 0x31a   :  { %v3981_v60 = vpop.f32.mrf.mxu0  ;;  %7476 = vmatprep.subr.bf16.mxu1 %v9545_v8  ;;  %v4451_v8 = vld [vmem:[#allocation11 + $0x420] sm:$0xff]  ;;  %v9369_v32 = vcombine.high %v4319_v25, %v4323_v26 }
 0x31b   :  { %v4022_v62 = vpop.f32.mrf.mxu1  ;;  %7436 = vmatpush1.bf16.msra.mxu0 %v9416_v19  ;;  %v9497_v37 = vcombine.high %v4447_v28, %v4451_v8  ;;  %v4439_v19 = vld [vmem:[#allocation11 + $0x3c0] sm:$0xff]  ;;  %v9496_v57 = vcombine.low %v4447_v28, %v4451_v8 }
 0x31c   :  { %7477 = vmatpush1.bf16.msra.mxu1 %v9544_v41  ;;  %v3982_v0 = vpop.f32.mrf.mxu0  ;;  %7437 = vmatprep.subr.bf16.mxu0 %v9409_v42  ;;  %v4443_v41 = vld [vmem:[#allocation11 + $0x3e0] sm:$0xff] }
 0x31d   :  { %v4023_v39 = vpop.f32.mrf.mxu1  ;;  %7478 = vmatprep.subr.bf16.mxu1 %v9537_v22  ;;  %v4567_v42 = vld [vmem:[#allocation11 + $0x7c0] sm:$0xff]  ;;  %v9489_v60 = vcombine.high %v4439_v19, %v4443_v41 }
 0x31e   :  { %v4571_v22 = vld [vmem:[#allocation11 + $0x7e0] sm:$0xff] }
 0x31f   :  { %7438 = vmatpush1.bf16.msra.mxu0 %v9408_v63  ;;  %v9617_v59 = vcombine.high %v4567_v42, %v4571_v22  ;;  %v4435_v62 = vld [vmem:[#allocation11 + $0x3a0] sm:$0xff] }
 0x320   :  { %7479 = vmatpush1.bf16.msra.mxu1 %v9536_v53  ;;  %7439 = vmatprep.subr.bf16.mxu0 %v9401_v3  ;;  %v4559_v63 = vld [vmem:[#allocation11 + $0x780] sm:$0xff]  ;;  %v9488_v53 = vcombine.low %v4439_v19, %v4443_v41  ;;  %v9616_v3 = vcombine.low %v4567_v42, %v4571_v22  ;;  %v9481_v39 = vcombine.high %v4431_v35, %v4435_v62 }
 0x321   :  { %7480 = vmatprep.subr.bf16.mxu1 %v9529_v4  ;;  %v4563_v0 = vld [vmem:[#allocation11 + $0x7a0] sm:$0xff] }
 0x322   :  { %v9609_v4 = vcombine.high %v4559_v63, %v4563_v0  ;;  %v4427_v54 = vld [vmem:[#allocation11 + $0x360] sm:$0xff] }
 0x323   :  { %7440 = vmatpush1.bf16.msra.mxu0 %v9400_v13  ;;  %v4551_v7 = vld [vmem:[#allocation11 + $0x740] sm:$0xff]  ;;  %v9480_v13 = vcombine.low %v4431_v35, %v4435_v62 }
 0x324   :  { %7481 = vmatpush1.bf16.msra.mxu1 %v9528_v49  ;;  %7441 = vmatprep.subr.bf16.mxu0 %v9393_v30  ;;  %v4555_v9 = vld [vmem:[#allocation11 + $0x760] sm:$0xff]  ;;  %v4279_v49 = vmul.f32 0.70710677, %v10599_v33  ;;  %v9608_v30 = vcombine.low %v4559_v63, %v4563_v0 }
 0x325   :  { %7482 = vmatprep.subr.bf16.mxu1 %v9521_v14  ;;  %v9473_v14 = vcombine.high %v4423_v6, %v4427_v54  ;;  %v9601_v16 = vcombine.high %v4551_v7, %v4555_v9  ;;  %v4415_v17 = vld [vmem:[#allocation11 + $0x300] sm:$0xff] }
 0x326   :  { %v4419_v43 = vld [vmem:[#allocation11 + $0x320] sm:$0xff]  ;;  %10132 = verf.f32 %v4279_v49 }
 0x327   :  { %7442 = vmatpush1.bf16.msra.mxu0 %v9392_v18  ;;  %v4543_v18 = vld [vmem:[#allocation11 + $0x700] sm:$0xff]  ;;  %v9465_v38 = vcombine.high %v4415_v17, %v4419_v43  ;;  %10134 = verf.f32 %v4281_v15  ;;  %v4271_v15 = vmul.f32 0.5, %v10599_v33 }
 0x328   :  { %7483 = vmatpush1.bf16.msra.mxu1 %v9520_v34  ;;  %7443 = vmatprep.subr.bf16.mxu0 %v9385_v36  ;;  %v4547_v34 = vld [vmem:[#allocation11 + $0x720] sm:$0xff]  ;;  %v9472_v36 = vcombine.low %v4423_v6, %v4427_v54 }
 0x329   :  { %7484 = vmatprep.subr.bf16.mxu1 %v9513_v55  ;;  %v9600_v55 = vcombine.low %v4551_v7, %v4555_v9  ;;  %v9593_v40 = vcombine.high %v4543_v18, %v4547_v34  ;;  %v4407_v21 = vld [vmem:[#allocation11 + $0x2c0] sm:$0xff] }
 0x32a   :  { %v4411_v45 = vld [vmem:[#allocation11 + $0x2e0] sm:$0xff] }
 0x32b   :  { %7444 = vmatpush1.bf16.msra.mxu0 %v9384_v52  ;;  %v4535_v52 = vld [vmem:[#allocation11 + $0x6c0] sm:$0xff]  ;;  %v9457_v25 = vcombine.high %v4407_v21, %v4411_v45 }
 0x32c   :  { %7485 = vmatpush1.bf16.msra.mxu1 %v9512_v23  ;;  %7445 = vmatprep.subr.bf16.mxu0 %v9377_v24  ;;  %v4539_v23 = vld [vmem:[#allocation11 + $0x6e0] sm:$0xff]  ;;  %v9464_v24 = vcombine.low %v4415_v17, %v4419_v43  ;;  %v4273_v43 = vmul.f32 0.5, %v10623_v50 }
 0x32d   :  { %7486 = vmatprep.subr.bf16.mxu1 %v9505_v11  ;;  %v9592_v11 = vcombine.low %v4543_v18, %v4547_v34  ;;  %v9585_v26 = vcombine.high %v4535_v52, %v4539_v23  ;;  %v4399_v28 = vld [vmem:[#allocation11 + $0x280] sm:$0xff]  ;;  %v1038_v18 = vrot.slane %v10637_v20, %v10512_v61 }
 0x32e   :  { %v4403_v8 = vld [vmem:[#allocation11 + $0x2a0] sm:$0xff] }
 0x32f   :  { %7446 = vmatpush1.bf16.msra.mxu0 %v9376_v29  ;;  %v4527_v29 = vld [vmem:[#allocation11 + $0x680] sm:$0xff]  ;;  %v9449_v19 = vcombine.high %v4399_v28, %v4403_v8 }
 0x330   :  { %7487 = vmatpush1.bf16.msra.mxu1 %v9504_v31  ;;  %7447 = vmatprep.subr.bf16.mxu0 %v9369_v32  ;;  %v4531_v31 = vld [vmem:[#allocation11 + $0x6a0] sm:$0xff]  ;;  %v9456_v32 = vcombine.low %v4407_v21, %v4411_v45 }
 0x331   :  { %7488 = vmatprep.subr.bf16.mxu1 %v9497_v37  ;;  %v9584_v37 = vcombine.low %v4535_v52, %v4539_v23  ;;  %v9577_v41 = vcombine.high %v4527_v29, %v4531_v31  ;;  %v4391_v42 = vld [vmem:[#allocation11 + $0x240] sm:$0xff] }
 0x332   :  { %v4395_v22 = vld [vmem:[#allocation11 + $0x260] sm:$0xff] }
 0x333   :  { %7448 = vmatpush1.bf16.msra.mxu0 %v9368_v56  ;;  %v4519_v56 = vld [vmem:[#allocation11 + $0x640] sm:$0xff]  ;;  %v9441_v35 = vcombine.high %v4391_v42, %v4395_v22  ;;  %v10133_v62 = vpop.eup %10132  ;;  %v9440_v6 = vcombine.low %v4391_v42, %v4395_v22 }
 0x334   :  { %7489 = vmatpush1.bf16.msra.mxu1 %v9496_v57  ;;  %7449 = vmatprep.subr.bf16.mxu0 %v9489_v60  ;;  %v4523_v57 = vld [vmem:[#allocation11 + $0x660] sm:$0xff]  ;;  %v9448_v60 = vcombine.low %v4399_v28, %v4403_v8  ;;  %v4295_v54 = vadd.f32 1.0, %v10133_v62 }
 0x335   :  { %7490 = vmatprep.subr.bf16.mxu1 %v9617_v59  ;;  %v9576_v59 = vcombine.low %v4527_v29, %v4531_v31  ;;  %v9569_v63 = vcombine.high %v4519_v56, %v4523_v57  ;;  %v4383_v0 = vld [vmem:[#allocation11 + $0x200] sm:$0xff]  ;;  %v9568_v7 = vcombine.low %v4519_v56, %v4523_v57 }
 0x336   :  { %v4763_v17 = vld [vmem:[#allocation11 + $0xde0] sm:$0xff] }
 0x337   :  { %7450 = vmatpush2.bf16.msra.mxu0 %v9488_v53  ;;  %v4387_v53 = vld [vmem:[#allocation11 + $0x220] sm:$0xff] }
 0x338   :  { %7491 = vmatpush2.bf16.msra.mxu1 %v9616_v3  ;;  %7451 = vmatprep.subr.bf16.mxu0 %v9481_v39  ;;  %v10135_v3 = vpop.eup %10134  ;;  %v4511_v39 = vld [vmem:[#allocation11 + $0x600] sm:$0xff]  ;;  %v9433_v9 = vcombine.high %v4383_v0, %v4387_v53  ;;  %v9432_v34 = vcombine.low %v4383_v0, %v4387_v53 }
 0x339   :  { %7492 = vmatprep.subr.bf16.mxu1 %v9609_v4  ;;  %v4515_v4 = vld [vmem:[#allocation11 + $0x620] sm:$0xff] }
 0x33a   :  { %v9561_v49 = vcombine.high %v4511_v39, %v4515_v4  ;;  %v4623_v21 = vld [vmem:[#allocation11 + $0x980] sm:$0xff] }
 0x33b   :  { %7452 = vmatpush2.bf16.msra.mxu0 %v9480_v13  ;;  %v4297_v13 = vadd.f32 1.0, %v10135_v3  ;;  %v4627_v45 = vld [vmem:[#allocation11 + $0x9a0] sm:$0xff] }
 0x33c   :  { %7493 = vmatpush2.bf16.msra.mxu1 %v9608_v30  ;;  %7453 = vmatprep.subr.bf16.mxu0 %v9473_v14  ;;  %v4631_v30 = vld [vmem:[#allocation11 + $0x9c0] sm:$0xff]  ;;  %v9673_v20 = vcombine.high %v4623_v21, %v4627_v45 }
 0x33d   :  { %7494 = vmatprep.subr.bf16.mxu1 %v9601_v16  ;;  %v4635_v14 = vld [vmem:[#allocation11 + $0x9e0] sm:$0xff] }
 0x33e   :  { %v4759_v16 = vld [vmem:[#allocation11 + $0xdc0] sm:$0xff]  ;;  %v9680_v50 = vcombine.low %v4631_v30, %v4635_v14 }
 0x33f   :  { %7454 = vmatpush2.bf16.msra.mxu0 %v9472_v36  ;;  %v4303_v36 = vmul.f32 %v4295_v54, %v4271_v15  ;;  %v9809_v52 = vcombine.high %v4759_v16, %v4763_v17  ;;  %v4751_v33 = vld [vmem:[#allocation11 + $0xd80] sm:$0xff] }
 0x340   :  { %7495 = vmatpush2.bf16.msra.mxu1 %v9600_v55  ;;  %7455 = vmatprep.subr.bf16.mxu0 %v9465_v38  ;;  %v9560_v55 = vcombine.low %v4511_v39, %v4515_v4  ;;  %v9681_v38 = vcombine.high %v4631_v30, %v4635_v14  ;;  %v4755_v23 = vld [vmem:[#allocation11 + $0xda0] sm:$0xff] }
 0x341   :  { %7496 = vmatprep.subr.bf16.mxu1 %v9593_v40  ;;  %v4305_v40 = vmul.f32 %v4297_v13, %v4273_v43  ;;  %v4615_v28 = vld [vmem:[#allocation11 + $0x940] sm:$0xff]  ;;  %v9801_v29 = vcombine.high %v4751_v33, %v4755_v23  ;;  %v9800_v56 = vcombine.low %v4751_v33, %v4755_v23 }
 0x342   :  { %v4619_v8 = vld [vmem:[#allocation11 + $0x960] sm:$0xff] }
 0x343   :  { %7456 = vmatpush2.bf16.msra.mxu0 %v9464_v24  ;;  %v3980_v24 = vadd.f32 %v10648_v12, %v1038_v18  ;;  %v4747_v12 = vld [vmem:[#allocation11 + $0xd60] sm:$0xff]  ;;  %v9665_v22 = vcombine.high %v4615_v28, %v4619_v8  ;;  %v9664_v39 = vcombine.low %v4615_v28, %v4619_v8 }
 0x344   :  { %7497 = vmatpush2.bf16.msra.mxu1 %v9592_v11  ;;  %7457 = vmatprep.subr.bf16.mxu0 %v9457_v25  ;;  %v10662_v11 = vpack.c.bf16 %v4303_v36, %v4303_v36  ;;  %v9808_v25 = vcombine.low %v4759_v16, %v4763_v17  ;;  %v4735_v0 = vld [vmem:[#allocation11 + $0xd00] sm:$0xff] }
 0x345   :  { %7498 = vmatprep.subr.bf16.mxu1 %v9585_v26  ;;  %v10664_v26 = vpack.c.bf16 %v4305_v40, %v4305_v40  ;;  %v4599_v13 = vld [vmem:[#allocation11 + $0x8c0] sm:$0xff] }
 0x346   :  { %v4727_v14 = vld [vmem:[#allocation11 + $0xcc0] sm:$0xff] }
 0x347   :  { %7458 = vmatpush2.bf16.msra.mxu0 %v9456_v32  ;;  %v4743_v32 = vld [vmem:[#allocation11 + $0xd40] sm:$0xff] }
 0x348   :  { %7499 = vmatpush2.bf16.msra.mxu1 %v9584_v37  ;;  %7459 = vmatprep.subr.bf16.mxu0 %v9449_v19  ;;  %v4021_v37 = vadd.f32 %v10653_v58, %v3980_v24  ;;  %v9793_v62 = vcombine.high %v4743_v32, %v4747_v12  ;;  %v4739_v58 = vld [vmem:[#allocation11 + $0xd20] sm:$0xff]  ;;  %v9792_v54 = vcombine.low %v4743_v32, %v4747_v12 }
 0x349   :  { %7500 = vmatprep.subr.bf16.mxu1 %v9577_v41  ;;  %v9672_v41 = vcombine.low %v4623_v21, %v4627_v45  ;;  %v9785_v30 = vcombine.high %v4735_v0, %v4739_v58  ;;  %v4731_v15 = vld [vmem:[#allocation11 + $0xce0] sm:$0xff]  ;;  %v9784_v43 = vcombine.low %v4735_v0, %v4739_v58 }
 0x34a   :  { %v4591_v18 = vld [vmem:[#allocation11 + $0x880] sm:$0xff]  ;;  %v9777_v36 = vcombine.high %v4727_v14, %v4731_v15  ;;  %v9776_v45 = vcombine.low %v4727_v14, %v4731_v15  ;;  %v10679_v14 = vld [vmem:[#allocation11 + $0x5e8] sm:$0xff] }
 0x34b   :  { %7460 = vmatpush2.bf16.msra.mxu0 %v9448_v60  ;;  %v4587_v33 = vld [vmem:[#allocation11 + $0x860] sm:$0xff] }
 0x34c   :  { %7501 = vmatpush2.bf16.msra.mxu1 %v9576_v59  ;;  %7461 = vmatprep.subr.bf16.mxu0 %v9441_v35  ;;  %v4607_v59 = vld [vmem:[#allocation11 + $0x900] sm:$0xff] }
 0x34d   :  { %7502 = vmatprep.subr.bf16.mxu1 %v9569_v63  ;;  %v4611_v35 = vld [vmem:[#allocation11 + $0x920] sm:$0xff] }
 0x34e   :  { %v9656_v16 = vcombine.low %v4607_v59, %v4611_v35  ;;  %v4711_v24 = vld [vmem:[#allocation11 + $0xc40] sm:$0xff] }
 0x34f   :  { %7462 = vmatpush2.bf16.msra.mxu0 %v9440_v6  ;;  %v9657_v6 = vcombine.high %v4607_v59, %v4611_v35  ;;  %v4575_v8 = vld [vmem:[#allocation11 + $0x800] sm:$0xff] }
 0x350   :  { %7503 = vmatpush2.bf16.msra.mxu1 %v9568_v7  ;;  %7463 = vmatprep.subr.bf16.mxu0 %v9433_v9  ;;  %v4703_v12 = vld [vmem:[#allocation11 + $0xc00] sm:$0xff] }
 0x351   :  { %7504 = vmatprep.subr.bf16.mxu1 %v9561_v49  ;;  %v4603_v49 = vld [vmem:[#allocation11 + $0x8e0] sm:$0xff] }
 0x352   :  { %v9649_v17 = vcombine.high %v4599_v13, %v4603_v49  ;;  %v9648_v40 = vcombine.low %v4599_v13, %v4603_v49  ;;  %v4695_v59 = vld [vmem:[#allocation11 + $0xbc0] sm:$0xff] }
 0x353   :  { %7464 = vmatpush2.bf16.msra.mxu0 %v9432_v34  ;;  %v4595_v34 = vld [vmem:[#allocation11 + $0x8a0] sm:$0xff] }
 0x354   :  { %7505 = vmatpush2.bf16.msra.mxu1 %v9560_v55  ;;  %7515 = vmatprep.subr.bf16.mxu0 %v9681_v38  ;;  %v4719_v55 = vld [vmem:[#allocation11 + $0xc80] sm:$0xff]  ;;  %v9641_v21 = vcombine.high %v4591_v18, %v4595_v34 }
 0x355   :  { %7556 = vmatprep.subr.bf16.mxu1 %v9809_v52  ;;  %v4723_v38 = vld [vmem:[#allocation11 + $0xca0] sm:$0xff] }
 0x356   :  { %v10666_v31 = vpop.f32.mrf.mxu0  ;;  %7466 = vmatmul.mubr.bf16.vlgmr.msra.gmra.mxu0 %v10662_v11  ;;  %v4583_v52 = vld [vmem:[#allocation11 + $0x840] sm:$0xff]  ;;  %v9769_v23 = vcombine.high %v4719_v55, %v4723_v38  ;;  %v9768_v28 = vcombine.low %v4719_v55, %v4723_v38 }
 0x357   :  { %v10670_v19 = vpop.f32.mrf.mxu1  ;;  %7507 = vmatmul.mubr.bf16.vlgmr.msra.gmra.mxu1 %v10664_v26  ;;  %7516 = vmatpush1.bf16.msra.mxu0 %v9680_v50  ;;  %v4715_v50 = vld [vmem:[#allocation11 + $0xc60] sm:$0xff] }
 0x358   :  { %v4061_v42 = vpop.f32.mrf.mxu0  ;;  %7517 = vmatprep.subr.bf16.mxu0 %v9673_v20  ;;  %7557 = vmatpush1.bf16.msra.mxu1 %v9808_v25  ;;  %v9640_v20 = vcombine.low %v4591_v18, %v4595_v34  ;;  %v9633_v25 = vcombine.high %v4583_v52, %v4587_v33  ;;  %v9761_v32 = vcombine.high %v4711_v24, %v4715_v50  ;;  %v4699_v35 = vld [vmem:[#allocation11 + $0xbe0] sm:$0xff] }
 0x359   :  { %v4062_v57 = vadd.f32 %v4061_v42, %v4021_v37  ;;  %v4102_v60 = vpop.f32.mrf.mxu1  ;;  %7558 = vmatprep.subr.bf16.mxu1 %v9801_v29  ;;  %v4579_v29 = vld [vmem:[#allocation11 + $0x820] sm:$0xff] }
 0x35a   :  { %v4063_v63 = vpop.f32.mrf.mxu0  ;;  %v4707_v37 = vld [vmem:[#allocation11 + $0xc20] sm:$0xff] }
 0x35b   :  { %v4103_v53 = vadd.f32 %v4102_v60, %v4062_v57  ;;  %v4104_v3 = vpop.f32.mrf.mxu1  ;;  %7518 = vmatpush1.bf16.msra.mxu0 %v9672_v41  ;;  %v9632_v41 = vcombine.low %v4583_v52, %v4587_v33  ;;  %v4823_v63 = vld [vmem:[#allocation11 + $0xfc0] sm:$0xff] }
 0x35c   :  { %v4064_v4 = vpop.f32.mrf.mxu0  ;;  %7519 = vmatprep.subr.bf16.mxu0 %v9665_v22  ;;  %7559 = vmatpush1.bf16.msra.mxu1 %v9800_v56  ;;  %v9625_v22 = vcombine.high %v4575_v8, %v4579_v29  ;;  %v9760_v56 = vcombine.low %v4711_v24, %v4715_v50  ;;  %v4827_v0 = vld [vmem:[#allocation11 + $0xfe0] sm:$0xff]  ;;  %v9624_v3 = vcombine.low %v4575_v8, %v4579_v29 }
 0x35d   :  { %v4284_v7 = vmul.f32 0.70710677, %v4103_v53  ;;  %v4105_v9 = vpop.f32.mrf.mxu1  ;;  %7560 = vmatprep.subr.bf16.mxu1 %v9793_v62  ;;  %v4276_v57 = vmul.f32 0.5, %v4103_v53  ;;  %v9753_v62 = vcombine.high %v4703_v12, %v4707_v37  ;;  %v9745_v4 = vcombine.high %v4695_v59, %v4699_v35  ;;  %v4687_v53 = vld [vmem:[#allocation11 + $0xb80] sm:$0xff] }
 0x35e   :  { %v9873_v9 = vcombine.high %v4823_v63, %v4827_v0  ;;  %v4815_v13 = vld [vmem:[#allocation11 + $0xf80] sm:$0xff] }
 0x35f   :  { %10136 = verf.f32 %v4284_v7  ;;  %7520 = vmatpush1.bf16.msra.mxu0 %v9664_v39  ;;  %v4060_v39 = vadd.f32 %v10666_v31, %v10650_v51  ;;  %v4691_v7 = vld [vmem:[#allocation11 + $0xba0] sm:$0xff]  ;;  %v9744_v51 = vcombine.low %v4695_v59, %v4699_v35 }
 0x360   :  { %7521 = vmatprep.subr.bf16.mxu0 %v9657_v6  ;;  %7561 = vmatpush1.bf16.msra.mxu1 %v9792_v54  ;;  %v9752_v6 = vcombine.low %v4703_v12, %v4707_v37  ;;  %v4819_v49 = vld [vmem:[#allocation11 + $0xfa0] sm:$0xff]  ;;  %v9736_v38 = vcombine.low %v4687_v53, %v4691_v7 }
 0x361   :  { %7562 = vmatprep.subr.bf16.mxu1 %v9785_v30  ;;  %v10677_v30 = vld [vmem:[#allocation11 + $0x5c8] sm:$0xff]  ;;  %v10685_v15 = vadd.f32 %v10670_v19, %v4060_v39  ;;  %v4683_v18 = vld [vmem:[#allocation11 + $0xb60] sm:$0xff]  ;;  %v9865_v34 = vcombine.high %v4815_v13, %v4819_v49 }
 0x362   :  { %v9554_v31 = vcombine.low %v10677_v30, %v10679_v14  ;;  %v4811_v55 = vld [vmem:[#allocation11 + $0xf60] sm:$0xff] }
 0x363   :  { %7522 = vmatpush1.bf16.msra.mxu0 %v9656_v16  ;;  %v9737_v16 = vcombine.high %v4687_v53, %v4691_v7  ;;  %v4671_v19 = vld [vmem:[#allocation11 + $0xb00] sm:$0xff] }
 0x364   :  { %7523 = vmatprep.subr.bf16.mxu0 %v9649_v17  ;;  %7563 = vmatpush1.bf16.msra.mxu1 %v9784_v43  ;;  %v9872_v17 = vcombine.low %v4823_v63, %v4827_v0  ;;  %v4679_v43 = vld [vmem:[#allocation11 + $0xb40] sm:$0xff] }
 0x365   :  { %7564 = vmatprep.subr.bf16.mxu1 %v9777_v36  ;;  %v4807_v36 = vld [vmem:[#allocation11 + $0xf40] sm:$0xff]  ;;  %v9728_v50 = vcombine.low %v4679_v43, %v4683_v18 }
 0x366   :  { %v4675_v52 = vld [vmem:[#allocation11 + $0xb20] sm:$0xff]  ;;  %v9857_v33 = vcombine.high %v4807_v36, %v4811_v55 }
 0x367   :  { %7524 = vmatpush1.bf16.msra.mxu0 %v9648_v40  ;;  %v4283_v40 = vmul.f32 0.70710677, %v10685_v15  ;;  %v4803_v24 = vld [vmem:[#allocation11 + $0xf20] sm:$0xff]  ;;  %v9720_v37 = vcombine.low %v4671_v19, %v4675_v52 }
 0x368   :  { %7525 = vmatprep.subr.bf16.mxu0 %v9641_v21  ;;  %7565 = vmatpush1.bf16.msra.mxu1 %v9776_v45  ;;  %v9729_v21 = vcombine.high %v4679_v43, %v4683_v18  ;;  %v9864_v45 = vcombine.low %v4815_v13, %v4819_v49  ;;  %v4667_v8 = vld [vmem:[#allocation11 + $0xae0] sm:$0xff] }
 0x369   :  { %7566 = vmatprep.subr.bf16.mxu1 %v9769_v23  ;;  %v4799_v23 = vld [vmem:[#allocation11 + $0xf00] sm:$0xff]  ;;  %10138 = verf.f32 %v4283_v40 }
 0x36a   :  { %v9849_v29 = vcombine.high %v4799_v23, %v4803_v24  ;;  %v4795_v12 = vld [vmem:[#allocation11 + $0xee0] sm:$0xff] }
 0x36b   :  { %7526 = vmatpush1.bf16.msra.mxu0 %v9640_v20  ;;  %v9721_v20 = vcombine.high %v4671_v19, %v4675_v52  ;;  %v4787_v59 = vld [vmem:[#allocation11 + $0xea0] sm:$0xff] }
 0x36c   :  { %v10137_v42 = vpop.eup %10136  ;;  %7527 = vmatprep.subr.bf16.mxu0 %v9633_v25  ;;  %7567 = vmatpush1.bf16.msra.mxu1 %v9768_v28  ;;  %v9856_v25 = vcombine.low %v4807_v36, %v4811_v55  ;;  %v4663_v28 = vld [vmem:[#allocation11 + $0xac0] sm:$0xff]  ;;  %v4376_v55 = vld [vmem:[#allocation11 + $0x1c8] sm:$0xff] }
 0x36d   :  { %v4300_v60 = vadd.f32 1.0, %v10137_v42  ;;  %7568 = vmatprep.subr.bf16.mxu1 %v9761_v32  ;;  %v4791_v32 = vld [vmem:[#allocation11 + $0xec0] sm:$0xff]  ;;  %v9848_v42 = vcombine.low %v4799_v23, %v4803_v24  ;;  %v9712_v35 = vcombine.low %v4663_v28, %v4667_v8  ;;  %v4368_v23 = vld [vmem:[#allocation11 + $0x188] sm:$0xff] }
 0x36e   :  { %v9840_v63 = vcombine.low %v4791_v32, %v4795_v12  ;;  %v4647_v0 = vld [vmem:[#allocation11 + $0xa40] sm:$0xff]  ;;  %v4372_v24 = vld [vmem:[#allocation11 + $0x1a8] sm:$0xff] }
 0x36f   :  { %v4308_v58 = vmul.f32 %v4300_v60, %v4276_v57  ;;  %7528 = vmatpush1.bf16.msra.mxu0 %v9632_v41  ;;  %v9713_v41 = vcombine.high %v4663_v28, %v4667_v8  ;;  %v9841_v57 = vcombine.high %v4791_v32, %v4795_v12  ;;  %v4783_v60 = vld [vmem:[#allocation11 + $0xe80] sm:$0xff]  ;;  %v9419_v28 = vcombine.high %v4368_v23, %v4372_v24  ;;  %v4364_v8 = vld [vmem:[#allocation11 + $0x168] sm:$0xff] }
 0x370   :  { %7529 = vmatprep.subr.bf16.mxu0 %v9625_v22  ;;  %7569 = vmatpush1.bf16.msra.mxu1 %v9760_v56  ;;  %v4655_v22 = vld [vmem:[#allocation11 + $0xa80] sm:$0xff]  ;;  %v9832_v7 = vcombine.low %v4783_v60, %v4787_v59  ;;  %v9418_v12 = vcombine.low %v4368_v23, %v4372_v24 }
 0x371   :  { %v10675_v54 = vpack.c.bf16 %v4308_v58, %v4308_v58  ;;  %7570 = vmatprep.subr.bf16.mxu1 %v9753_v62  ;;  %v4659_v56 = vld [vmem:[#allocation11 + $0xaa0] sm:$0xff] }
 0x372   :  { %v9705_v62 = vcombine.high %v4655_v22, %v4659_v56  ;;  %v4651_v58 = vld [vmem:[#allocation11 + $0xa60] sm:$0xff] }
 0x373   :  { %7530 = vmatpush1.bf16.msra.mxu0 %v9624_v3  ;;  %7547 = vmatprep.mubr.bf16.mxu0 %v10675_v54  ;;  %v9833_v3 = vcombine.high %v4783_v60, %v4787_v59  ;;  %v4775_v39 = vld [vmem:[#allocation11 + $0xe40] sm:$0xff]  ;;  %v9697_v53 = vcombine.high %v4647_v0, %v4651_v58  ;;  %v9696_v43 = vcombine.low %v4647_v0, %v4651_v58  ;;  %v4344_v0 = vld [vmem:[#allocation11 + $0xc8] sm:$0xff] }
 0x374   :  { %7531 = vmatprep.subr.bf16.mxu0 %v9745_v4  ;;  %7571 = vmatpush1.bf16.msra.mxu1 %v9752_v6  ;;  %v4779_v4 = vld [vmem:[#allocation11 + $0xe60] sm:$0xff]  ;;  %v9704_v6 = vcombine.low %v4655_v22, %v4659_v56  ;;  %v4352_v22 = vld [vmem:[#allocation11 + $0x108] sm:$0xff] }
 0x375   :  { %7572 = vmatprep.subr.bf16.mxu1 %v9873_v9  ;;  %v4639_v13 = vld [vmem:[#allocation11 + $0xa00] sm:$0xff]  ;;  %v9824_v36 = vcombine.low %v4775_v39, %v4779_v4  ;;  %v4356_v56 = vld [vmem:[#allocation11 + $0x128] sm:$0xff] }
 0x376   :  { %v10139_v9 = vpop.eup %10138  ;;  %v4643_v49 = vld [vmem:[#allocation11 + $0xa20] sm:$0xff]  ;;  %v4348_v58 = vld [vmem:[#allocation11 + $0xe8] sm:$0xff] }
 0x377   :  { %7532 = vmatpush2.bf16.msra.mxu0 %v9744_v51  ;;  %v9825_v51 = vcombine.high %v4775_v39, %v4779_v4  ;;  %v4299_v18 = vadd.f32 1.0, %v10139_v9  ;;  %v9395_v39 = vcombine.high %v4344_v0, %v4348_v58  ;;  %v4336_v4 = vld [vmem:[#allocation11 + $0x88] sm:$0xff] }
 0x378   :  { %7533 = vmatprep.subr.bf16.mxu0 %v9737_v16  ;;  %7573 = vmatpush2.bf16.msra.mxu1 %v9872_v17  ;;  %v4767_v16 = vld [vmem:[#allocation11 + $0xe00] sm:$0xff]  ;;  %v4328_v9 = vld [vmem:[#allocation11 + $0x48] sm:$0xff] }
 0x379   :  { %7574 = vmatprep.subr.bf16.mxu1 %v9865_v34  ;;  %v4771_v17 = vld [vmem:[#allocation11 + $0xe20] sm:$0xff]  ;;  %v9689_v34 = vcombine.high %v4639_v13, %v4643_v49 }
 0x37a   :  { %v9817_v40 = vcombine.high %v4767_v16, %v4771_v17 }
 0x37b   :  { %7534 = vmatpush2.bf16.msra.mxu0 %v9736_v38  ;;  %v4380_v38 = vld [vmem:[#allocation11 + $0x1e8] sm:$0xff] }
 0x37c   :  { %7535 = vmatprep.subr.bf16.mxu0 %v9729_v21  ;;  %7575 = vmatpush2.bf16.msra.mxu1 %v9864_v45  ;;  %v4275_v21 = vmul.f32 0.5, %v10685_v15  ;;  %v9688_v45 = vcombine.low %v4639_v13, %v4643_v49  ;;  %v9427_v52 = vcombine.high %v4376_v55, %v4380_v38  ;;  %v4360_v15 = vld [vmem:[#allocation11 + $0x148] sm:$0xff] }
 0x37d   :  { %7576 = vmatprep.subr.bf16.mxu1 %v9857_v33  ;;  %v9816_v33 = vcombine.low %v4767_v16, %v4771_v17  ;;  %v9410_v59 = vcombine.low %v4360_v15, %v4364_v8  ;;  %v4332_v13 = vld [vmem:[#allocation11 + $0x68] sm:$0xff] }
 0x37e   :  { %v4307_v19 = vmul.f32 %v4299_v18, %v4275_v21  ;;  %v4320_v16 = vld [vmem:[#allocation11 + $0x8] sm:$0xff] }
 0x37f   :  { %7536 = vmatpush2.bf16.msra.mxu0 %v9728_v50  ;;  %v9555_v50 = vcombine.high %v10677_v30, %v10679_v14  ;;  %v4324_v17 = vld [vmem:[#allocation11 + $0x28] sm:$0xff] }
 0x380   :  { %7537 = vmatprep.subr.bf16.mxu0 %v9721_v20  ;;  %7577 = vmatpush2.bf16.msra.mxu1 %v9856_v25  ;;  %v9426_v20 = vcombine.low %v4376_v55, %v4380_v38  ;;  %v10691_v25 = vpack.c.bf16 %v4307_v19, %v4307_v19  ;;  %v9371_v18 = vcombine.high %v4320_v16, %v4324_v17  ;;  %v4436_v21 = vld [vmem:[#allocation11 + $0x3a8] sm:$0xff] }
 0x381   :  { %7578 = vmatprep.subr.bf16.mxu1 %v9849_v29  ;;  %v9370_v55 = vcombine.low %v4320_v16, %v4324_v17  ;;  %v4624_v17 = vld [vmem:[#allocation11 + $0x988] sm:$0xff] }
 0x383   :  { %7538 = vmatpush2.bf16.msra.mxu0 %v9720_v37 }
 0x384   :  { %7539 = vmatprep.subr.bf16.mxu0 %v9713_v41  ;;  %7579 = vmatpush2.bf16.msra.mxu1 %v9848_v42  ;;  %v9411_v41 = vcombine.high %v4360_v15, %v4364_v8  ;;  %v4408_v8 = vld [vmem:[#allocation11 + $0x2c8] sm:$0xff] }
 0x385   :  { %7580 = vmatprep.subr.bf16.mxu1 %v9841_v57 }
 0x387   :  { %7540 = vmatpush2.bf16.msra.mxu0 %v9712_v35 }
 0x388   :  { %7541 = vmatprep.subr.bf16.mxu0 %v9705_v62  ;;  %7581 = vmatpush2.bf16.msra.mxu1 %v9840_v63  ;;  %v9403_v62 = vcombine.high %v4352_v22, %v4356_v56 }
 0x389   :  { %7582 = vmatprep.subr.bf16.mxu1 %v9833_v3  ;;  %v9402_v3 = vcombine.low %v4352_v22, %v4356_v56  ;;  %v4400_v56 = vld [vmem:[#allocation11 + $0x288] sm:$0xff] }
 0x38b   :  { %7542 = vmatpush2.bf16.msra.mxu0 %v9704_v6  ;;  %v4340_v6 = vld [vmem:[#allocation11 + $0xa8] sm:$0xff] }
 0x38c   :  { %7543 = vmatprep.subr.bf16.mxu0 %v9697_v53  ;;  %7583 = vmatpush2.bf16.msra.mxu1 %v9832_v7  ;;  %v9394_v53 = vcombine.low %v4344_v0, %v4348_v58  ;;  %v9387_v7 = vcombine.high %v4336_v4, %v4340_v6  ;;  %v9386_v49 = vcombine.low %v4336_v4, %v4340_v6  ;;  %v4384_v58 = vld [vmem:[#allocation11 + $0x208] sm:$0xff]  ;;  %v10161_v6 = vld [vmem:[#allocation10] sm:$0xff] }
 0x38d   :  { %7584 = vmatprep.subr.bf16.mxu1 %v9825_v51  ;;  %v9379_v51 = vcombine.high %v4328_v9, %v4332_v13 }
 0x38f   :  { %7544 = vmatpush2.bf16.msra.mxu0 %v9696_v43  ;;  %v9378_v43 = vcombine.low %v4328_v9, %v4332_v13  ;;  %v4636_v9 = vld [vmem:[#allocation11 + $0x9e8] sm:$0xff]  ;;  %v1046_v13 = vrot.slane %v10161_v6, %v10515_v1 }
 0x390   :  { %7545 = vmatprep.subr.bf16.mxu0 %v9689_v34  ;;  %7585 = vmatpush2.bf16.msra.mxu1 %v9824_v36  ;;  %v4440_v34 = vld [vmem:[#allocation11 + $0x3c8] sm:$0xff] }
 0x391   :  { %7586 = vmatprep.subr.bf16.mxu1 %v9817_v40  ;;  %v4444_v36 = vld [vmem:[#allocation11 + $0x3e8] sm:$0xff] }
 0x392   :  { %v9491_v38 = vcombine.high %v4440_v34, %v4444_v36  ;;  %v4432_v40 = vld [vmem:[#allocation11 + $0x388] sm:$0xff] }
 0x393   :  { %7546 = vmatpush2.bf16.msra.mxu0 %v9688_v45  ;;  %v9490_v45 = vcombine.low %v4440_v34, %v4444_v36  ;;  %v9483_v19 = vcombine.high %v4432_v40, %v4436_v21  ;;  %v9482_v23 = vcombine.low %v4432_v40, %v4436_v21  ;;  %v4620_v40 = vld [vmem:[#allocation11 + $0x968] sm:$0xff] }
 0x394   :  { %7597 = vmatprep.subr.bf16.mxu0 %v9427_v52  ;;  %7587 = vmatpush2.bf16.msra.mxu1 %v9816_v33  ;;  %v4424_v52 = vld [vmem:[#allocation11 + $0x348] sm:$0xff] }
 0x395   :  { %7638 = vmatprep.subr.bf16.mxu1 %v9555_v50  ;;  %v4428_v33 = vld [vmem:[#allocation11 + $0x368] sm:$0xff] }
 0x396   :  { %v10693_v29 = vpop.f32.mrf.mxu0  ;;  %7548 = vmatmul.mubr.bf16.vlgmr.msra.gmra.mxu0 %v10691_v25  ;;  %v9475_v24 = vcombine.high %v4424_v52, %v4428_v33  ;;  %v4416_v50 = vld [vmem:[#allocation11 + $0x308] sm:$0xff] }
 0x397   :  { %v10696_v32 = vpop.f32.mrf.mxu1  ;;  %7598 = vmatpush1.bf16.msra.mxu0 %v9426_v20  ;;  %7629 = vmatprep.mubr.bf16.mxu0 %v10641_v27  ;;  %v4420_v20 = vld [vmem:[#allocation11 + $0x328] sm:$0xff] }
 0x398   :  { %v10699_v37 = vpop.f32.mrf.mxu0  ;;  %7599 = vmatprep.subr.bf16.mxu0 %v9419_v28  ;;  %v9474_v28 = vcombine.low %v4424_v52, %v4428_v33  ;;  %v9467_v15 = vcombine.high %v4416_v50, %v4420_v20 }
 0x399   :  { %v10701_v42 = vpop.f32.mrf.mxu1 }
 0x39a   :  { %v4145_v57 = vpop.f32.mrf.mxu0 }
 0x39b   :  { %v4186_v60 = vpop.f32.mrf.mxu1  ;;  %7600 = vmatpush1.bf16.msra.mxu0 %v9418_v12  ;;  %v4412_v12 = vld [vmem:[#allocation11 + $0x2e8] sm:$0xff] }
 0x39c   :  { %v4146_v35 = vpop.f32.mrf.mxu0  ;;  %7601 = vmatprep.subr.bf16.mxu0 %v9411_v41  ;;  %v9466_v41 = vcombine.low %v4416_v50, %v4420_v20  ;;  %v9459_v22 = vcombine.high %v4408_v8, %v4412_v12  ;;  %v4404_v57 = vld [vmem:[#allocation11 + $0x2a8] sm:$0xff]  ;;  %v9458_v60 = vcombine.low %v4408_v8, %v4412_v12 }
 0x39d   :  { %v4187_v63 = vpop.f32.mrf.mxu1  ;;  %v4392_v35 = vld [vmem:[#allocation11 + $0x248] sm:$0xff] }
 0x39e   :  { %v9450_v63 = vcombine.low %v4400_v56, %v4404_v57  ;;  %v4612_v20 = vld [vmem:[#allocation11 + $0x928] sm:$0xff] }
 0x39f   :  { %7602 = vmatpush1.bf16.msra.mxu0 %v9410_v59  ;;  %v9451_v59 = vcombine.high %v4400_v56, %v4404_v57 }
 0x3a0   :  { %7603 = vmatprep.subr.bf16.mxu0 %v9403_v62  ;;  %v4396_v62 = vld [vmem:[#allocation11 + $0x268] sm:$0xff] }
 0x3a1   :  { %v9443_v0 = vcombine.high %v4392_v35, %v4396_v62 }
 0x3a3   :  { %7604 = vmatpush1.bf16.msra.mxu0 %v9402_v3  ;;  %v4388_v3 = vld [vmem:[#allocation11 + $0x228] sm:$0xff] }
 0x3a4   :  { %7605 = vmatprep.subr.bf16.mxu0 %v9395_v39  ;;  %v9442_v39 = vcombine.low %v4392_v35, %v4396_v62  ;;  %v9435_v4 = vcombine.high %v4384_v58, %v4388_v3 }
 0x3a7   :  { %7606 = vmatpush1.bf16.msra.mxu0 %v9394_v53  ;;  %v1042_v53 = vrot.slane %v10161_v6, %v10553_v5 }
 0x3a8   :  { %7607 = vmatprep.subr.bf16.mxu0 %v9387_v7  ;;  %v4632_v7 = vld [vmem:[#allocation11 + $0x9c8] sm:$0xff] }
 0x3a9   :  { %v4142_v16 = vadd.f32 %v10693_v29, %v1042_v53  ;;  %v9682_v34 = vcombine.low %v4632_v7, %v4636_v9 }
 0x3ab   :  { %7608 = vmatpush1.bf16.msra.mxu0 %v9386_v49  ;;  %v9434_v49 = vcombine.low %v4384_v58, %v4388_v3 }
 0x3ac   :  { %7609 = vmatprep.subr.bf16.mxu0 %v9379_v51  ;;  %v9683_v51 = vcombine.high %v4632_v7, %v4636_v9  ;;  %v4576_v7 = vld [vmem:[#allocation11 + $0x808] sm:$0xff] }
 0x3ad   :  { %v4580_v9 = vld [vmem:[#allocation11 + $0x828] sm:$0xff] }
 0x3af   :  { %7610 = vmatpush1.bf16.msra.mxu0 %v9378_v43  ;;  %v4628_v43 = vld [vmem:[#allocation11 + $0x9a8] sm:$0xff] }
 0x3b0   :  { %7611 = vmatprep.subr.bf16.mxu0 %v9371_v18  ;;  %v4144_v18 = vadd.f32 %v10699_v37, %v1046_v13  ;;  %v9675_v36 = vcombine.high %v4624_v17, %v4628_v43  ;;  %v9674_v29 = vcombine.low %v4624_v17, %v4628_v43  ;;  %v9627_v43 = vcombine.high %v4576_v7, %v4580_v9 }
 0x3b3   :  { %7612 = vmatpush1.bf16.msra.mxu0 %v9370_v55  ;;  %v4183_v55 = vadd.f32 %v10696_v32, %v4142_v16  ;;  %v4608_v32 = vld [vmem:[#allocation11 + $0x908] sm:$0xff] }
 0x3b4   :  { %7613 = vmatprep.subr.bf16.mxu0 %v9491_v38  ;;  %v4616_v38 = vld [vmem:[#allocation11 + $0x948] sm:$0xff]  ;;  %v9658_v35 = vcombine.low %v4608_v32, %v4612_v20 }
 0x3b5   :  { %v9667_v33 = vcombine.high %v4616_v38, %v4620_v40 }
 0x3b7   :  { %7614 = vmatpush2.bf16.msra.mxu0 %v9490_v45  ;;  %v4185_v45 = vadd.f32 %v10701_v42, %v4144_v18  ;;  %v9666_v42 = vcombine.low %v4616_v38, %v4620_v40 }
 0x3b8   :  { %7615 = vmatprep.subr.bf16.mxu0 %v9483_v19 }
 0x3bb   :  { %7616 = vmatpush2.bf16.msra.mxu0 %v9482_v23 }
 0x3bc   :  { %7617 = vmatprep.subr.bf16.mxu0 %v9475_v24 }
 0x3bf   :  { %7618 = vmatpush2.bf16.msra.mxu0 %v9474_v28 }
 0x3c0   :  { %7619 = vmatprep.subr.bf16.mxu0 %v9467_v15 }
 0x3c3   :  { %7620 = vmatpush2.bf16.msra.mxu0 %v9466_v41 }
 0x3c4   :  { %7621 = vmatprep.subr.bf16.mxu0 %v9459_v22  ;;  %v9659_v22 = vcombine.high %v4608_v32, %v4612_v20  ;;  %v4488_v32 = vld [vmem:[#allocation11 + $0x548] sm:$0xff] }
 0x3c5   :  { %v4492_v20 = vld [vmem:[#allocation11 + $0x568] sm:$0xff] }
 0x3c7   :  { %7622 = vmatpush2.bf16.msra.mxu0 %v9458_v60  ;;  %v4600_v60 = vld [vmem:[#allocation11 + $0x8c8] sm:$0xff] }
 0x3c8   :  { %7623 = vmatprep.subr.bf16.mxu0 %v9451_v59  ;;  %v4604_v59 = vld [vmem:[#allocation11 + $0x8e8] sm:$0xff] }
 0x3c9   :  { %v9651_v62 = vcombine.high %v4600_v60, %v4604_v59  ;;  %v9650_v58 = vcombine.low %v4600_v60, %v4604_v59  ;;  %v9538_v60 = vcombine.low %v4488_v32, %v4492_v20  ;;  %v4672_v59 = vld [vmem:[#allocation11 + $0xb08] sm:$0xff] }
 0x3cb   :  { %7624 = vmatpush2.bf16.msra.mxu0 %v9450_v63  ;;  %v4592_v63 = vld [vmem:[#allocation11 + $0x888] sm:$0xff] }
 0x3cc   :  { %7625 = vmatprep.subr.bf16.mxu0 %v9443_v0  ;;  %v4596_v0 = vld [vmem:[#allocation11 + $0x8a8] sm:$0xff] }
 0x3cd   :  { %v9643_v3 = vcombine.high %v4592_v63, %v4596_v0  ;;  %v9642_v6 = vcombine.low %v4592_v63, %v4596_v0 }
 0x3cf   :  { %7626 = vmatpush2.bf16.msra.mxu0 %v9442_v39  ;;  %v4584_v39 = vld [vmem:[#allocation11 + $0x848] sm:$0xff] }
 0x3d0   :  { %7627 = vmatprep.subr.bf16.mxu0 %v9435_v4  ;;  %v4588_v4 = vld [vmem:[#allocation11 + $0x868] sm:$0xff] }
 0x3d1   :  { %v9635_v53 = vcombine.high %v4584_v39, %v4588_v4 }
 0x3d3   :  { %7628 = vmatpush2.bf16.msra.mxu0 %v9434_v49 }
 0x3d4   :  { %7679 = vmatprep.subr.bf16.mxu0 %v9683_v51  ;;  %v9634_v51 = vcombine.low %v4584_v39, %v4588_v4 }
 0x3d6   :  { %v4223_v21 = vpop.f32.mrf.mxu0  ;;  %7630 = vmatmul.mubr.bf16.vlgmr.msra.gmra.mxu0 %v10662_v11 }
 0x3d7   :  { %v4224_v19 = vadd.f32 %v4223_v21, %v4183_v55  ;;  %v4264_v52 = vpop.f32.mrf.mxu1  ;;  %7680 = vmatpush1.bf16.msra.mxu0 %v9682_v34  ;;  %7711 = vmatprep.mubr.bf16.mxu0 %v10675_v54  ;;  %v4700_v55 = vld [vmem:[#allocation11 + $0xbe8] sm:$0xff]  ;;  %v9626_v21 = vcombine.low %v4576_v7, %v4580_v9 }
 0x3d8   :  { %v4225_v37 = vpop.f32.mrf.mxu0  ;;  %7681 = vmatprep.subr.bf16.mxu0 %v9675_v36  ;;  %v4696_v36 = vld [vmem:[#allocation11 + $0xbc8] sm:$0xff] }
 0x3d9   :  { %v4265_v23 = vadd.f32 %v4264_v52, %v4224_v19  ;;  %v4226_v24 = vadd.f32 %v4225_v37, %v4185_v45  ;;  %v4266_v50 = vpop.f32.mrf.mxu1  ;;  %v4496_v45 = vld [vmem:[#allocation11 + $0x588] sm:$0xff]  ;;  %v9747_v52 = vcombine.high %v4696_v36, %v4700_v55 }
 0x3da   :  { %v4227_v28 = vpop.f32.mrf.mxu0  ;;  %v4500_v19 = vld [vmem:[#allocation11 + $0x5a8] sm:$0xff] }
 0x3db   :  { %v4285_v15 = vmul.f32 0.70710677, %v4265_v23  ;;  %v4267_v8 = vadd.f32 %v4266_v50, %v4226_v24  ;;  %v4268_v12 = vpop.f32.mrf.mxu1  ;;  %7682 = vmatpush1.bf16.msra.mxu0 %v9674_v29  ;;  %v4277_v17 = vmul.f32 0.5, %v4265_v23  ;;  %v4688_v37 = vld [vmem:[#allocation11 + $0xb88] sm:$0xff]  ;;  %v9547_v23 = vcombine.high %v4496_v45, %v4500_v19 }
 0x3dc   :  { %v4228_v41 = vpop.f32.mrf.mxu0  ;;  %7683 = vmatprep.subr.bf16.mxu0 %v9667_v33  ;;  %v4692_v33 = vld [vmem:[#allocation11 + $0xba8] sm:$0xff]  ;;  %v9746_v50 = vcombine.low %v4696_v36, %v4700_v55 }
 0x3dd   :  { %10140 = verf.f32 %v4285_v15  ;;  %v4286_v56 = vmul.f32 0.70710677, %v4267_v8  ;;  %v4269_v57 = vpop.f32.mrf.mxu1  ;;  %v4278_v18 = vmul.f32 0.5, %v4267_v8  ;;  %v9739_v28 = vcombine.high %v4688_v37, %v4692_v33  ;;  %v4680_v8 = vld [vmem:[#allocation11 + $0xb48] sm:$0xff] }
 0x3de   :  { %v9546_v15 = vcombine.low %v4496_v45, %v4500_v19  ;;  %v4684_v12 = vld [vmem:[#allocation11 + $0xb68] sm:$0xff]  ;;  %v9738_v41 = vcombine.low %v4688_v37, %v4692_v33 }
 0x3df   :  { %10142 = verf.f32 %v4286_v56  ;;  %7684 = vmatpush1.bf16.msra.mxu0 %v9666_v42  ;;  %v9539_v42 = vcombine.high %v4488_v32, %v4492_v20  ;;  %v4484_v56 = vld [vmem:[#allocation11 + $0x528] sm:$0xff]  ;;  %v9731_v57 = vcombine.high %v4680_v8, %v4684_v12  ;;  %v9730_v14 = vcombine.low %v4680_v8, %v4684_v12  ;;  %v4377_v8 = vld [vmem:[#allocation11 + $0x1d0] sm:$0xff] }
 0x3e0   :  { %7685 = vmatprep.subr.bf16.mxu0 %v9659_v22  ;;  %v4480_v22 = vld [vmem:[#allocation11 + $0x508] sm:$0xff]  ;;  %v4381_v12 = vld [vmem:[#allocation11 + $0x1f0] sm:$0xff] }
 0x3e1   :  { %v9531_v30 = vcombine.high %v4480_v22, %v4484_v56  ;;  %v9530_v0 = vcombine.low %v4480_v22, %v4484_v56  ;;  %v4648_v36 = vld [vmem:[#allocation11 + $0xa48] sm:$0xff] }
 0x3e2   :  { %v4652_v55 = vld [vmem:[#allocation11 + $0xa68] sm:$0xff] }
 0x3e3   :  { %7686 = vmatpush1.bf16.msra.mxu0 %v9658_v35  ;;  %v4676_v35 = vld [vmem:[#allocation11 + $0xb28] sm:$0xff]  ;;  %v9699_v19 = vcombine.high %v4648_v36, %v4652_v55 }
 0x3e4   :  { %7687 = vmatprep.subr.bf16.mxu0 %v9651_v62  ;;  %v4476_v62 = vld [vmem:[#allocation11 + $0x4e8] sm:$0xff]  ;;  %v9723_v63 = vcombine.high %v4672_v59, %v4676_v35  ;;  %v9722_v4 = vcombine.low %v4672_v59, %v4676_v35  ;;  %v4369_v35 = vld [vmem:[#allocation11 + $0x190] sm:$0xff] }
 0x3e5   :  { %v4452_v45 = vld [vmem:[#allocation11 + $0x428] sm:$0xff] }
 0x3e6   :  { %v4640_v37 = vld [vmem:[#allocation11 + $0xa08] sm:$0xff] }
 0x3e7   :  { %7688 = vmatpush1.bf16.msra.mxu0 %v9650_v58  ;;  %v4664_v58 = vld [vmem:[#allocation11 + $0xac8] sm:$0xff] }
 0x3e8   :  { %7689 = vmatprep.subr.bf16.mxu0 %v9643_v3  ;;  %v4668_v3 = vld [vmem:[#allocation11 + $0xae8] sm:$0xff] }
 0x3e9   :  { %v9715_v7 = vcombine.high %v4664_v58, %v4668_v3  ;;  %v4644_v33 = vld [vmem:[#allocation11 + $0xa28] sm:$0xff] }
 0x3ea   :  { %v10141_v13 = vpop.eup %10140  ;;  %v4568_v32 = vld [vmem:[#allocation11 + $0x7c8] sm:$0xff] }
 0x3eb   :  { %v4301_v49 = vadd.f32 1.0, %v10141_v13  ;;  %7690 = vmatpush1.bf16.msra.mxu0 %v9642_v6  ;;  %v4464_v6 = vld [vmem:[#allocation11 + $0x488] sm:$0xff] }
 0x3ec   :  { %v10143_v16 = vpop.eup %10142  ;;  %7691 = vmatprep.subr.bf16.mxu0 %v9635_v53  ;;  %v4468_v53 = vld [vmem:[#allocation11 + $0x4a8] sm:$0xff] }
 0x3ed   :  { %v4302_v34 = vadd.f32 1.0, %v10143_v16  ;;  %v4309_v38 = vmul.f32 %v4301_v49, %v4277_v17  ;;  %v4656_v13 = vld [vmem:[#allocation11 + $0xa88] sm:$0xff]  ;;  %v9714_v16 = vcombine.low %v4664_v58, %v4668_v3 }
 0x3ee   :  { %v4660_v49 = vld [vmem:[#allocation11 + $0xaa8] sm:$0xff] }
 0x3ef   :  { %v4310_v40 = vmul.f32 %v4302_v34, %v4278_v18  ;;  %7692 = vmatpush1.bf16.msra.mxu0 %v9634_v51  ;;  %v10713_v24 = vpack.c.bf16 %v4309_v38, %v4309_v38  ;;  %v9515_v51 = vcombine.high %v4464_v6, %v4468_v53  ;;  %v4456_v17 = vld [vmem:[#allocation11 + $0x448] sm:$0xff]  ;;  %v9707_v18 = vcombine.high %v4656_v13, %v4660_v49 }
 0x3f0   :  { %7693 = vmatprep.subr.bf16.mxu0 %v9627_v43  ;;  %v4460_v43 = vld [vmem:[#allocation11 + $0x468] sm:$0xff]  ;;  %v9514_v34 = vcombine.low %v4464_v6, %v4468_v53  ;;  %v4365_v6 = vld [vmem:[#allocation11 + $0x170] sm:$0xff] }
 0x3f1   :  { %v10711_v29 = vpack.c.bf16 %v4310_v40, %v4310_v40  ;;  %v9507_v38 = vcombine.high %v4456_v17, %v4460_v43  ;;  %v9706_v40 = vcombine.low %v4656_v13, %v4660_v49  ;;  %v4572_v20 = vld [vmem:[#allocation11 + $0x7e8] sm:$0xff] }
 0x3f2   :  { %v4560_v22 = vld [vmem:[#allocation11 + $0x788] sm:$0xff]  ;;  %v9618_v59 = vcombine.low %v4568_v32, %v4572_v20 }
 0x3f3   :  { %7588 = vmatprep.mubr.bf16.mxu1 %v10711_v29  ;;  %7694 = vmatpush1.bf16.msra.mxu0 %v9626_v21  ;;  %v4448_v21 = vld [vmem:[#allocation11 + $0x408] sm:$0xff] }
 0x3f4   :  { %7589 = vmatmul.mubr.bf16.vlgmr.msra.gmra.mxu1 %v10713_v24  ;;  %7695 = vmatprep.subr.bf16.mxu0 %v9747_v52  ;;  %v9506_v52 = vcombine.low %v4456_v17, %v4460_v43  ;;  %v4564_v56 = vld [vmem:[#allocation11 + $0x7a8] sm:$0xff] }
 0x3f5   :  { %7639 = vmatpush1.bf16.msra.mxu1 %v9554_v31  ;;  %7670 = vmatprep.mubr.bf16.mxu1 %v10644_v10  ;;  %v4472_v31 = vld [vmem:[#allocation11 + $0x4c8] sm:$0xff]  ;;  %v9610_v3 = vcombine.low %v4560_v22, %v4564_v56 }
 0x3f6   :  { %7640 = vmatprep.subr.bf16.mxu1 %v9547_v23  ;;  %v9523_v39 = vcombine.high %v4472_v31, %v4476_v62  ;;  %v9522_v9 = vcombine.low %v4472_v31, %v4476_v62  ;;  %v9499_v23 = vcombine.high %v4448_v21, %v4452_v45  ;;  %v9428_v62 = vcombine.low %v4377_v8, %v4381_v12  ;;  %v4544_v49 = vld [vmem:[#allocation11 + $0x708] sm:$0xff] }
 0x3f7   :  { %7696 = vmatpush2.bf16.msra.mxu0 %v9746_v50  ;;  %v9698_v50 = vcombine.low %v4648_v36, %v4652_v55  ;;  %v4353_v36 = vld [vmem:[#allocation11 + $0x110] sm:$0xff] }
 0x3f8   :  { %7697 = vmatprep.subr.bf16.mxu0 %v9739_v28  ;;  %v9691_v28 = vcombine.high %v4640_v37, %v4644_v33  ;;  %v4357_v55 = vld [vmem:[#allocation11 + $0x130] sm:$0xff] }
 0x3f9   :  { %7641 = vmatpush1.bf16.msra.mxu1 %v9546_v15  ;;  %v9498_v15 = vcombine.low %v4448_v21, %v4452_v45 }
 0x3fa   :  { %7642 = vmatprep.subr.bf16.mxu1 %v9539_v42  ;;  %v9619_v42 = vcombine.high %v4568_v32, %v4572_v20  ;;  %v4345_v20 = vld [vmem:[#allocation11 + $0xd0] sm:$0xff] }
 0x3fb   :  { %7698 = vmatpush2.bf16.msra.mxu0 %v9738_v41  ;;  %v9690_v41 = vcombine.low %v4640_v37, %v4644_v33  ;;  %v4540_v37 = vld [vmem:[#allocation11 + $0x6e8] sm:$0xff] }
 0x3fc   :  { %7699 = vmatprep.subr.bf16.mxu0 %v9731_v57  ;;  %v4831_v57 = vld [vmem:[#allocation13] sm:$0xff] }
 0x3fd   :  { %7643 = vmatpush1.bf16.msra.mxu1 %v9538_v60  ;;  %v9429_v60 = vcombine.high %v4377_v8, %v4381_v12  ;;  %v4836_v31 = vrot.slane %v4831_v57, %v10490_v44  ;;  %v9404_v8 = vcombine.low %v4353_v36, %v4357_v55  ;;  %v4528_v12 = vld [vmem:[#allocation11 + $0x688] sm:$0xff] }
 0x3fe   :  { %7644 = vmatprep.subr.bf16.mxu1 %v9531_v30  ;;  %v4373_v30 = vld [vmem:[#allocation11 + $0x1b0] sm:$0xff] }
 0x3ff   :  { %7700 = vmatpush2.bf16.msra.mxu0 %v9730_v14  ;;  %v9611_v14 = vcombine.high %v4560_v22, %v4564_v56  ;;  %v9421_v58 = vcombine.high %v4369_v35, %v4373_v30  ;;  %v9420_v44 = vcombine.low %v4369_v35, %v4373_v30  ;;  %v4337_v56 = vld [vmem:[#allocation11 + $0x90] sm:$0xff]  ;;  %v4520_v35 = vld [vmem:[#allocation11 + $0x648] sm:$0xff] }
 0x400   :  { %7701 = vmatprep.subr.bf16.mxu0 %v9723_v63  ;;  %v4552_v63 = vld [vmem:[#allocation11 + $0x748] sm:$0xff] }
 0x401   :  { %7645 = vmatpush1.bf16.msra.mxu1 %v9530_v0  ;;  %v4556_v0 = vld [vmem:[#allocation11 + $0x768] sm:$0xff] }
 0x402   :  { %7646 = vmatprep.subr.bf16.mxu1 %v9523_v39  ;;  %v4840_v39 = vrot.slane %v4831_v57, %v10498_v47  ;;  %v4341_v57 = vld [vmem:[#allocation11 + $0xb0] sm:$0xff]  ;;  %v4524_v30 = vld [vmem:[#allocation11 + $0x668] sm:$0xff] }
 0x403   :  { %7702 = vmatpush2.bf16.msra.mxu0 %v9722_v4  ;;  %v4361_v4 = vld [vmem:[#allocation11 + $0x150] sm:$0xff] }
 0x404   :  { %7703 = vmatprep.subr.bf16.mxu0 %v9715_v7  ;;  %v9603_v7 = vcombine.high %v4552_v63, %v4556_v0  ;;  %v9413_v17 = vcombine.high %v4361_v4, %v4365_v6 }
 0x405   :  { %7647 = vmatpush1.bf16.msra.mxu1 %v9522_v9 }
 0x406   :  { %7648 = vmatprep.subr.bf16.mxu1 %v9515_v51  ;;  %v4548_v51 = vld [vmem:[#allocation11 + $0x728] sm:$0xff] }
 0x407   :  { %7704 = vmatpush2.bf16.msra.mxu0 %v9714_v16  ;;  %v9594_v32 = vcombine.low %v4544_v49, %v4548_v51 }
 0x408   :  { %7705 = vmatprep.subr.bf16.mxu0 %v9707_v18 }
 0x409   :  { %7649 = vmatpush1.bf16.msra.mxu1 %v9514_v34  ;;  %v9602_v34 = vcombine.low %v4552_v63, %v4556_v0  ;;  %v4333_v63 = vld [vmem:[#allocation11 + $0x70] sm:$0xff]  ;;  %v9571_v0 = vcombine.high %v4520_v35, %v4524_v30 }
 0x40a   :  { %7650 = vmatprep.subr.bf16.mxu1 %v9507_v38 }
 0x40b   :  { %7706 = vmatpush2.bf16.msra.mxu0 %v9706_v40  ;;  %v9595_v40 = vcombine.high %v4544_v49, %v4548_v51  ;;  %v4764_v49 = vld [vmem:[#allocation11 + $0xde8] sm:$0xff] }
 0x40c   :  { %7707 = vmatprep.subr.bf16.mxu0 %v9699_v19  ;;  %v9412_v19 = vcombine.low %v4361_v4, %v4365_v6  ;;  %v9570_v6 = vcombine.low %v4520_v35, %v4524_v30  ;;  %v4728_v35 = vld [vmem:[#allocation11 + $0xcc8] sm:$0xff] }
 0x40d   :  { %7651 = vmatpush1.bf16.msra.mxu1 %v9506_v52  ;;  %v4536_v52 = vld [vmem:[#allocation11 + $0x6c8] sm:$0xff] }
 0x40e   :  { %7652 = vmatprep.subr.bf16.mxu1 %v9499_v23  ;;  %v9405_v23 = vcombine.high %v4353_v36, %v4357_v55  ;;  %v9586_v22 = vcombine.low %v4536_v52, %v4540_v37  ;;  %v4752_v36 = vld [vmem:[#allocation11 + $0xd88] sm:$0xff] }
 0x40f   :  { %7708 = vmatpush2.bf16.msra.mxu0 %v9698_v50  ;;  %v4756_v55 = vld [vmem:[#allocation11 + $0xda8] sm:$0xff] }
 0x410   :  { %7709 = vmatprep.subr.bf16.mxu0 %v9691_v28  ;;  %v4349_v28 = vld [vmem:[#allocation11 + $0xf0] sm:$0xff]  ;;  %v4732_v30 = vld [vmem:[#allocation11 + $0xce8] sm:$0xff] }
 0x411   :  { %7653 = vmatpush1.bf16.msra.mxu1 %v9498_v15  ;;  %v9587_v15 = vcombine.high %v4536_v52, %v4540_v37  ;;  %v9803_v52 = vcombine.high %v4752_v36, %v4756_v55 }
 0x412   :  { %7654 = vmatprep.subr.bf16.mxu1 %v9619_v42  ;;  %v4532_v42 = vld [vmem:[#allocation11 + $0x6a8] sm:$0xff] }
 0x413   :  { %7710 = vmatpush2.bf16.msra.mxu0 %v9690_v41  ;;  %v9397_v41 = vcombine.high %v4345_v20, %v4349_v28 }
 0x414   :  { %7761 = vmatprep.subr.bf16.mxu0 %v9429_v60  ;;  %v9579_v60 = vcombine.high %v4528_v12, %v4532_v42 }
 0x415   :  { %7655 = vmatpush2.bf16.msra.mxu1 %v9618_v59  ;;  %v9396_v59 = vcombine.low %v4345_v20, %v4349_v28  ;;  %v4425_v20 = vld [vmem:[#allocation11 + $0x350] sm:$0xff] }
 0x416   :  { %v7467_v53 = vpop.f32.mrf.mxu0  ;;  %7712 = vmatmul.mubr.bf16.vlgmr.msra.gmra.mxu0 %v10691_v25  ;;  %7656 = vmatprep.subr.bf16.mxu1 %v9611_v14  ;;  %v9389_v14 = vcombine.high %v4337_v56, %v4341_v57  ;;  %v4429_v28 = vld [vmem:[#allocation11 + $0x370] sm:$0xff] }
 0x417   :  { %v7468_v9 = vadd.f32 %v7467_v53, %v4836_v31  ;;  %v7508_v13 = vpop.f32.mrf.mxu1  ;;  %7762 = vmatpush1.bf16.msra.mxu0 %v9428_v62  ;;  %7793 = vmatprep.mubr.bf16.mxu0 %v10641_v27  ;;  %v9578_v31 = vcombine.low %v4528_v12, %v4532_v42  ;;  %v4329_v62 = vld [vmem:[#allocation11 + $0x50] sm:$0xff]  ;;  %v4736_v12 = vld [vmem:[#allocation11 + $0xd08] sm:$0xff] }
 0x418   :  { %v7469_v16 = vpop.f32.mrf.mxu0  ;;  %7763 = vmatprep.subr.bf16.mxu0 %v9421_v58  ;;  %v9388_v58 = vcombine.low %v4337_v56, %v4341_v57  ;;  %v9381_v4 = vcombine.high %v4329_v62, %v4333_v63  ;;  %v4321_v53 = vld [vmem:[#allocation11 + $0x10] sm:$0xff]  ;;  %v4740_v42 = vld [vmem:[#allocation11 + $0xd28] sm:$0xff] }
 0x419   :  { %v10725_v43 = vadd.f32 %v7508_v13, %v7468_v9  ;;  %v7470_v47 = vadd.f32 %v7469_v16, %v4840_v39  ;;  %v7510_v18 = vpop.f32.mrf.mxu1  ;;  %7657 = vmatpush2.bf16.msra.mxu1 %v9610_v3  ;;  %v4512_v3 = vld [vmem:[#allocation11 + $0x608] sm:$0xff]  ;;  %v9380_v13 = vcombine.low %v4329_v62, %v4333_v63  ;;  %v4417_v56 = vld [vmem:[#allocation11 + $0x310] sm:$0xff] }
 0x41a   :  { %v7471_v38 = vpop.f32.mrf.mxu0  ;;  %7658 = vmatprep.subr.bf16.mxu1 %v9603_v7  ;;  %v4516_v39 = vld [vmem:[#allocation11 + $0x628] sm:$0xff]  ;;  %v4325_v7 = vld [vmem:[#allocation11 + $0x30] sm:$0xff] }
 0x41b   :  { %v10727_v21 = vadd.f32 %v7510_v18, %v7470_v47  ;;  %v7512_v45 = vpop.f32.mrf.mxu1  ;;  %7764 = vmatpush1.bf16.msra.mxu0 %v9420_v44  ;;  %v9563_v9 = vcombine.high %v4512_v3, %v4516_v39  ;;  %v4760_v44 = vld [vmem:[#allocation11 + $0xdc8] sm:$0xff]  ;;  %v9373_v51 = vcombine.high %v4321_v53, %v4325_v7  ;;  %v9562_v16 = vcombine.low %v4512_v3, %v4516_v39  ;;  %v4445_v47 = vld [vmem:[#allocation11 + $0x3f0] sm:$0xff] }
 0x41c   :  { %v7472_v33 = vpop.f32.mrf.mxu0  ;;  %7765 = vmatprep.subr.bf16.mxu0 %v9413_v17  ;;  %v4441_v17 = vld [vmem:[#allocation11 + $0x3d0] sm:$0xff]  ;;  %v9811_v18 = vcombine.high %v4760_v44, %v4764_v49  ;;  %v4720_v3 = vld [vmem:[#allocation11 + $0xc88] sm:$0xff] }
 0x41d   :  { %v7513_v50 = vpop.f32.mrf.mxu1  ;;  %7659 = vmatpush2.bf16.msra.mxu1 %v9602_v34  ;;  %v9372_v34 = vcombine.low %v4321_v53, %v4325_v7  ;;  %v9493_v38 = vcombine.high %v4441_v17, %v4445_v47  ;;  %v4433_v45 = vld [vmem:[#allocation11 + $0x390] sm:$0xff]  ;;  %v9492_v37 = vcombine.low %v4441_v17, %v4445_v47  ;;  %v4744_v33 = vld [vmem:[#allocation11 + $0xd48] sm:$0xff] }
 0x41e   :  { %7660 = vmatprep.subr.bf16.mxu1 %v9595_v40  ;;  %v9810_v40 = vcombine.low %v4760_v44, %v4764_v49  ;;  %v4421_v57 = vld [vmem:[#allocation11 + $0x330] sm:$0xff]  ;;  %v4724_v39 = vld [vmem:[#allocation11 + $0xca8] sm:$0xff] }
 0x41f   :  { %7766 = vmatpush1.bf16.msra.mxu0 %v9412_v19  ;;  %v4437_v19 = vld [vmem:[#allocation11 + $0x3b0] sm:$0xff]  ;;  %v4712_v44 = vld [vmem:[#allocation11 + $0xc48] sm:$0xff] }
 0x420   :  { %7767 = vmatprep.subr.bf16.mxu0 %v9405_v23  ;;  %v4748_v23 = vld [vmem:[#allocation11 + $0xd68] sm:$0xff]  ;;  %v9485_v50 = vcombine.high %v4433_v45, %v4437_v19  ;;  %v4409_v62 = vld [vmem:[#allocation11 + $0x2d0] sm:$0xff] }
 0x421   :  { %7661 = vmatpush2.bf16.msra.mxu1 %v9594_v32  ;;  %v9802_v32 = vcombine.low %v4752_v36, %v4756_v55  ;;  %v4413_v63 = vld [vmem:[#allocation11 + $0x2f0] sm:$0xff]  ;;  %v4716_v49 = vld [vmem:[#allocation11 + $0xc68] sm:$0xff] }
 0x422   :  { %7662 = vmatprep.subr.bf16.mxu1 %v9587_v15  ;;  %v9795_v15 = vcombine.high %v4744_v33, %v4748_v23  ;;  %v4401_v53 = vld [vmem:[#allocation11 + $0x290] sm:$0xff]  ;;  %v4704_v36 = vld [vmem:[#allocation11 + $0xc08] sm:$0xff] }
 0x423   :  { %7768 = vmatpush1.bf16.msra.mxu0 %v9404_v8  ;;  %v9484_v8 = vcombine.low %v4433_v45, %v4437_v19  ;;  %v4405_v7 = vld [vmem:[#allocation11 + $0x2b0] sm:$0xff]  ;;  %v4708_v55 = vld [vmem:[#allocation11 + $0xc28] sm:$0xff] }
 0x424   :  { %7769 = vmatprep.subr.bf16.mxu0 %v9397_v41  ;;  %v9477_v41 = vcombine.high %v4425_v20, %v4429_v28  ;;  %v4393_v17 = vld [vmem:[#allocation11 + $0x250] sm:$0xff] }
 0x425   :  { %7663 = vmatpush2.bf16.msra.mxu1 %v9586_v22  ;;  %v9794_v22 = vcombine.low %v4744_v33, %v4748_v23  ;;  %v4397_v47 = vld [vmem:[#allocation11 + $0x270] sm:$0xff]  ;;  %v4824_v33 = vld [vmem:[#allocation11 + $0xfc8] sm:$0xff] }
 0x426   :  { %7664 = vmatprep.subr.bf16.mxu1 %v9579_v60  ;;  %v9787_v60 = vcombine.high %v4736_v12, %v4740_v42  ;;  %v4385_v45 = vld [vmem:[#allocation11 + $0x210] sm:$0xff]  ;;  %v4828_v23 = vld [vmem:[#allocation11 + $0xfe8] sm:$0xff] }
 0x427   :  { %7770 = vmatpush1.bf16.msra.mxu0 %v9396_v59  ;;  %v9476_v59 = vcombine.low %v4425_v20, %v4429_v28  ;;  %v4389_v19 = vld [vmem:[#allocation11 + $0x230] sm:$0xff] }
 0x428   :  { %7771 = vmatprep.subr.bf16.mxu0 %v9389_v14  ;;  %v9469_v14 = vcombine.high %v4417_v56, %v4421_v57  ;;  %v4633_v20 = vld [vmem:[#allocation11 + $0x9d0] sm:$0xff] }
 0x429   :  { %7665 = vmatpush2.bf16.msra.mxu1 %v9578_v31  ;;  %v9786_v31 = vcombine.low %v4736_v12, %v4740_v42  ;;  %v4637_v28 = vld [vmem:[#allocation11 + $0x9f0] sm:$0xff]  ;;  %v4816_v12 = vld [vmem:[#allocation11 + $0xf88] sm:$0xff] }
 0x42a   :  { %7666 = vmatprep.subr.bf16.mxu1 %v9571_v0  ;;  %v9779_v0 = vcombine.high %v4728_v35, %v4732_v30  ;;  %v4820_v42 = vld [vmem:[#allocation11 + $0xfa8] sm:$0xff] }
 0x42b   :  { %7772 = vmatpush1.bf16.msra.mxu0 %v9388_v58  ;;  %v9468_v58 = vcombine.low %v4417_v56, %v4421_v57  ;;  %v4625_v56 = vld [vmem:[#allocation11 + $0x990] sm:$0xff] }
 0x42c   :  { %7773 = vmatprep.subr.bf16.mxu0 %v9381_v4  ;;  %v9461_v4 = vcombine.high %v4409_v62, %v4413_v63  ;;  %v4629_v57 = vld [vmem:[#allocation11 + $0x9b0] sm:$0xff] }
 0x42d   :  { %7667 = vmatpush2.bf16.msra.mxu1 %v9570_v6  ;;  %v9778_v6 = vcombine.low %v4728_v35, %v4732_v30  ;;  %v4808_v35 = vld [vmem:[#allocation11 + $0xf48] sm:$0xff] }
 0x42e   :  { %7668 = vmatprep.subr.bf16.mxu1 %v9563_v9  ;;  %v9771_v9 = vcombine.high %v4720_v3, %v4724_v39  ;;  %v4812_v30 = vld [vmem:[#allocation11 + $0xf68] sm:$0xff] }
 0x42f   :  { %7774 = vmatpush1.bf16.msra.mxu0 %v9380_v13  ;;  %v9460_v13 = vcombine.low %v4409_v62, %v4413_v63  ;;  %v4617_v62 = vld [vmem:[#allocation11 + $0x950] sm:$0xff] }
 0x430   :  { %7775 = vmatprep.subr.bf16.mxu0 %v9373_v51  ;;  %v9453_v51 = vcombine.high %v4401_v53, %v4405_v7  ;;  %v4621_v63 = vld [vmem:[#allocation11 + $0x970] sm:$0xff] }
 0x431   :  { %7669 = vmatpush2.bf16.msra.mxu1 %v9562_v16  ;;  %v9770_v16 = vcombine.low %v4720_v3, %v4724_v39  ;;  %v9676_v39 = vcombine.low %v4625_v56, %v4629_v57 }
 0x432   :  { %7720 = vmatprep.subr.bf16.mxu1 %v9811_v18  ;;  %v9763_v18 = vcombine.high %v4712_v44, %v4716_v49 }
 0x433   :  { %7776 = vmatpush1.bf16.msra.mxu0 %v9372_v34  ;;  %v9452_v34 = vcombine.low %v4401_v53, %v4405_v7  ;;  %v9669_v7 = vcombine.high %v4617_v62, %v4621_v63 }
 0x434   :  { %7671 = vmatmul.mubr.bf16.vlgmr.msra.gmra.mxu1 %v10664_v26  ;;  %7777 = vmatprep.subr.bf16.mxu0 %v9493_v38  ;;  %v9445_v38 = vcombine.high %v4393_v17, %v4397_v47 }
 0x435   :  { %7721 = vmatpush1.bf16.msra.mxu1 %v9810_v40  ;;  %7752 = vmatprep.mubr.bf16.mxu1 %v10711_v29  ;;  %v9762_v40 = vcombine.low %v4712_v44, %v4716_v49  ;;  %v4609_v44 = vld [vmem:[#allocation11 + $0x910] sm:$0xff] }
 0x436   :  { %7722 = vmatprep.subr.bf16.mxu1 %v9803_v52  ;;  %v9755_v52 = vcombine.high %v4704_v36, %v4708_v55  ;;  %v4613_v49 = vld [vmem:[#allocation11 + $0x930] sm:$0xff] }
 0x437   :  { %7778 = vmatpush2.bf16.msra.mxu0 %v9492_v37  ;;  %v9444_v37 = vcombine.low %v4393_v17, %v4397_v47  ;;  %v4792_v17 = vld [vmem:[#allocation11 + $0xec8] sm:$0xff] }
 0x438   :  { %7779 = vmatprep.subr.bf16.mxu0 %v9485_v50  ;;  %v9437_v50 = vcombine.high %v4385_v45, %v4389_v19  ;;  %v4796_v47 = vld [vmem:[#allocation11 + $0xee8] sm:$0xff] }
 0x439   :  { %7723 = vmatpush1.bf16.msra.mxu1 %v9802_v32  ;;  %v9754_v32 = vcombine.low %v4704_v36, %v4708_v55  ;;  %v4601_v55 = vld [vmem:[#allocation11 + $0x8d0] sm:$0xff] }
 0x43a   :  { %7724 = vmatprep.subr.bf16.mxu1 %v9795_v15  ;;  %v9875_v15 = vcombine.high %v4824_v33, %v4828_v23 }
 0x43b   :  { %7780 = vmatpush2.bf16.msra.mxu0 %v9484_v8  ;;  %v9436_v8 = vcombine.low %v4385_v45, %v4389_v19  ;;  %v4784_v45 = vld [vmem:[#allocation11 + $0xe88] sm:$0xff] }
 0x43c   :  { %7781 = vmatprep.subr.bf16.mxu0 %v9477_v41  ;;  %v9685_v41 = vcombine.high %v4633_v20, %v4637_v28  ;;  %v4788_v19 = vld [vmem:[#allocation11 + $0xea8] sm:$0xff] }
 0x43d   :  { %7725 = vmatpush1.bf16.msra.mxu1 %v9794_v22  ;;  %v9874_v22 = vcombine.low %v4824_v33, %v4828_v23  ;;  %v4593_v33 = vld [vmem:[#allocation11 + $0x890] sm:$0xff] }
 0x43e   :  { %7726 = vmatprep.subr.bf16.mxu1 %v9787_v60  ;;  %v9867_v60 = vcombine.high %v4816_v12, %v4820_v42  ;;  %v4597_v23 = vld [vmem:[#allocation11 + $0x8b0] sm:$0xff] }
 0x43f   :  { %7782 = vmatpush2.bf16.msra.mxu0 %v9476_v59  ;;  %v9684_v59 = vcombine.low %v4633_v20, %v4637_v28  ;;  %v4776_v20 = vld [vmem:[#allocation11 + $0xe48] sm:$0xff] }
 0x440   :  { %7783 = vmatprep.subr.bf16.mxu0 %v9469_v14  ;;  %v9677_v14 = vcombine.high %v4625_v56, %v4629_v57  ;;  %v4780_v28 = vld [vmem:[#allocation11 + $0xe68] sm:$0xff] }
 0x441   :  { %7727 = vmatpush1.bf16.msra.mxu1 %v9786_v31  ;;  %v9866_v31 = vcombine.low %v4816_v12, %v4820_v42  ;;  %v4585_v12 = vld [vmem:[#allocation11 + $0x850] sm:$0xff]  ;;  %v4768_v56 = vld [vmem:[#allocation11 + $0xe08] sm:$0xff] }
 0x442   :  { %7728 = vmatprep.subr.bf16.mxu1 %v9779_v0  ;;  %v4589_v42 = vld [vmem:[#allocation11 + $0x870] sm:$0xff]  ;;  %v4772_v57 = vld [vmem:[#allocation11 + $0xe28] sm:$0xff] }
 0x443   :  { %7784 = vmatpush2.bf16.msra.mxu0 %v9468_v58  ;;  %v9859_v58 = vcombine.high %v4808_v35, %v4812_v30 }
 0x444   :  { %7785 = vmatprep.subr.bf16.mxu0 %v9461_v4  ;;  %v4800_v4 = vld [vmem:[#allocation11 + $0xf08] sm:$0xff] }
 0x445   :  { %7729 = vmatpush1.bf16.msra.mxu1 %v9778_v6  ;;  %v4804_v6 = vld [vmem:[#allocation11 + $0xf28] sm:$0xff] }
 0x446   :  { %7730 = vmatprep.subr.bf16.mxu1 %v9771_v9  ;;  %v9850_v36 = vcombine.low %v4800_v4, %v4804_v6 }
 0x447   :  { %7786 = vmatpush2.bf16.msra.mxu0 %v9460_v13  ;;  %v9858_v13 = vcombine.low %v4808_v35, %v4812_v30  ;;  %v4577_v35 = vld [vmem:[#allocation11 + $0x810] sm:$0xff] }
 0x448   :  { %7787 = vmatprep.subr.bf16.mxu0 %v9453_v51  ;;  %v4581_v30 = vld [vmem:[#allocation11 + $0x830] sm:$0xff] }
 0x449   :  { %7731 = vmatpush1.bf16.msra.mxu1 %v9770_v16  ;;  %v9668_v16 = vcombine.low %v4617_v62, %v4621_v63  ;;  %v4505_v62 = vld [vmem:[#allocation11 + $0x5d0] sm:$0xff] }
 0x44a   :  { %7732 = vmatprep.subr.bf16.mxu1 %v9763_v18  ;;  %v4509_v63 = vld [vmem:[#allocation11 + $0x5f0] sm:$0xff] }
 0x44b   :  { %7788 = vmatpush2.bf16.msra.mxu0 %v9452_v34  ;;  %v9661_v34 = vcombine.high %v4609_v44, %v4613_v49 }
 0x44c   :  { %7789 = vmatprep.subr.bf16.mxu0 %v9445_v38  ;;  %v4605_v38 = vld [vmem:[#allocation11 + $0x8f0] sm:$0xff] }
 0x44d   :  { %7733 = vmatpush1.bf16.msra.mxu1 %v9762_v40  ;;  %v9660_v40 = vcombine.low %v4609_v44, %v4613_v49  ;;  %v9556_v49 = vcombine.low %v4505_v62, %v4509_v63 }
 0x44e   :  { %7734 = vmatprep.subr.bf16.mxu1 %v9755_v52  ;;  %v9653_v52 = vcombine.high %v4601_v55, %v4605_v38 }
 0x44f   :  { %7790 = vmatpush2.bf16.msra.mxu0 %v9444_v37  ;;  %v9842_v37 = vcombine.low %v4792_v17, %v4796_v47 }
 0x450   :  { %7791 = vmatprep.subr.bf16.mxu0 %v9437_v50  ;;  %v9835_v50 = vcombine.high %v4784_v45, %v4788_v19 }
 0x451   :  { %7735 = vmatpush1.bf16.msra.mxu1 %v9754_v32  ;;  %v9652_v32 = vcombine.low %v4601_v55, %v4605_v38  ;;  %v4681_v55 = vld [vmem:[#allocation11 + $0xb50] sm:$0xff] }
 0x452   :  { %7736 = vmatprep.subr.bf16.mxu1 %v9875_v15  ;;  %v9645_v15 = vcombine.high %v4593_v33, %v4597_v23  ;;  %v4685_v38 = vld [vmem:[#allocation11 + $0xb70] sm:$0xff] }
 0x453   :  { %7792 = vmatpush2.bf16.msra.mxu0 %v9436_v8  ;;  %v9834_v8 = vcombine.low %v4784_v45, %v4788_v19  ;;  %v4481_v45 = vld [vmem:[#allocation11 + $0x510] sm:$0xff] }
 0x454   :  { %7843 = vmatprep.subr.bf16.mxu0 %v9685_v41  ;;  %v9827_v41 = vcombine.high %v4776_v20, %v4780_v28  ;;  %v4485_v19 = vld [vmem:[#allocation11 + $0x530] sm:$0xff] }
 0x455   :  { %7737 = vmatpush2.bf16.msra.mxu1 %v9874_v22  ;;  %v9644_v22 = vcombine.low %v4593_v33, %v4597_v23  ;;  %v4673_v33 = vld [vmem:[#allocation11 + $0xb10] sm:$0xff] }
 0x456   :  { %v7549_v0 = vpop.f32.mrf.mxu0  ;;  %7794 = vmatmul.mubr.bf16.vlgmr.msra.gmra.mxu0 %v10662_v11  ;;  %7738 = vmatprep.subr.bf16.mxu1 %v9867_v60  ;;  %v9637_v60 = vcombine.high %v4585_v12, %v4589_v42  ;;  %v4677_v23 = vld [vmem:[#allocation11 + $0xb30] sm:$0xff] }
 0x457   :  { %v10733_v3 = vadd.f32 %v7549_v0, %v10725_v43  ;;  %7844 = vmatpush1.bf16.msra.mxu0 %v9684_v59  ;;  %7875 = vmatprep.mubr.bf16.mxu0 %v10675_v54  ;;  %v9851_v43 = vcombine.high %v4800_v4, %v4804_v6  ;;  %v9826_v59 = vcombine.low %v4776_v20, %v4780_v28  ;;  %v4701_v4 = vld [vmem:[#allocation11 + $0xbf0] sm:$0xff] }
 0x458   :  { %v7551_v53 = vpop.f32.mrf.mxu0  ;;  %7845 = vmatprep.subr.bf16.mxu0 %v9677_v14  ;;  %v9819_v14 = vcombine.high %v4768_v56, %v4772_v57  ;;  %v9629_v0 = vcombine.high %v4577_v35, %v4581_v30  ;;  %v9557_v6 = vcombine.high %v4505_v62, %v4509_v63  ;;  %v4473_v20 = vld [vmem:[#allocation11 + $0x4d0] sm:$0xff] }
 0x459   :  { %v10737_v9 = vadd.f32 %v7551_v53, %v10727_v21  ;;  %7739 = vmatpush2.bf16.msra.mxu1 %v9866_v31  ;;  %v9843_v21 = vcombine.high %v4792_v17, %v4796_v47  ;;  %v9636_v31 = vcombine.low %v4585_v12, %v4589_v42  ;;  %v9628_v53 = vcombine.low %v4577_v35, %v4581_v30  ;;  %v4489_v47 = vld [vmem:[#allocation11 + $0x550] sm:$0xff] }
 0x45a   :  { %v7553_v51 = vpop.f32.mrf.mxu0  ;;  %7740 = vmatprep.subr.bf16.mxu1 %v9859_v58  ;;  %v9818_v58 = vcombine.low %v4768_v56, %v4772_v57  ;;  %v4477_v28 = vld [vmem:[#allocation11 + $0x4f0] sm:$0xff] }
 0x45b   :  { %7846 = vmatpush1.bf16.msra.mxu0 %v9676_v39  ;;  %v4697_v39 = vld [vmem:[#allocation11 + $0xbd0] sm:$0xff] }
 0x45c   :  { %v7554_v18 = vpop.f32.mrf.mxu0  ;;  %7847 = vmatprep.subr.bf16.mxu0 %v9669_v7  ;;  %v4497_v7 = vld [vmem:[#allocation11 + $0x590] sm:$0xff]  ;;  %v9749_v44 = vcombine.high %v4697_v39, %v4701_v4  ;;  %v9748_v17 = vcombine.low %v4697_v39, %v4701_v4 }
 0x45d   :  { %7741 = vmatpush2.bf16.msra.mxu1 %v9858_v13  ;;  %v4501_v13 = vld [vmem:[#allocation11 + $0x5b0] sm:$0xff] }
 0x45e   :  { %7742 = vmatprep.subr.bf16.mxu1 %v9851_v43  ;;  %v4689_v51 = vld [vmem:[#allocation11 + $0xb90] sm:$0xff] }
 0x45f   :  { %7848 = vmatpush1.bf16.msra.mxu0 %v9668_v16  ;;  %v4693_v43 = vld [vmem:[#allocation11 + $0xbb0] sm:$0xff]  ;;  %v9549_v16 = vcombine.high %v4497_v7, %v4501_v13 }
 0x460   :  { %7849 = vmatprep.subr.bf16.mxu0 %v9661_v34  ;;  %v4493_v18 = vld [vmem:[#allocation11 + $0x570] sm:$0xff]  ;;  %v9741_v34 = vcombine.high %v4689_v51, %v4693_v43 }
 0x461   :  { %7743 = vmatpush2.bf16.msra.mxu1 %v9850_v36  ;;  %v9548_v36 = vcombine.low %v4497_v7, %v4501_v13  ;;  %v4665_v12 = vld [vmem:[#allocation11 + $0xad0] sm:$0xff] }
 0x462   :  { %7744 = vmatprep.subr.bf16.mxu1 %v9843_v21  ;;  %v9541_v21 = vcombine.high %v4489_v47, %v4493_v18  ;;  %v4669_v42 = vld [vmem:[#allocation11 + $0xaf0] sm:$0xff] }
 0x463   :  { %7850 = vmatpush1.bf16.msra.mxu0 %v9660_v40  ;;  %v9740_v40 = vcombine.low %v4689_v51, %v4693_v43  ;;  %v4465_v56 = vld [vmem:[#allocation11 + $0x490] sm:$0xff] }
 0x464   :  { %7851 = vmatprep.subr.bf16.mxu0 %v9653_v52  ;;  %v9733_v52 = vcombine.high %v4681_v55, %v4685_v38  ;;  %v4469_v57 = vld [vmem:[#allocation11 + $0x4b0] sm:$0xff] }
 0x465   :  { %7745 = vmatpush2.bf16.msra.mxu1 %v9842_v37  ;;  %v9540_v37 = vcombine.low %v4489_v47, %v4493_v18  ;;  %v4657_v35 = vld [vmem:[#allocation11 + $0xa90] sm:$0xff] }
 0x466   :  { %7746 = vmatprep.subr.bf16.mxu1 %v9835_v50  ;;  %v9533_v50 = vcombine.high %v4481_v45, %v4485_v19  ;;  %v4661_v30 = vld [vmem:[#allocation11 + $0xab0] sm:$0xff] }
 0x467   :  { %7852 = vmatpush1.bf16.msra.mxu0 %v9652_v32  ;;  %v9732_v32 = vcombine.low %v4681_v55, %v4685_v38  ;;  %v4457_v62 = vld [vmem:[#allocation11 + $0x450] sm:$0xff]  ;;  %v4378_v55 = vld [vmem:[#allocation11 + $0x1d8] sm:$0xff] }
 0x468   :  { %7853 = vmatprep.subr.bf16.mxu0 %v9645_v15  ;;  %v9725_v15 = vcombine.high %v4673_v33, %v4677_v23  ;;  %v4461_v63 = vld [vmem:[#allocation11 + $0x470] sm:$0xff]  ;;  %v4382_v38 = vld [vmem:[#allocation11 + $0x1f8] sm:$0xff] }
 0x469   :  { %7747 = vmatpush2.bf16.msra.mxu1 %v9834_v8  ;;  %v9532_v8 = vcombine.low %v4481_v45, %v4485_v19  ;;  %v4649_v39 = vld [vmem:[#allocation11 + $0xa50] sm:$0xff] }
 0x46a   :  { %7748 = vmatprep.subr.bf16.mxu1 %v9827_v41  ;;  %v9525_v41 = vcombine.high %v4473_v20, %v4477_v28  ;;  %v4653_v4 = vld [vmem:[#allocation11 + $0xa70] sm:$0xff] }
 0x46b   :  { %7854 = vmatpush1.bf16.msra.mxu0 %v9644_v22  ;;  %v9724_v22 = vcombine.low %v4673_v33, %v4677_v23  ;;  %v4449_v7 = vld [vmem:[#allocation11 + $0x410] sm:$0xff]  ;;  %v4370_v33 = vld [vmem:[#allocation11 + $0x198] sm:$0xff] }
 0x46c   :  { %7855 = vmatprep.subr.bf16.mxu0 %v9637_v60  ;;  %v9717_v60 = vcombine.high %v4665_v12, %v4669_v42  ;;  %v4453_v13 = vld [vmem:[#allocation11 + $0x430] sm:$0xff]  ;;  %v4374_v23 = vld [vmem:[#allocation11 + $0x1b8] sm:$0xff] }
 0x46d   :  { %7749 = vmatpush2.bf16.msra.mxu1 %v9826_v59  ;;  %v9524_v59 = vcombine.low %v4473_v20, %v4477_v28  ;;  %v4641_v51 = vld [vmem:[#allocation11 + $0xa10] sm:$0xff] }
 0x46e   :  { %7750 = vmatprep.subr.bf16.mxu1 %v9819_v14  ;;  %v9517_v14 = vcombine.high %v4465_v56, %v4469_v57  ;;  %v4645_v43 = vld [vmem:[#allocation11 + $0xa30] sm:$0xff] }
 0x46f   :  { %7856 = vmatpush1.bf16.msra.mxu0 %v9636_v31  ;;  %v9716_v31 = vcombine.low %v4665_v12, %v4669_v42  ;;  %v4569_v47 = vld [vmem:[#allocation11 + $0x7d0] sm:$0xff]  ;;  %v4362_v12 = vld [vmem:[#allocation11 + $0x158] sm:$0xff] }
 0x470   :  { %7857 = vmatprep.subr.bf16.mxu0 %v9629_v0  ;;  %v9709_v0 = vcombine.high %v4657_v35, %v4661_v30  ;;  %v4573_v18 = vld [vmem:[#allocation11 + $0x7f0] sm:$0xff]  ;;  %v4366_v42 = vld [vmem:[#allocation11 + $0x178] sm:$0xff] }
 0x471   :  { %7751 = vmatpush2.bf16.msra.mxu1 %v9818_v58  ;;  %v9516_v58 = vcombine.low %v4465_v56, %v4469_v57  ;;  %v4561_v45 = vld [vmem:[#allocation11 + $0x790] sm:$0xff]  ;;  %v9422_v56 = vcombine.low %v4370_v33, %v4374_v23 }
 0x472   :  { %7802 = vmatprep.subr.bf16.mxu1 %v9557_v6  ;;  %v9509_v6 = vcombine.high %v4457_v62, %v4461_v63  ;;  %v4565_v19 = vld [vmem:[#allocation11 + $0x7b0] sm:$0xff] }
 0x473   :  { %7858 = vmatpush1.bf16.msra.mxu0 %v9628_v53  ;;  %v9708_v53 = vcombine.low %v4657_v35, %v4661_v30  ;;  %v4553_v20 = vld [vmem:[#allocation11 + $0x750] sm:$0xff]  ;;  %v9415_v35 = vcombine.high %v4362_v12, %v4366_v42 }
 0x474   :  { %7753 = vmatmul.mubr.bf16.vlgmr.msra.gmra.mxu1 %v10713_v24  ;;  %7859 = vmatprep.subr.bf16.mxu0 %v9749_v44  ;;  %v9701_v44 = vcombine.high %v4649_v39, %v4653_v4  ;;  %v4557_v28 = vld [vmem:[#allocation11 + $0x770] sm:$0xff] }
 0x475   :  { %7803 = vmatpush1.bf16.msra.mxu1 %v9556_v49  ;;  %7834 = vmatprep.mubr.bf16.mxu1 %v10644_v10  ;;  %v9508_v49 = vcombine.low %v4457_v62, %v4461_v63  ;;  %v4545_v57 = vld [vmem:[#allocation11 + $0x710] sm:$0xff]  ;;  %v9604_v30 = vcombine.low %v4553_v20, %v4557_v28 }
 0x476   :  { %7804 = vmatprep.subr.bf16.mxu1 %v9549_v16  ;;  %v9501_v16 = vcombine.high %v4449_v7, %v4453_v13 }
 0x477   :  { %7860 = vmatpush2.bf16.msra.mxu0 %v9748_v17  ;;  %v9700_v17 = vcombine.low %v4649_v39, %v4653_v4  ;;  %v4541_v39 = vld [vmem:[#allocation11 + $0x6f0] sm:$0xff] }
 0x478   :  { %7861 = vmatprep.subr.bf16.mxu0 %v9741_v34  ;;  %v9693_v34 = vcombine.high %v4641_v51, %v4645_v43 }
 0x479   :  { %7805 = vmatpush1.bf16.msra.mxu1 %v9548_v36  ;;  %v9500_v36 = vcombine.low %v4449_v7, %v4453_v13  ;;  %v4350_v7 = vld [vmem:[#allocation11 + $0xf8] sm:$0xff] }
 0x47a   :  { %7806 = vmatprep.subr.bf16.mxu1 %v9541_v21  ;;  %v9621_v21 = vcombine.high %v4569_v47, %v4573_v18 }
 0x47b   :  { %7862 = vmatpush2.bf16.msra.mxu0 %v9740_v40  ;;  %v9692_v40 = vcombine.low %v4641_v51, %v4645_v43  ;;  %v4533_v51 = vld [vmem:[#allocation11 + $0x6b0] sm:$0xff] }
 0x47c   :  { %7863 = vmatprep.subr.bf16.mxu0 %v9733_v52  ;;  %v9431_v52 = vcombine.high %v4378_v55, %v4382_v38 }
 0x47d   :  { %7807 = vmatpush1.bf16.msra.mxu1 %v9540_v37  ;;  %v9620_v37 = vcombine.low %v4569_v47, %v4573_v18  ;;  %v4342_v47 = vld [vmem:[#allocation11 + $0xb8] sm:$0xff] }
 0x47e   :  { %7808 = vmatprep.subr.bf16.mxu1 %v9533_v50  ;;  %v9613_v50 = vcombine.high %v4561_v45, %v4565_v19 }
 0x47f   :  { %7864 = vmatpush2.bf16.msra.mxu0 %v9732_v32  ;;  %v9430_v32 = vcombine.low %v4378_v55, %v4382_v38  ;;  %v4525_v55 = vld [vmem:[#allocation11 + $0x670] sm:$0xff] }
 0x480   :  { %7865 = vmatprep.subr.bf16.mxu0 %v9725_v15  ;;  %v9423_v15 = vcombine.high %v4370_v33, %v4374_v23  ;;  %v4517_v33 = vld [vmem:[#allocation11 + $0x630] sm:$0xff] }
 0x481   :  { %7809 = vmatpush1.bf16.msra.mxu1 %v9532_v8  ;;  %v9612_v8 = vcombine.low %v4561_v45, %v4565_v19  ;;  %v4334_v45 = vld [vmem:[#allocation11 + $0x78] sm:$0xff] }
 0x482   :  { %7810 = vmatprep.subr.bf16.mxu1 %v9525_v41 }
 0x483   :  { %7866 = vmatpush2.bf16.msra.mxu0 %v9724_v22  ;;  %v9605_v22 = vcombine.high %v4553_v20, %v4557_v28  ;;  %v4326_v20 = vld [vmem:[#allocation11 + $0x38] sm:$0xff] }
 0x484   :  { %7867 = vmatprep.subr.bf16.mxu0 %v9717_v60  ;;  %v4549_v60 = vld [vmem:[#allocation11 + $0x730] sm:$0xff] }
 0x485   :  { %7811 = vmatpush1.bf16.msra.mxu1 %v9524_v59  ;;  %v9597_v63 = vcombine.high %v4545_v57, %v4549_v60 }
 0x486   :  { %7812 = vmatprep.subr.bf16.mxu1 %v9517_v14  ;;  %v4354_v14 = vld [vmem:[#allocation11 + $0x118] sm:$0xff] }
 0x487   :  { %7868 = vmatpush2.bf16.msra.mxu0 %v9716_v31  ;;  %v4358_v31 = vld [vmem:[#allocation11 + $0x138] sm:$0xff] }
 0x488   :  { %7869 = vmatprep.subr.bf16.mxu0 %v9709_v0  ;;  %v9414_v0 = vcombine.low %v4362_v12, %v4366_v42  ;;  %v4765_v12 = vld [vmem:[#allocation11 + $0xdf0] sm:$0xff] }
 0x489   :  { %7813 = vmatpush1.bf16.msra.mxu1 %v9516_v58  ;;  %v4537_v58 = vld [vmem:[#allocation11 + $0x6d0] sm:$0xff] }
 0x48a   :  { %7814 = vmatprep.subr.bf16.mxu1 %v9509_v6  ;;  %v9596_v6 = vcombine.low %v4545_v57, %v4549_v60  ;;  %v9589_v13 = vcombine.high %v4537_v58, %v4541_v39  ;;  %v4446_v57 = vld [vmem:[#allocation11 + $0x3f8] sm:$0xff] }
 0x48b   :  { %7870 = vmatpush2.bf16.msra.mxu0 %v9708_v53  ;;  %v4346_v53 = vld [vmem:[#allocation11 + $0xd8] sm:$0xff] }
 0x48c   :  { %7871 = vmatprep.subr.bf16.mxu0 %v9701_v44  ;;  %v9406_v44 = vcombine.low %v4354_v14, %v4358_v31  ;;  %v9399_v43 = vcombine.high %v4346_v53, %v4350_v7 }
 0x48d   :  { %7815 = vmatpush1.bf16.msra.mxu1 %v9508_v49  ;;  %v4529_v49 = vld [vmem:[#allocation11 + $0x690] sm:$0xff] }
 0x48e   :  { %7816 = vmatprep.subr.bf16.mxu1 %v9501_v16  ;;  %v9588_v16 = vcombine.low %v4537_v58, %v4541_v39  ;;  %v9581_v18 = vcombine.high %v4529_v49, %v4533_v51 }
 0x48f   :  { %7872 = vmatpush2.bf16.msra.mxu0 %v9700_v17  ;;  %v4338_v17 = vld [vmem:[#allocation11 + $0x98] sm:$0xff] }
 0x490   :  { %7873 = vmatprep.subr.bf16.mxu0 %v9693_v34  ;;  %v9398_v34 = vcombine.low %v4346_v53, %v4350_v7  ;;  %v9391_v38 = vcombine.high %v4338_v17, %v4342_v47 }
 0x491   :  { %7817 = vmatpush1.bf16.msra.mxu1 %v9500_v36  ;;  %v4521_v36 = vld [vmem:[#allocation11 + $0x650] sm:$0xff] }
 0x492   :  { %7818 = vmatprep.subr.bf16.mxu1 %v9621_v21  ;;  %v9580_v21 = vcombine.low %v4529_v49, %v4533_v51  ;;  %v9573_v19 = vcombine.high %v4521_v36, %v4525_v55  ;;  %v4430_v49 = vld [vmem:[#allocation11 + $0x378] sm:$0xff] }
 0x493   :  { %7874 = vmatpush2.bf16.msra.mxu0 %v9692_v40  ;;  %v4330_v40 = vld [vmem:[#allocation11 + $0x58] sm:$0xff] }
 0x494   :  { %7925 = vmatprep.subr.bf16.mxu0 %v9431_v52  ;;  %v9390_v52 = vcombine.low %v4338_v17, %v4342_v47  ;;  %v9383_v23 = vcombine.high %v4330_v40, %v4334_v45  ;;  %v4737_v47 = vld [vmem:[#allocation11 + $0xd10] sm:$0xff] }
 0x495   :  { %7819 = vmatpush2.bf16.msra.mxu1 %v9620_v37  ;;  %v4513_v37 = vld [vmem:[#allocation11 + $0x610] sm:$0xff] }
 0x496   :  { %v10741_v41 = vpop.f32.mrf.mxu0  ;;  %7876 = vmatmul.mubr.bf16.vlgmr.msra.gmra.mxu0 %v10691_v25  ;;  %7820 = vmatprep.subr.bf16.mxu1 %v9613_v50  ;;  %v9572_v50 = vcombine.low %v4521_v36, %v4525_v55  ;;  %v9565_v28 = vcombine.high %v4513_v37, %v4517_v33  ;;  %v4418_v55 = vld [vmem:[#allocation11 + $0x318] sm:$0xff] }
 0x497   :  { %7926 = vmatpush1.bf16.msra.mxu0 %v9430_v32  ;;  %7957 = vmatprep.mubr.bf16.mxu0 %v10641_v27  ;;  %v9407_v27 = vcombine.high %v4354_v14, %v4358_v31  ;;  %v4322_v32 = vld [vmem:[#allocation11 + $0x18] sm:$0xff]  ;;  %v4757_v14 = vld [vmem:[#allocation11 + $0xdb0] sm:$0xff] }
 0x498   :  { %v10745_v59 = vpop.f32.mrf.mxu0  ;;  %7927 = vmatprep.subr.bf16.mxu0 %v9423_v15  ;;  %v9382_v15 = vcombine.low %v4330_v40, %v4334_v45  ;;  %v9375_v42 = vcombine.high %v4322_v32, %v4326_v20 }
 0x499   :  { %7821 = vmatpush2.bf16.msra.mxu1 %v9612_v8  ;;  %v4761_v8 = vld [vmem:[#allocation11 + $0xdd0] sm:$0xff] }
 0x49a   :  { %v7635_v62 = vpop.f32.mrf.mxu0  ;;  %7822 = vmatprep.subr.bf16.mxu1 %v9605_v22  ;;  %v9564_v22 = vcombine.low %v4513_v37, %v4517_v33  ;;  %v9813_v60 = vcombine.high %v4761_v8, %v4765_v12  ;;  %v4410_v33 = vld [vmem:[#allocation11 + $0x2d8] sm:$0xff] }
 0x49b   :  { %7928 = vmatpush1.bf16.msra.mxu0 %v9422_v56  ;;  %v4442_v56 = vld [vmem:[#allocation11 + $0x3d8] sm:$0xff]  ;;  %v9812_v62 = vcombine.low %v4761_v8, %v4765_v12 }
 0x49c   :  { %v7636_v4 = vpop.f32.mrf.mxu0  ;;  %7929 = vmatprep.subr.bf16.mxu0 %v9415_v35  ;;  %v9374_v35 = vcombine.low %v4322_v32, %v4326_v20  ;;  %v9495_v31 = vcombine.high %v4442_v56, %v4446_v57  ;;  %v9494_v39 = vcombine.low %v4442_v56, %v4446_v57  ;;  %v4721_v20 = vld [vmem:[#allocation11 + $0xc90] sm:$0xff]  ;;  %v4402_v12 = vld [vmem:[#allocation11 + $0x298] sm:$0xff] }
 0x49d   :  { %7823 = vmatpush2.bf16.msra.mxu1 %v9604_v30  ;;  %v4753_v30 = vld [vmem:[#allocation11 + $0xd90] sm:$0xff] }
 0x49e   :  { %7824 = vmatprep.subr.bf16.mxu1 %v9597_v63  ;;  %v4434_v63 = vld [vmem:[#allocation11 + $0x398] sm:$0xff]  ;;  %v9805_v58 = vcombine.high %v4753_v30, %v4757_v14  ;;  %v4745_v4 = vld [vmem:[#allocation11 + $0xd50] sm:$0xff] }
 0x49f   :  { %7930 = vmatpush1.bf16.msra.mxu0 %v9414_v0  ;;  %v4438_v0 = vld [vmem:[#allocation11 + $0x3b8] sm:$0xff]  ;;  %v4713_v57 = vld [vmem:[#allocation11 + $0xc50] sm:$0xff] }
 0x4a0   :  { %7931 = vmatprep.subr.bf16.mxu0 %v9407_v27  ;;  %v4749_v27 = vld [vmem:[#allocation11 + $0xd70] sm:$0xff]  ;;  %v9487_v53 = vcombine.high %v4434_v63, %v4438_v0  ;;  %v9486_v17 = vcombine.low %v4434_v63, %v4438_v0 }
 0x4a1   :  { %7825 = vmatpush2.bf16.msra.mxu1 %v9596_v6  ;;  %v9796_v36 = vcombine.low %v4745_v4, %v4749_v27  ;;  %v4705_v0 = vld [vmem:[#allocation11 + $0xc10] sm:$0xff] }
 0x4a2   :  { %7826 = vmatprep.subr.bf16.mxu1 %v9589_v13  ;;  %v9804_v13 = vcombine.low %v4753_v30, %v4757_v14  ;;  %v4394_v14 = vld [vmem:[#allocation11 + $0x258] sm:$0xff] }
 0x4a3   :  { %7932 = vmatpush1.bf16.msra.mxu0 %v9406_v44  ;;  %v4426_v44 = vld [vmem:[#allocation11 + $0x358] sm:$0xff] }
 0x4a4   :  { %7933 = vmatprep.subr.bf16.mxu0 %v9399_v43  ;;  %v9797_v43 = vcombine.high %v4745_v4, %v4749_v27  ;;  %v9478_v45 = vcombine.low %v4426_v44, %v4430_v49  ;;  %v4386_v27 = vld [vmem:[#allocation11 + $0x218] sm:$0xff] }
 0x4a5   :  { %7827 = vmatpush2.bf16.msra.mxu1 %v9588_v16 }
 0x4a6   :  { %7828 = vmatprep.subr.bf16.mxu1 %v9581_v18  ;;  %v4741_v18 = vld [vmem:[#allocation11 + $0xd30] sm:$0xff] }
 0x4a7   :  { %7934 = vmatpush1.bf16.msra.mxu0 %v9398_v34  ;;  %v9789_v40 = vcombine.high %v4737_v47, %v4741_v18  ;;  %v9788_v37 = vcombine.low %v4737_v47, %v4741_v18  ;;  %v4638_v47 = vld [vmem:[#allocation11 + $0x9f8] sm:$0xff] }
 0x4a8   :  { %7935 = vmatprep.subr.bf16.mxu0 %v9391_v38  ;;  %v4422_v38 = vld [vmem:[#allocation11 + $0x338] sm:$0xff] }
 0x4a9   :  { %7829 = vmatpush2.bf16.msra.mxu1 %v9580_v21  ;;  %v9470_v32 = vcombine.low %v4418_v55, %v4422_v38 }
 0x4aa   :  { %7830 = vmatprep.subr.bf16.mxu1 %v9573_v19  ;;  %v4729_v19 = vld [vmem:[#allocation11 + $0xcd0] sm:$0xff] }
 0x4ab   :  { %7936 = vmatpush1.bf16.msra.mxu0 %v9390_v52  ;;  %v4733_v52 = vld [vmem:[#allocation11 + $0xcf0] sm:$0xff] }
 0x4ac   :  { %7937 = vmatprep.subr.bf16.mxu0 %v9383_v23  ;;  %v4414_v23 = vld [vmem:[#allocation11 + $0x2f8] sm:$0xff]  ;;  %v9780_v8 = vcombine.low %v4729_v19, %v4733_v52 }
 0x4ad   :  { %7831 = vmatpush2.bf16.msra.mxu1 %v9572_v50  ;;  %v9781_v50 = vcombine.high %v4729_v19, %v4733_v52  ;;  %v9462_v56 = vcombine.low %v4410_v33, %v4414_v23  ;;  %v4809_v52 = vld [vmem:[#allocation11 + $0xf50] sm:$0xff] }
 0x4ae   :  { %7832 = vmatprep.subr.bf16.mxu1 %v9565_v28  ;;  %v4725_v28 = vld [vmem:[#allocation11 + $0xcb0] sm:$0xff] }
 0x4af   :  { %7938 = vmatpush1.bf16.msra.mxu0 %v9382_v15  ;;  %v9463_v15 = vcombine.high %v4410_v33, %v4414_v23  ;;  %v9772_v30 = vcombine.low %v4721_v20, %v4725_v28  ;;  %v4618_v23 = vld [vmem:[#allocation11 + $0x958] sm:$0xff] }
 0x4b0   :  { %7939 = vmatprep.subr.bf16.mxu0 %v9375_v42  ;;  %v4406_v42 = vld [vmem:[#allocation11 + $0x2b8] sm:$0xff] }
 0x4b1   :  { %7833 = vmatpush2.bf16.msra.mxu1 %v9564_v22  ;;  %v9773_v22 = vcombine.high %v4721_v20, %v4725_v28  ;;  %v9454_v63 = vcombine.low %v4402_v12, %v4406_v42 }
 0x4b2   :  { %7884 = vmatprep.subr.bf16.mxu1 %v9813_v60  ;;  %v4717_v60 = vld [vmem:[#allocation11 + $0xc70] sm:$0xff] }
 0x4b3   :  { %7940 = vmatpush1.bf16.msra.mxu0 %v9374_v35  ;;  %v9455_v35 = vcombine.high %v4402_v12, %v4406_v42  ;;  %v9764_v4 = vcombine.low %v4713_v57, %v4717_v60 }
 0x4b4   :  { %7835 = vmatmul.mubr.bf16.vlgmr.msra.gmra.mxu1 %v10664_v26  ;;  %v7590_v6 = vpop.f32.mrf.mxu1  ;;  %7941 = vmatprep.subr.bf16.mxu0 %v9495_v31  ;;  %v4398_v31 = vld [vmem:[#allocation11 + $0x278] sm:$0xff] }
 0x4b5   :  { %v10749_v7 = vadd.f32 %v7590_v6, %v10733_v3  ;;  %7885 = vmatpush1.bf16.msra.mxu1 %v9812_v62  ;;  %7916 = vmatprep.mubr.bf16.mxu1 %v10711_v29  ;;  %v9479_v3 = vcombine.high %v4426_v44, %v4430_v49  ;;  %v9765_v62 = vcombine.high %v4713_v57, %v4717_v60  ;;  %v4390_v6 = vld [vmem:[#allocation11 + $0x238] sm:$0xff]  ;;  %v4825_v44 = vld [vmem:[#allocation11 + $0xfd0] sm:$0xff] }
 0x4b6   :  { %v7592_v51 = vpop.f32.mrf.mxu1  ;;  %7886 = vmatprep.subr.bf16.mxu1 %v9805_v58  ;;  %v4709_v58 = vld [vmem:[#allocation11 + $0xc30] sm:$0xff]  ;;  %v4614_v57 = vld [vmem:[#allocation11 + $0x938] sm:$0xff] }
 0x4b7   :  { %v10753_v16 = vadd.f32 %v7592_v51, %v10737_v9  ;;  %7942 = vmatpush2.bf16.msra.mxu0 %v9494_v39  ;;  %v9471_v9 = vcombine.high %v4418_v55, %v4422_v38  ;;  %v9447_v39 = vcombine.high %v4394_v14, %v4398_v31  ;;  %v4829_v49 = vld [vmem:[#allocation11 + $0xff0] sm:$0xff]  ;;  %v9439_v51 = vcombine.high %v4386_v27, %v4390_v6 }
 0x4b8   :  { %v7594_v34 = vpop.f32.mrf.mxu1  ;;  %7943 = vmatprep.subr.bf16.mxu0 %v9487_v53  ;;  %v9757_v53 = vcombine.high %v4705_v0, %v4709_v58  ;;  %v9877_v18 = vcombine.high %v4825_v44, %v4829_v49  ;;  %v9876_v38 = vcombine.low %v4825_v44, %v4829_v49  ;;  %v4598_v44 = vld [vmem:[#allocation11 + $0x8b8] sm:$0xff] }
 0x4b9   :  { %7887 = vmatpush1.bf16.msra.mxu1 %v9804_v13  ;;  %v9446_v13 = vcombine.low %v4394_v14, %v4398_v31  ;;  %v9438_v34 = vcombine.low %v4386_v27, %v4390_v6  ;;  %v4797_v14 = vld [vmem:[#allocation11 + $0xef0] sm:$0xff] }
 0x4ba   :  { %v7595_v21 = vpop.f32.mrf.mxu1  ;;  %7888 = vmatprep.subr.bf16.mxu1 %v9797_v43  ;;  %v9756_v43 = vcombine.low %v4705_v0, %v4709_v58  ;;  %v4606_v0 = vld [vmem:[#allocation11 + $0x8f8] sm:$0xff]  ;;  %v4789_v27 = vld [vmem:[#allocation11 + $0xeb0] sm:$0xff] }
 0x4bb   :  { %7944 = vmatpush2.bf16.msra.mxu0 %v9486_v17  ;;  %v4634_v17 = vld [vmem:[#allocation11 + $0x9d8] sm:$0xff] }
 0x4bc   :  { %7945 = vmatprep.subr.bf16.mxu0 %v9479_v3  ;;  %v4817_v3 = vld [vmem:[#allocation11 + $0xf90] sm:$0xff]  ;;  %v9687_v55 = vcombine.high %v4634_v17, %v4638_v47  ;;  %v4626_v21 = vld [vmem:[#allocation11 + $0x998] sm:$0xff]  ;;  %v9686_v19 = vcombine.low %v4634_v17, %v4638_v47 }
 0x4bd   :  { %7889 = vmatpush1.bf16.msra.mxu1 %v9796_v36  ;;  %v4821_v36 = vld [vmem:[#allocation11 + $0xfb0] sm:$0xff] }
 0x4be   :  { %7890 = vmatprep.subr.bf16.mxu1 %v9789_v40  ;;  %v4630_v40 = vld [vmem:[#allocation11 + $0x9b8] sm:$0xff]  ;;  %v9868_v33 = vcombine.low %v4817_v3, %v4821_v36  ;;  %v4781_v17 = vld [vmem:[#allocation11 + $0xe70] sm:$0xff] }
 0x4bf   :  { %7946 = vmatpush2.bf16.msra.mxu0 %v9478_v45  ;;  %v9869_v45 = vcombine.high %v4817_v3, %v4821_v36  ;;  %v9678_v28 = vcombine.low %v4626_v21, %v4630_v40  ;;  %v4590_v3 = vld [vmem:[#allocation11 + $0x878] sm:$0xff] }
 0x4c0   :  { %7947 = vmatprep.subr.bf16.mxu0 %v9471_v9  ;;  %v4813_v9 = vld [vmem:[#allocation11 + $0xf70] sm:$0xff] }
 0x4c1   :  { %7891 = vmatpush1.bf16.msra.mxu1 %v9788_v37  ;;  %v9679_v37 = vcombine.high %v4626_v21, %v4630_v40  ;;  %v9861_v20 = vcombine.high %v4809_v52, %v4813_v9  ;;  %v4773_v21 = vld [vmem:[#allocation11 + $0xe30] sm:$0xff] }
 0x4c2   :  { %7892 = vmatprep.subr.bf16.mxu1 %v9781_v50  ;;  %v4622_v50 = vld [vmem:[#allocation11 + $0x978] sm:$0xff] }
 0x4c3   :  { %7948 = vmatpush2.bf16.msra.mxu0 %v9470_v32  ;;  %v9671_v42 = vcombine.high %v4618_v23, %v4622_v50 }
 0x4c4   :  { %7949 = vmatprep.subr.bf16.mxu0 %v9463_v15  ;;  %v4801_v15 = vld [vmem:[#allocation11 + $0xf10] sm:$0xff] }
 0x4c5   :  { %7893 = vmatpush1.bf16.msra.mxu1 %v9780_v8  ;;  %v4805_v8 = vld [vmem:[#allocation11 + $0xf30] sm:$0xff] }
 0x4c6   :  { %7894 = vmatprep.subr.bf16.mxu1 %v9773_v22  ;;  %v9860_v22 = vcombine.low %v4809_v52, %v4813_v9  ;;  %v4582_v52 = vld [vmem:[#allocation11 + $0x838] sm:$0xff] }
 0x4c7   :  { %7950 = vmatpush2.bf16.msra.mxu0 %v9462_v56  ;;  %v4610_v56 = vld [vmem:[#allocation11 + $0x918] sm:$0xff] }
 0x4c8   :  { %7951 = vmatprep.subr.bf16.mxu0 %v9455_v35  ;;  %v9853_v35 = vcombine.high %v4801_v15, %v4805_v8 }
 0x4c9   :  { %7895 = vmatpush1.bf16.msra.mxu1 %v9772_v30  ;;  %v4793_v30 = vld [vmem:[#allocation11 + $0xed0] sm:$0xff] }
 0x4ca   :  { %7896 = vmatprep.subr.bf16.mxu1 %v9765_v62  ;;  %v9852_v62 = vcombine.low %v4801_v15, %v4805_v8  ;;  %v9845_v58 = vcombine.high %v4793_v30, %v4797_v14  ;;  %v4702_v15 = vld [vmem:[#allocation11 + $0xbf8] sm:$0xff] }
 0x4cb   :  { %7952 = vmatpush2.bf16.msra.mxu0 %v9454_v63  ;;  %v4602_v63 = vld [vmem:[#allocation11 + $0x8d8] sm:$0xff] }
 0x4cc   :  { %7953 = vmatprep.subr.bf16.mxu0 %v9447_v39  ;;  %v9662_v39 = vcombine.low %v4610_v56, %v4614_v57  ;;  %v9655_v6 = vcombine.high %v4602_v63, %v4606_v0 }
 0x4cd   :  { %7897 = vmatpush1.bf16.msra.mxu1 %v9764_v4  ;;  %v4785_v4 = vld [vmem:[#allocation11 + $0xe90] sm:$0xff] }
 0x4ce   :  { %7898 = vmatprep.subr.bf16.mxu1 %v9757_v53  ;;  %v9844_v53 = vcombine.low %v4793_v30, %v4797_v14  ;;  %v9837_v49 = vcombine.high %v4785_v4, %v4789_v27  ;;  %v4690_v14 = vld [vmem:[#allocation11 + $0xb98] sm:$0xff] }
 0x4cf   :  { %7954 = vmatpush2.bf16.msra.mxu0 %v9446_v13  ;;  %v4594_v13 = vld [vmem:[#allocation11 + $0x898] sm:$0xff] }
 0x4d0   :  { %7955 = vmatprep.subr.bf16.mxu0 %v9439_v51  ;;  %v9654_v51 = vcombine.low %v4602_v63, %v4606_v0  ;;  %v9647_v47 = vcombine.high %v4594_v13, %v4598_v44  ;;  %v4494_v0 = vld [vmem:[#allocation11 + $0x578] sm:$0xff] }
 0x4d1   :  { %7899 = vmatpush1.bf16.msra.mxu1 %v9756_v43  ;;  %v4777_v43 = vld [vmem:[#allocation11 + $0xe50] sm:$0xff] }
 0x4d2   :  { %7900 = vmatprep.subr.bf16.mxu1 %v9877_v18  ;;  %v9836_v18 = vcombine.low %v4785_v4, %v4789_v27  ;;  %v9829_v36 = vcombine.high %v4777_v43, %v4781_v17 }
 0x4d3   :  { %7956 = vmatpush2.bf16.msra.mxu0 %v9438_v34  ;;  %v4586_v34 = vld [vmem:[#allocation11 + $0x858] sm:$0xff] }
 0x4d4   :  { %8007 = vmatprep.subr.bf16.mxu0 %v9687_v55  ;;  %v9646_v55 = vcombine.low %v4594_v13, %v4598_v44  ;;  %v9639_v40 = vcombine.high %v4586_v34, %v4590_v3 }
 0x4d5   :  { %7901 = vmatpush2.bf16.msra.mxu1 %v9876_v38  ;;  %v4769_v38 = vld [vmem:[#allocation11 + $0xe10] sm:$0xff] }
 0x4d6   :  { %v10755_v32 = vpop.f32.mrf.mxu0  ;;  %7958 = vmatmul.mubr.bf16.vlgmr.msra.gmra.mxu0 %v10662_v11  ;;  %7902 = vmatprep.subr.bf16.mxu1 %v9869_v45  ;;  %v9670_v11 = vcombine.low %v4618_v23, %v4622_v50  ;;  %v9828_v45 = vcombine.low %v4777_v43, %v4781_v17  ;;  %v9821_v9 = vcombine.high %v4769_v38, %v4773_v21  ;;  %v4510_v23 = vld [vmem:[#allocation11 + $0x5f8] sm:$0xff] }
 0x4d7   :  { %8008 = vmatpush1.bf16.msra.mxu0 %v9686_v19  ;;  %8039 = vmatprep.mubr.bf16.mxu0 %v10675_v54  ;;  %v9663_v54 = vcombine.high %v4610_v56, %v4614_v57  ;;  %v4578_v19 = vld [vmem:[#allocation11 + $0x818] sm:$0xff] }
 0x4d8   :  { %v10759_v12 = vpop.f32.mrf.mxu0  ;;  %8009 = vmatprep.subr.bf16.mxu0 %v9679_v37  ;;  %v9638_v37 = vcombine.low %v4586_v34, %v4590_v3  ;;  %v9631_v50 = vcombine.high %v4578_v19, %v4582_v52  ;;  %v9630_v56 = vcombine.low %v4578_v19, %v4582_v52  ;;  %v4498_v57 = vld [vmem:[#allocation11 + $0x598] sm:$0xff] }
 0x4d9   :  { %7903 = vmatpush2.bf16.msra.mxu1 %v9868_v33  ;;  %v4506_v33 = vld [vmem:[#allocation11 + $0x5d8] sm:$0xff] }
 0x4da   :  { %v7717_v60 = vpop.f32.mrf.mxu0  ;;  %7904 = vmatprep.subr.bf16.mxu1 %v9861_v20  ;;  %v9820_v20 = vcombine.low %v4769_v38, %v4773_v21  ;;  %v9559_v8 = vcombine.high %v4506_v33, %v4510_v23  ;;  %v9558_v30 = vcombine.low %v4506_v33, %v4510_v23  ;;  %v4486_v43 = vld [vmem:[#allocation11 + $0x538] sm:$0xff] }
 0x4db   :  { %8010 = vmatpush1.bf16.msra.mxu0 %v9678_v28  ;;  %v4698_v28 = vld [vmem:[#allocation11 + $0xbd8] sm:$0xff] }
 0x4dc   :  { %v7718_v31 = vpop.f32.mrf.mxu0  ;;  %8011 = vmatprep.subr.bf16.mxu0 %v9671_v42  ;;  %v10761_v42 = vld [vmem:[#allocation13] sm:$0xff]  ;;  %v4502_v60 = vld [vmem:[#allocation11 + $0x5b8] sm:$0xff]  ;;  %v9750_v63 = vcombine.low %v4698_v28, %v4702_v15 }
 0x4dd   :  { %7905 = vmatpush2.bf16.msra.mxu1 %v9860_v22  ;;  %v4844_v22 = vrot.slane %v10761_v42, %v10495_v46  ;;  %v4694_v31 = vld [vmem:[#allocation11 + $0xbb8] sm:$0xff]  ;;  %v9550_v27 = vcombine.low %v4498_v57, %v4502_v60 }
 0x4de   :  { %7906 = vmatprep.subr.bf16.mxu1 %v9853_v35  ;;  %v9751_v35 = vcombine.high %v4698_v28, %v4702_v15  ;;  %v4490_v46 = vld [vmem:[#allocation11 + $0x558] sm:$0xff] }
 0x4df   :  { %8012 = vmatpush1.bf16.msra.mxu0 %v9670_v11  ;;  %v4848_v11 = vrot.slane %v10761_v42, %v10501_v48  ;;  %v4674_v34 = vld [vmem:[#allocation11 + $0xb18] sm:$0xff] }
 0x4e0   :  { %8013 = vmatprep.subr.bf16.mxu0 %v9663_v54  ;;  %v9551_v54 = vcombine.high %v4498_v57, %v4502_v60  ;;  %v4678_v3 = vld [vmem:[#allocation11 + $0xb38] sm:$0xff] }
 0x4e1   :  { %7907 = vmatpush2.bf16.msra.mxu1 %v9852_v62  ;;  %v7632_v62 = vadd.f32 %v10741_v41, %v4844_v22  ;;  %v7634_v4 = vadd.f32 %v10745_v59, %v4848_v11  ;;  %v9543_v41 = vcombine.high %v4490_v46, %v4494_v0  ;;  %v4666_v52 = vld [vmem:[#allocation11 + $0xad8] sm:$0xff]  ;;  %v9726_v33 = vcombine.low %v4674_v34, %v4678_v3 }
 0x4e2   :  { %7908 = vmatprep.subr.bf16.mxu1 %v9845_v58  ;;  %v4470_v23 = vld [vmem:[#allocation11 + $0x4b8] sm:$0xff] }
 0x4e3   :  { %8014 = vmatpush1.bf16.msra.mxu0 %v9662_v39  ;;  %v9743_v39 = vcombine.high %v4690_v14, %v4694_v31  ;;  %v4658_v28 = vld [vmem:[#allocation11 + $0xa98] sm:$0xff] }
 0x4e4   :  { %8015 = vmatprep.subr.bf16.mxu0 %v9655_v6  ;;  %v4682_v6 = vld [vmem:[#allocation11 + $0xb58] sm:$0xff] }
 0x4e5   :  { %7909 = vmatpush2.bf16.msra.mxu1 %v9844_v53  ;;  %v4686_v53 = vld [vmem:[#allocation11 + $0xb78] sm:$0xff] }
 0x4e6   :  { %7910 = vmatprep.subr.bf16.mxu1 %v9837_v49  ;;  %v9742_v49 = vcombine.low %v4690_v14, %v4694_v31  ;;  %v9735_v59 = vcombine.high %v4682_v6, %v4686_v53  ;;  %v9734_v21 = vcombine.low %v4682_v6, %v4686_v53  ;;  %v4662_v15 = vld [vmem:[#allocation11 + $0xab8] sm:$0xff] }
 0x4e7   :  { %8016 = vmatpush1.bf16.msra.mxu0 %v9654_v51  ;;  %v4482_v51 = vld [vmem:[#allocation11 + $0x518] sm:$0xff]  ;;  %v9711_v60 = vcombine.high %v4658_v28, %v4662_v15  ;;  %v9710_v31 = vcombine.low %v4658_v28, %v4662_v15 }
 0x4e8   :  { %8017 = vmatprep.subr.bf16.mxu0 %v9647_v47  ;;  %v9535_v38 = vcombine.high %v4482_v51, %v4486_v43  ;;  %v9534_v19 = vcombine.low %v4482_v51, %v4486_v43  ;;  %v4462_v57 = vld [vmem:[#allocation11 + $0x478] sm:$0xff] }
 0x4e9   :  { %7911 = vmatpush2.bf16.msra.mxu1 %v9836_v18  ;;  %v8098_v18 = vmul.f32 0.70710677, %v10753_v16  ;;  %v4650_v11 = vld [vmem:[#allocation11 + $0xa58] sm:$0xff] }
 0x4ea   :  { %7912 = vmatprep.subr.bf16.mxu1 %v9829_v36  ;;  %v4574_v6 = vld [vmem:[#allocation11 + $0x7f8] sm:$0xff] }
 0x4eb   :  { %8018 = vmatpush1.bf16.msra.mxu0 %v9646_v55  ;;  %10144 = verf.f32 %v8098_v18  ;;  %v4562_v43 = vld [vmem:[#allocation11 + $0x798] sm:$0xff] }
 0x4ec   :  { %8019 = vmatprep.subr.bf16.mxu0 %v9639_v40  ;;  %v4474_v40 = vld [vmem:[#allocation11 + $0x4d8] sm:$0xff] }
 0x4ed   :  { %7913 = vmatpush2.bf16.msra.mxu1 %v9828_v45  ;;  %v9727_v45 = vcombine.high %v4674_v34, %v4678_v3  ;;  %v10049_v3 = vld [vmem:[#allocation14 + $0x38] sm:$0xff]   ;;  %v4538_v28 = vld [vmem:[#allocation11 + $0x6d8] sm:$0xff] }
 0x4ee   :  { %7914 = vmatprep.subr.bf16.mxu1 %v9821_v9  ;;  %v4670_v9 = vld [vmem:[#allocation11 + $0xaf8] sm:$0xff] }
 0x4ef   :  { %8020 = vmatpush1.bf16.msra.mxu0 %v9638_v37  ;;  %v9718_v22 = vcombine.low %v4666_v52, %v4670_v9  ;;  %v4542_v15 = vld [vmem:[#allocation11 + $0x6f8] sm:$0xff] }
 0x4f0   :  { %8021 = vmatprep.subr.bf16.mxu0 %v9631_v50  ;;  %v9719_v50 = vcombine.high %v4666_v52, %v4670_v9  ;;  %v4546_v52 = vld [vmem:[#allocation11 + $0x718] sm:$0xff] }
 0x4f1   :  { %7915 = vmatpush2.bf16.msra.mxu1 %v9820_v20  ;;  %v4550_v9 = vld [vmem:[#allocation11 + $0x738] sm:$0xff] }
 0x4f2   :  { %7966 = vmatprep.subr.bf16.mxu1 %v9559_v8 }
 0x4f3   :  { %8022 = vmatpush1.bf16.msra.mxu0 %v9630_v56  ;;  %v4458_v56 = vld [vmem:[#allocation11 + $0x458] sm:$0xff] }
 0x4f4   :  { %v7672_v58 = vpop.f32.mrf.mxu1  ;;  %7917 = vmatmul.mubr.bf16.vlgmr.msra.gmra.mxu1 %v10713_v24  ;;  %8023 = vmatprep.subr.bf16.mxu0 %v9751_v35  ;;  %v9511_v14 = vcombine.high %v4458_v56, %v4462_v57 }
 0x4f5   :  { %v7673_v48 = vadd.f32 %v7672_v58, %v7632_v62  ;;  %7967 = vmatpush1.bf16.msra.mxu1 %v9558_v30  ;;  %7998 = vmatprep.mubr.bf16.mxu1 %v10644_v10  ;;  %v9542_v10 = vcombine.low %v4490_v46, %v4494_v0  ;;  %v4654_v30 = vld [vmem:[#allocation11 + $0xa78] sm:$0xff]  ;;  %v9510_v46 = vcombine.low %v4458_v56, %v4462_v57 }
 0x4f6   :  { %v7674_v13 = vpop.f32.mrf.mxu1  ;;  %7968 = vmatprep.subr.bf16.mxu1 %v9551_v54  ;;  %v4450_v54 = vld [vmem:[#allocation11 + $0x418] sm:$0xff]  ;;  %v9598_v56 = vcombine.low %v4546_v52, %v4550_v9  ;;  %v9591_v57 = vcombine.high %v4538_v28, %v4542_v15 }
 0x4f7   :  { %v7675_v44 = vadd.f32 %v7674_v13, %v7634_v4  ;;  %8024 = vmatpush2.bf16.msra.mxu0 %v9750_v63  ;;  %v10772_v17 = vadd.f32 %v10755_v32, %v7673_v48  ;;  %v4478_v32 = vld [vmem:[#allocation11 + $0x4f8] sm:$0xff]  ;;  %v9703_v63 = vcombine.high %v4650_v11, %v4654_v30  ;;  %v9702_v48 = vcombine.low %v4650_v11, %v4654_v30  ;;  %v10056_v30 = vld [vmem:[#allocation14 + $0x58] sm:$0xff]  }
 0x4f8   :  { %v7676_v47 = vpop.f32.mrf.mxu1  ;;  %8025 = vmatprep.subr.bf16.mxu0 %v9743_v39  ;;  %v9527_v37 = vcombine.high %v4474_v40, %v4478_v32  ;;  %v9526_v20 = vcombine.low %v4474_v40, %v4478_v32  ;;  %v4454_v62 = vld [vmem:[#allocation11 + $0x438] sm:$0xff]  ;;  %v10145_v39 = vpop.eup %10144 }
 0x4f9   :  { %7969 = vmatpush1.bf16.msra.mxu1 %v9550_v27  ;;  %v10776_v36 = vadd.f32 %v10759_v12, %v7675_v44  ;;  %v4466_v12 = vld [vmem:[#allocation11 + $0x498] sm:$0xff]  ;;  %v9503_v4 = vcombine.high %v4450_v54, %v4454_v62  ;;  %v9502_v13 = vcombine.low %v4450_v54, %v4454_v62  ;;  %v10057_v54 = vld [vmem:[#allocation14 + $0x18] sm:$0xff]  }
 0x4fa   :  { %v7677_v55 = vpop.f32.mrf.mxu1  ;;  %7970 = vmatprep.subr.bf16.mxu1 %v9543_v41  ;;  %v9519_v8 = vcombine.high %v4466_v12, %v4470_v23  ;;  %v9518_v35 = vcombine.low %v4466_v12, %v4470_v23  ;;  %v4642_v0 = vld [vmem:[#allocation11 + $0xa18] sm:$0xff]  ;;  %v8114_v41 = vadd.f32 1.0, %v10145_v39  ;;  %v10052_v12 = vld [vmem:[#allocation14 + $0x68] sm:$0xff]  }
 0x4fb   :  { %8026 = vmatpush2.bf16.msra.mxu0 %v9742_v49  ;;  %v4646_v58 = vld [vmem:[#allocation11 + $0xa38] sm:$0xff]  ;;  %v8090_v49 = vmul.f32 0.5, %v10753_v16 }
 0x4fc   :  { %8027 = vmatprep.subr.bf16.mxu0 %v9735_v59  ;;  %v4570_v27 = vld [vmem:[#allocation11 + $0x7d8] sm:$0xff]  ;;  %v9695_v53 = vcombine.high %v4642_v0, %v4646_v58  ;;  %v9694_v51 = vcombine.low %v4642_v0, %v4646_v58  ;;  %v10048_v59 = vld [vmem:[#allocation14 + $0x78] sm:$0xff]  }
 0x4fd   :  { %7971 = vmatpush1.bf16.msra.mxu1 %v9542_v10  ;;  %v9623_v44 = vcombine.high %v4570_v27, %v4574_v6  ;;  %v4566_v47 = vld [vmem:[#allocation11 + $0x7b8] sm:$0xff]  ;;  %v9622_v18 = vcombine.low %v4570_v27, %v4574_v6  ;;  %v8122_v10 = vmul.f32 %v8114_v41, %v8090_v49  ;;  %v10060_v27 = vld [vmem:[#allocation14 + $0x48] sm:$0xff]  }
 0x4fe   :  { %7972 = vmatprep.subr.bf16.mxu1 %v9535_v38  ;;  %v9615_v34 = vcombine.high %v4562_v43, %v4566_v47  ;;  %v4554_v55 = vld [vmem:[#allocation11 + $0x758] sm:$0xff]  ;;  %v9614_v40 = vcombine.low %v4562_v43, %v4566_v47  ;;  %v10061_v41 = vld [vmem:[#allocation14 + $0x8] sm:$0xff]   ;;  %v10062_v43 = vld [vmem:[#allocation14 + $0x40] sm:$0xff]  }
 0x4ff   :  { %8028 = vmatpush2.bf16.msra.mxu0 %v9734_v21  ;;  %v4558_v38 = vld [vmem:[#allocation11 + $0x778] sm:$0xff]  ;;  %v8130_v16 = vpack.c.bf16 %v8122_v10, %v8122_v10  ;;  %v10063_v10 = vld [vmem:[#allocation14] sm:$0xff]  }
 0x500   :  { %8029 = vmatprep.subr.bf16.mxu0 %v9727_v45  ;;  %v10050_v21 = vld [vmem:[#allocation14 + $0x70] sm:$0xff]   ;;  %v9607_v45 = vcombine.high %v4554_v55, %v4558_v38  ;;  %v9606_v23 = vcombine.low %v4554_v55, %v4558_v38  ;;  %v10080_v38 = vld [vmem:[#allocation14 + $0x178] sm:$0xff]  }
 0x501   :  { %7973 = vmatpush1.bf16.msra.mxu1 %v9534_v19  ;;  %v10051_v19 = vld [vmem:[#allocation14 + $0x30] sm:$0xff]  }
 0x502   :  { %7974 = vmatprep.subr.bf16.mxu1 %v9527_v37  ;;  %v8097_v37 = vmul.f32 0.70710677, %v10749_v7  ;;  %v4534_v11 = vld [vmem:[#allocation11 + $0x6b8] sm:$0xff] }
 0x503   :  { %8030 = vmatpush2.bf16.msra.mxu0 %v9726_v33  ;;  %v4522_v62 = vld [vmem:[#allocation11 + $0x658] sm:$0xff] }
 0x504   :  { %8031 = vmatprep.subr.bf16.mxu0 %v9719_v50  ;;  %10146 = verf.f32 %v8097_v37  ;;  %v10059_v39 = vld [vmem:[#allocation14 + $0x10] sm:$0xff]  }
 0x505   :  { %7975 = vmatpush1.bf16.msra.mxu1 %v9526_v20  ;;  %v9599_v20 = vcombine.high %v4546_v52, %v4550_v9  ;;  %v4766_v49 = vld [vmem:[#allocation11 + $0xdf8] sm:$0xff] }
 0x506   :  { %7976 = vmatprep.subr.bf16.mxu1 %v9519_v8 }
 0x507   :  { %8032 = vmatpush2.bf16.msra.mxu0 %v9718_v22  ;;  %v10054_v22 = vld [vmem:[#allocation14 + $0x60] sm:$0xff]  }
 0x508   :  { %8033 = vmatprep.subr.bf16.mxu0 %v9711_v60  ;;  %v10055_v60 = vld [vmem:[#allocation14 + $0x20] sm:$0xff]  }
 0x509   :  { %7977 = vmatpush1.bf16.msra.mxu1 %v9518_v35  ;;  %v4530_v35 = vld [vmem:[#allocation11 + $0x698] sm:$0xff] }
 0x50a   :  { %7978 = vmatprep.subr.bf16.mxu1 %v9511_v14  ;;  %v9590_v14 = vcombine.low %v4538_v28, %v4542_v15  ;;  %v9582_v0 = vcombine.low %v4530_v35, %v4534_v11  ;;  %v10083_v28 = vld [vmem:[#allocation14 + $0x130] sm:$0xff]  }
 0x50b   :  { %8034 = vmatpush2.bf16.msra.mxu0 %v9710_v31  ;;  %v9583_v31 = vcombine.high %v4530_v35, %v4534_v11 }
 0x50c   :  { %8035 = vmatprep.subr.bf16.mxu0 %v9703_v63  ;;  %v4526_v63 = vld [vmem:[#allocation11 + $0x678] sm:$0xff] }
 0x50d   :  { %7979 = vmatpush1.bf16.msra.mxu1 %v9510_v46  ;;  %v10058_v46 = vld [vmem:[#allocation14 + $0x50] sm:$0xff]   ;;  %v9575_v58 = vcombine.high %v4522_v62, %v4526_v63 }
 0x50e   :  { %7980 = vmatprep.subr.bf16.mxu1 %v9503_v4  ;;  %v4514_v4 = vld [vmem:[#allocation11 + $0x618] sm:$0xff] }
 0x50f   :  { %8036 = vmatpush2.bf16.msra.mxu0 %v9702_v48  ;;  %v4518_v48 = vld [vmem:[#allocation11 + $0x638] sm:$0xff] }
 0x510   :  { %8037 = vmatprep.subr.bf16.mxu0 %v9695_v53  ;;  %v9574_v53 = vcombine.low %v4522_v62, %v4526_v63  ;;  %v9566_v47 = vcombine.low %v4514_v4, %v4518_v48 }
 0x511   :  { %7981 = vmatpush1.bf16.msra.mxu1 %v9502_v13  ;;  %v10147_v6 = vpop.eup %10146  ;;  %v9567_v13 = vcombine.high %v4514_v4, %v4518_v48 }
 0x512   :  { %7982 = vmatprep.subr.bf16.mxu1 %v9623_v44  ;;  %v4762_v44 = vld [vmem:[#allocation11 + $0xdd8] sm:$0xff] }
 0x513   :  { %8038 = vmatpush2.bf16.msra.mxu0 %v9694_v51  ;;  %v8113_v51 = vadd.f32 1.0, %v10147_v6  ;;  %v4710_v6 = vld [vmem:[#allocation11 + $0xc38] sm:$0xff] }
 0x514   :  { %9945 = vmatprep.subr.bf16.mxu0 %v10048_v59  ;;  %v8089_v59 = vmul.f32 0.5, %v10749_v7  ;;  %v10082_v7 = vld [vmem:[#allocation14 + $0x170] sm:$0xff]  }
 0x515   :  { %7983 = vmatpush2.bf16.msra.mxu1 %v9622_v18  ;;  %v9815_v18 = vcombine.high %v4762_v44, %v4766_v49 }
 0x516   :  { %v10779_v32 = vpop.f32.mrf.mxu0  ;;  %8040 = vmatmul.mubr.bf16.vlgmr.msra.gmra.mxu0 %v10691_v25  ;;  %7984 = vmatprep.subr.bf16.mxu1 %v9615_v34  ;;  %v10053_v25 = vld [vmem:[#allocation14 + $0x28] sm:$0xff]   ;;  %v4754_v34 = vld [vmem:[#allocation11 + $0xd98] sm:$0xff]  ;;  %v8121_v55 = vmul.f32 %v8113_v51, %v8089_v59 }
 0x517   :  { %9946 = vmatpush3.bf16.msra.mxu0 %v10049_v3  ;;  %8688 = vmatprep.mubr.bf16.mxu0 %v8130_v16  ;;  %v4758_v3 = vld [vmem:[#allocation11 + $0xdb8] sm:$0xff] }
 0x518   :  { %v10783_v33 = vpop.f32.mrf.mxu0  ;;  %9947 = vmatprep.subr.bf16.mxu0 %v10050_v21  ;;  %v9814_v21 = vcombine.low %v4762_v44, %v4766_v49  ;;  %v4746_v16 = vld [vmem:[#allocation11 + $0xd58] sm:$0xff]  ;;  %v8129_v52 = vpack.c.bf16 %v8121_v55, %v8121_v55 }
 0x519   :  { %7985 = vmatpush2.bf16.msra.mxu1 %v9614_v40  ;;  %v9807_v40 = vcombine.high %v4754_v34, %v4758_v3  ;;  %v4826_v49 = vld [vmem:[#allocation11 + $0xfd8] sm:$0xff] }
 0x51a   :  { %v7799_v50 = vpop.f32.mrf.mxu0  ;;  %7986 = vmatprep.subr.bf16.mxu1 %v9607_v45  ;;  %v4750_v45 = vld [vmem:[#allocation11 + $0xd78] sm:$0xff] }
 0x51b   :  { %9948 = vmatpush3.bf16.msra.mxu0 %v10051_v19  ;;  %v10081_v19 = vld [vmem:[#allocation14 + $0x138] sm:$0xff]   ;;  %v9799_v50 = vcombine.high %v4746_v16, %v4750_v45  ;;  %v4830_v51 = vld [vmem:[#allocation11 + $0xff8] sm:$0xff] }
 0x51c   :  { %v7800_v8 = vpop.f32.mrf.mxu0  ;;  %9949 = vmatprep.subr.bf16.mxu0 %v10052_v12  ;;  %v9806_v12 = vcombine.low %v4754_v34, %v4758_v3  ;;  %v4822_v34 = vld [vmem:[#allocation11 + $0xfb8] sm:$0xff]  ;;  %v10095_v3 = vld [vmem:[#allocation14 + $0x100] sm:$0xff]   ;;  %v9878_v55 = vcombine.low %v4826_v49, %v4830_v51 }
 0x51d   :  { %7987 = vmatpush2.bf16.msra.mxu1 %v9606_v23  ;;  %v9798_v8 = vcombine.low %v4746_v16, %v4750_v45  ;;  %v4814_v16 = vld [vmem:[#allocation11 + $0xf78] sm:$0xff] }
 0x51e   :  { %7988 = vmatprep.subr.bf16.mxu1 %v9599_v20  ;;  %v4738_v20 = vld [vmem:[#allocation11 + $0xd18] sm:$0xff] }
 0x51f   :  { %9950 = vmatpush3.bf16.msra.mxu0 %v10053_v25  ;;  %v4742_v25 = vld [vmem:[#allocation11 + $0xd38] sm:$0xff] }
 0x520   :  { %9951 = vmatprep.subr.bf16.mxu0 %v10054_v22  ;;  %v9791_v22 = vcombine.high %v4738_v20, %v4742_v25  ;;  %v9790_v35 = vcombine.low %v4738_v20, %v4742_v25 }
 0x521   :  { %7989 = vmatpush2.bf16.msra.mxu1 %v9598_v56  ;;  %v4730_v56 = vld [vmem:[#allocation11 + $0xcd8] sm:$0xff] }
 0x522   :  { %7990 = vmatprep.subr.bf16.mxu1 %v9591_v57  ;;  %v10085_v57 = vld [vmem:[#allocation14 + $0x128] sm:$0xff]  }
 0x523   :  { %9952 = vmatpush3.bf16.msra.mxu0 %v10055_v60  ;;  %v10086_v60 = vld [vmem:[#allocation14 + $0x160] sm:$0xff]  }
 0x524   :  { %9953 = vmatprep.subr.bf16.mxu0 %v10056_v30  ;;  %v4722_v30 = vld [vmem:[#allocation11 + $0xc98] sm:$0xff] }
 0x525   :  { %7991 = vmatpush2.bf16.msra.mxu1 %v9590_v14  ;;  %v4726_v14 = vld [vmem:[#allocation11 + $0xcb8] sm:$0xff] }
 0x526   :  { %7992 = vmatprep.subr.bf16.mxu1 %v9583_v31  ;;  %v10087_v31 = vld [vmem:[#allocation14 + $0x120] sm:$0xff]   ;;  %v9775_v63 = vcombine.high %v4722_v30, %v4726_v14  ;;  %v9774_v4 = vcombine.low %v4722_v30, %v4726_v14  ;;  %v4770_v30 = vld [vmem:[#allocation11 + $0xe18] sm:$0xff] }
 0x527   :  { %9954 = vmatpush3.bf16.msra.mxu0 %v10057_v54  ;;  %v10088_v54 = vld [vmem:[#allocation14 + $0x158] sm:$0xff]   ;;  %v4774_v14 = vld [vmem:[#allocation11 + $0xe38] sm:$0xff] }
 0x528   :  { %9955 = vmatprep.subr.bf16.mxu0 %v10058_v46  ;;  %v4714_v46 = vld [vmem:[#allocation11 + $0xc58] sm:$0xff] }
 0x529   :  { %7993 = vmatpush2.bf16.msra.mxu1 %v9582_v0  ;;  %v4718_v0 = vld [vmem:[#allocation11 + $0xc78] sm:$0xff] }
 0x52a   :  { %7994 = vmatprep.subr.bf16.mxu1 %v9575_v58  ;;  %v10089_v58 = vld [vmem:[#allocation14 + $0x118] sm:$0xff]   ;;  %v9767_v48 = vcombine.high %v4714_v46, %v4718_v0 }
 0x52b   :  { %9956 = vmatpush3.bf16.msra.mxu0 %v10059_v39  ;;  %v10090_v39 = vld [vmem:[#allocation14 + $0x150] sm:$0xff]  }
 0x52c   :  { %9957 = vmatprep.subr.bf16.mxu0 %v10060_v27  ;;  %v4706_v27 = vld [vmem:[#allocation11 + $0xc18] sm:$0xff] }
 0x52d   :  { %7995 = vmatpush2.bf16.msra.mxu1 %v9574_v53  ;;  %v10091_v53 = vld [vmem:[#allocation14 + $0x110] sm:$0xff]   ;;  %v9759_v44 = vcombine.high %v4706_v27, %v4710_v6  ;;  %v9758_v59 = vcombine.low %v4706_v27, %v4710_v6  ;;  %v10065_v27 = vld [vmem:[#allocation14 + $0xb8] sm:$0xff]  }
 0x52e   :  { %7996 = vmatprep.subr.bf16.mxu1 %v9567_v13  ;;  %v10092_v13 = vld [vmem:[#allocation14 + $0x148] sm:$0xff]   ;;  %v10066_v6 = vld [vmem:[#allocation14 + $0xf0] sm:$0xff]  }
 0x52f   :  { %9958 = vmatpush3.bf16.msra.mxu0 %v10061_v41  ;;  %v9766_v41 = vcombine.low %v4714_v46, %v4718_v0  ;;  %v9822_v0 = vcombine.low %v4770_v30, %v4774_v14 }
 0x530   :  { %9959 = vmatprep.subr.bf16.mxu0 %v10062_v43  ;;  %v10093_v43 = vld [vmem:[#allocation14 + $0x108] sm:$0xff]  }
 0x531   :  { %7997 = vmatpush2.bf16.msra.mxu1 %v9566_v47  ;;  %v10094_v47 = vld [vmem:[#allocation14 + $0x140] sm:$0xff]  }
 0x532   :  { %8048 = vmatprep.subr.bf16.mxu1 %v9815_v18  ;;  %v9879_v18 = vcombine.high %v4826_v49, %v4830_v51 }
 0x533   :  { %9960 = vmatpush3.bf16.msra.mxu0 %v10063_v10  ;;  %v4818_v10 = vld [vmem:[#allocation11 + $0xf98] sm:$0xff] }
 0x534   :  { %v7754_v9 = vpop.f32.mrf.mxu1  ;;  %7999 = vmatmul.mubr.bf16.vlgmr.msra.gmra.mxu1 %v10664_v26  ;;  %9989 = vmatprep.subr.bf16.mxu0 %v10080_v38  ;;  %v10084_v26 = vld [vmem:[#allocation14 + $0x168] sm:$0xff]   ;;  %v9871_v38 = vcombine.high %v4818_v10, %v4822_v34  ;;  %v9870_v45 = vcombine.low %v4818_v10, %v4822_v34  ;;  %v10071_v34 = vld [vmem:[#allocation14 + $0xa0] sm:$0xff]  }
 0x535   :  { %v10788_v37 = vadd.f32 %v7754_v9, %v10772_v17  ;;  %8049 = vmatpush1.bf16.msra.mxu1 %v9814_v21  ;;  %8080 = vmatprep.mubr.bf16.mxu1 %v10711_v29  ;;  %v4734_v29 = vld [vmem:[#allocation11 + $0xcf8] sm:$0xff] }
 0x536   :  { %v10791_v23 = vpop.f32.mrf.mxu1  ;;  %8689 = vmatmul.mubr.bf16.vlgmr.msra.gmra.mxu0 %v8129_v52  ;;  %8050 = vmatprep.subr.bf16.mxu1 %v9807_v40  ;;  %v9783_v11 = vcombine.high %v4730_v56, %v4734_v29  ;;  %v9782_v62 = vcombine.low %v4730_v56, %v4734_v29  ;;  %v4810_v40 = vld [vmem:[#allocation11 + $0xf58] sm:$0xff] }
 0x537   :  { %9990 = vmatpush3.bf16.msra.mxu0 %v10081_v19  ;;  %v7757_v21 = vadd.f32 %v10791_v23, %v10776_v36  ;;  %v9863_v52 = vcombine.high %v4810_v40, %v4814_v16  ;;  %v9862_v20 = vcombine.low %v4810_v40, %v4814_v16  ;;  %v4794_v36 = vld [vmem:[#allocation11 + $0xed8] sm:$0xff]  ;;  %v8099_v51 = vmul.f32 0.70710677, %v10788_v37  ;;  %v10076_v40 = vld [vmem:[#allocation14 + $0xc8] sm:$0xff]  }
 0x538   :  { %v7758_v15 = vpop.f32.mrf.mxu1  ;;  %9991 = vmatprep.subr.bf16.mxu0 %v10082_v7  ;;  %v4802_v7 = vld [vmem:[#allocation11 + $0xf18] sm:$0xff] }
 0x539   :  { %8051 = vmatpush1.bf16.msra.mxu1 %v9806_v12  ;;  %v8100_v9 = vmul.f32 0.70710677, %v7757_v21  ;;  %v4806_v12 = vld [vmem:[#allocation11 + $0xf38] sm:$0xff]  ;;  %v8092_v46 = vmul.f32 0.5, %v7757_v21 }
 0x53a   :  { %v7759_v17 = vpop.f32.mrf.mxu1  ;;  %8052 = vmatprep.subr.bf16.mxu1 %v9799_v50  ;;  %v4798_v23 = vld [vmem:[#allocation11 + $0xef8] sm:$0xff] }
 0x53b   :  { %9992 = vmatpush3.bf16.msra.mxu0 %v10083_v28  ;;  %v9855_v28 = vcombine.high %v4802_v7, %v4806_v12  ;;  %10148 = verf.f32 %v8100_v9  ;;  %v4786_v17 = vld [vmem:[#allocation11 + $0xe98] sm:$0xff]  ;;  %v9846_v56 = vcombine.low %v4794_v36, %v4798_v23  ;;  %v8091_v9 = vmul.f32 0.5, %v10788_v37 }
 0x53c   :  { %9993 = vmatprep.subr.bf16.mxu0 %v10084_v26  ;;  %v9854_v26 = vcombine.low %v4802_v7, %v4806_v12  ;;  %10150 = verf.f32 %v8099_v51  ;;  %v10075_v21 = vld [vmem:[#allocation14 + $0x90] sm:$0xff]   ;;  %v10079_v7 = vld [vmem:[#allocation14 + $0x80] sm:$0xff]  }
 0x53d   :  { %8053 = vmatpush1.bf16.msra.mxu1 %v9798_v8  ;;  %v9847_v8 = vcombine.high %v4794_v36, %v4798_v23 }
 0x53e   :  { %8054 = vmatprep.subr.bf16.mxu1 %v9791_v22  ;;  %v4790_v22 = vld [vmem:[#allocation11 + $0xeb8] sm:$0xff] }
 0x53f   :  { %9994 = vmatpush3.bf16.msra.mxu0 %v10085_v57  ;;  %v9839_v29 = vcombine.high %v4786_v17, %v4790_v22  ;;  %v4778_v57 = vld [vmem:[#allocation11 + $0xe58] sm:$0xff] }
 0x540   :  { %9995 = vmatprep.subr.bf16.mxu0 %v10086_v60  ;;  %v4782_v60 = vld [vmem:[#allocation11 + $0xe78] sm:$0xff] }
 0x541   :  { %8055 = vmatpush1.bf16.msra.mxu1 %v9790_v35  ;;  %v9838_v35 = vcombine.low %v4786_v17, %v4790_v22  ;;  %v10099_v17 = vld [vmem:[#allocation14 + $0x1b0] sm:$0xff]  }
 0x542   :  { %8056 = vmatprep.subr.bf16.mxu1 %v9783_v11  ;;  %v9831_v11 = vcombine.high %v4778_v57, %v4782_v60 }
 0x543   :  { %9996 = vmatpush3.bf16.msra.mxu0 %v10087_v31 }
 0x544   :  { %9997 = vmatprep.subr.bf16.mxu0 %v10088_v54  ;;  %v9830_v54 = vcombine.low %v4778_v57, %v4782_v60  ;;  %v10100_v57 = vld [vmem:[#allocation14 + $0x1e8] sm:$0xff]  }
 0x545   :  { %8057 = vmatpush1.bf16.msra.mxu1 %v9782_v62  ;;  %v9823_v62 = vcombine.high %v4770_v30, %v4774_v14  ;;  %v10102_v14 = vld [vmem:[#allocation14 + $0x1e0] sm:$0xff]  }
 0x546   :  { %8058 = vmatprep.subr.bf16.mxu1 %v9775_v63 }
 0x547   :  { %9998 = vmatpush3.bf16.msra.mxu0 %v10089_v58  ;;  %v10064_v58 = vld [vmem:[#allocation14 + $0xf8] sm:$0xff]  }
 0x548   :  { %9999 = vmatprep.subr.bf16.mxu0 %v10090_v39  ;;  %v10149_v31 = vpop.eup %10148  ;;  %v4852_v39 = vrot.slane %v10761_v42, %v10550_v2  ;;  %v10067_v2 = vld [vmem:[#allocation14 + $0xb0] sm:$0xff]  }
 0x549   :  { %8059 = vmatpush1.bf16.msra.mxu1 %v9774_v4  ;;  %v8116_v63 = vadd.f32 1.0, %v10149_v31  ;;  %v10151_v16 = vpop.eup %10150  ;;  %v10103_v31 = vld [vmem:[#allocation14 + $0x1a0] sm:$0xff]  }
 0x54a   :  { %8060 = vmatprep.subr.bf16.mxu1 %v9767_v48  ;;  %v4856_v48 = vrot.slane %v10761_v42, %v10512_v61  ;;  %v10068_v61 = vld [vmem:[#allocation14 + $0xe8] sm:$0xff]  }
 0x54b   :  { %10000 = vmatpush3.bf16.msra.mxu0 %v10091_v53  ;;  %v8124_v4 = vmul.f32 %v8116_v63, %v8092_v46  ;;  %v7796_v53 = vadd.f32 %v10779_v32, %v4852_v39  ;;  %v10069_v32 = vld [vmem:[#allocation14 + $0xa8] sm:$0xff]   ;;  %v10106_v63 = vld [vmem:[#allocation14 + $0x1d0] sm:$0xff]  }
 0x54c   :  { %10001 = vmatprep.subr.bf16.mxu0 %v10092_v13  ;;  %v10107_v46 = vld [vmem:[#allocation14 + $0x190] sm:$0xff]   ;;  %v10108_v39 = vld [vmem:[#allocation14 + $0x1c8] sm:$0xff]  }
 0x54d   :  { %8061 = vmatpush1.bf16.msra.mxu1 %v9766_v41  ;;  %v8132_v13 = vpack.c.bf16 %v8124_v4, %v8124_v4 }
 0x54e   :  { %8062 = vmatprep.subr.bf16.mxu1 %v9759_v44  ;;  %v7798_v44 = vadd.f32 %v10783_v33, %v4856_v48  ;;  %v10070_v33 = vld [vmem:[#allocation14 + $0xe0] sm:$0xff]  }
 0x54f   :  { %10002 = vmatpush3.bf16.msra.mxu0 %v10093_v43 }
 0x550   :  { %10003 = vmatprep.subr.bf16.mxu0 %v10094_v47 }
 0x551   :  { %8063 = vmatpush1.bf16.msra.mxu1 %v9758_v59 }
 0x552   :  { %8064 = vmatprep.subr.bf16.mxu1 %v9879_v18 }
 0x553   :  { %10004 = vmatpush3.bf16.msra.mxu0 %v10095_v3  ;;  %v10072_v3 = vld [vmem:[#allocation14 + $0xd8] sm:$0xff]  }
 0x555   :  { %8065 = vmatpush2.bf16.msra.mxu1 %v9878_v55  ;;  %v10073_v55 = vld [vmem:[#allocation14 + $0x98] sm:$0xff]  }
 0x556   :  { %v10795_v19 = vpop.f32.mrf.mxu0  ;;  %8066 = vmatprep.subr.bf16.mxu1 %v9871_v38  ;;  %v10074_v38 = vld [vmem:[#allocation14 + $0xd0] sm:$0xff]  }
 0x558   :  { %v10797_v50 = vpop.f32.mrf.mxu0 }
 0x559   :  { %8067 = vmatpush2.bf16.msra.mxu1 %v9870_v45  ;;  %v10077_v45 = vld [vmem:[#allocation14 + $0x88] sm:$0xff]  }
 0x55a   :  { %v7881_v25 = vpop.f32.mrf.mxu0  ;;  %8068 = vmatprep.subr.bf16.mxu1 %v9863_v52  ;;  %v10078_v52 = vld [vmem:[#allocation14 + $0xc0] sm:$0xff]  }
 0x55c   :  { %v7882_v15 = vpop.f32.mrf.mxu0 }
 0x55d   :  { %8069 = vmatpush2.bf16.msra.mxu1 %v9862_v20  ;;  %v10097_v20 = vld [vmem:[#allocation14 + $0x1b8] sm:$0xff]  }
 0x55e   :  { %8070 = vmatprep.subr.bf16.mxu1 %v9855_v28 }
 0x561   :  { %8071 = vmatpush2.bf16.msra.mxu1 %v9854_v26  ;;  %v10098_v26 = vld [vmem:[#allocation14 + $0x1f0] sm:$0xff]  }
 0x562   :  { %8072 = vmatprep.subr.bf16.mxu1 %v9847_v8 }
 0x565   :  { %8073 = vmatpush2.bf16.msra.mxu1 %v9846_v56 }
 0x566   :  { %8074 = vmatprep.subr.bf16.mxu1 %v9839_v29 }
 0x569   :  { %8075 = vmatpush2.bf16.msra.mxu1 %v9838_v35  ;;  %v10101_v35 = vld [vmem:[#allocation14 + $0x1a8] sm:$0xff]  }
 0x56a   :  { %8076 = vmatprep.subr.bf16.mxu1 %v9831_v11 }
 0x56d   :  { %8077 = vmatpush2.bf16.msra.mxu1 %v9830_v54  ;;  %v10104_v54 = vld [vmem:[#allocation14 + $0x1d8] sm:$0xff]  }
 0x56e   :  { %8078 = vmatprep.subr.bf16.mxu1 %v9823_v62  ;;  %v10105_v62 = vld [vmem:[#allocation14 + $0x198] sm:$0xff]  }
 0x571   :  { %8079 = vmatpush2.bf16.msra.mxu1 %v9822_v0 }
 0x572   :  { %9967 = vmatprep.subr.bf16.mxu1 %v10064_v58 }
 0x574   :  { %v7836_v41 = vpop.f32.mrf.mxu1  ;;  %8081 = vmatmul.mubr.bf16.vlgmr.msra.gmra.mxu1 %v10713_v24 }
 0x575   :  { %v7837_v49 = vadd.f32 %v7836_v41, %v7796_v53  ;;  %9968 = vmatpush3.bf16.msra.mxu1 %v10065_v27  ;;  %8728 = vmatprep.mubr.bf16.mxu1 %v8132_v13  ;;  %v10109_v27 = vld [vmem:[#allocation14 + $0x188] sm:$0xff]  }
 0x576   :  { %v7838_v43 = vpop.f32.mrf.mxu1  ;;  %9969 = vmatprep.subr.bf16.mxu1 %v10066_v6 }
 0x577   :  { %v7839_v47 = vadd.f32 %v7838_v43, %v7798_v44  ;;  %v7878_v59 = vadd.f32 %v10795_v19, %v7837_v49  ;;  %v8115_v19 = vadd.f32 1.0, %v10151_v16  ;;  %v10110_v44 = vld [vmem:[#allocation14 + $0x1c0] sm:$0xff]  }
 0x578   :  { %v7840_v18 = vpop.f32.mrf.mxu1  ;;  %v10111_v49 = vld [vmem:[#allocation14 + $0x180] sm:$0xff]  }
 0x579   :  { %9970 = vmatpush3.bf16.msra.mxu1 %v10067_v2  ;;  %v7880_v10 = vadd.f32 %v10797_v50, %v7839_v47  ;;  %v8123_v12 = vmul.f32 %v8115_v19, %v8091_v9  ;;  %v10096_v50 = vld [vmem:[#allocation14 + $0x1f8] sm:$0xff]   ;;  %v4860_v18 = vrot.slane %v10761_v42, %v10553_v5 }
 0x57a   :  { %v7841_v24 = vpop.f32.mrf.mxu1  ;;  %9971 = vmatprep.subr.bf16.mxu1 %v10068_v61 }
 0x57b   :  { %v8131_v25 = vpack.c.bf16 %v8123_v12, %v8123_v12 }
 0x57d   :  { %9972 = vmatpush3.bf16.msra.mxu1 %v10069_v32  ;;  %v4864_v32 = vrot.slane %v10761_v42, %v10515_v1 }
 0x57e   :  { %9973 = vmatprep.subr.bf16.mxu1 %v10070_v33 }
 0x581   :  { %9974 = vmatpush3.bf16.msra.mxu1 %v10071_v34 }
 0x582   :  { %9975 = vmatprep.subr.bf16.mxu1 %v10072_v3 }
 0x585   :  { %9976 = vmatpush3.bf16.msra.mxu1 %v10073_v55 }
 0x586   :  { %9977 = vmatprep.subr.bf16.mxu1 %v10074_v38 }
 0x589   :  { %9978 = vmatpush3.bf16.msra.mxu1 %v10075_v21 }
 0x58a   :  { %9979 = vmatprep.subr.bf16.mxu1 %v10076_v40 }
 0x58d   :  { %9980 = vmatpush3.bf16.msra.mxu1 %v10077_v45 }
 0x58e   :  { %9981 = vmatprep.subr.bf16.mxu1 %v10078_v52 }
 0x591   :  { %9982 = vmatpush3.bf16.msra.mxu1 %v10079_v7 }
 0x592   :  { %10011 = vmatprep.subr.bf16.mxu1 %v10096_v50 }
 0x594   :  { %8729 = vmatmul.mubr.bf16.vlgmr.msra.gmra.mxu1 %v8131_v25 }
 0x595   :  { %10012 = vmatpush3.bf16.msra.mxu1 %v10097_v20 }
 0x596   :  { %v7959_v28 = vpop.f32.mrf.mxu0  ;;  %10013 = vmatprep.subr.bf16.mxu1 %v10098_v26 }
 0x598   :  { %v7961_v36 = vpop.f32.mrf.mxu0 }
 0x599   :  { %10014 = vmatpush3.bf16.msra.mxu1 %v10099_v17  ;;  %v7962_v33 = vadd.f32 %v7961_v36, %v4864_v32 }
 0x59a   :  { %v7963_v23 = vpop.f32.mrf.mxu0  ;;  %10015 = vmatprep.subr.bf16.mxu1 %v10100_v57  ;;  %v9880_v57 = vld [vmem:[#allocation16] ss:$0 sm:$0xff] }
 0x59c   :  { %v7964_v15 = vpop.f32.mrf.mxu0 }
 0x59d   :  { %10016 = vmatpush3.bf16.msra.mxu1 %v10101_v35 }
 0x59e   :  { %10017 = vmatprep.subr.bf16.mxu1 %v10102_v14 }
 0x5a1   :  { %10018 = vmatpush3.bf16.msra.mxu1 %v10103_v31 }
 0x5a2   :  { %10019 = vmatprep.subr.bf16.mxu1 %v10104_v54 }
 0x5a5   :  { %10020 = vmatpush3.bf16.msra.mxu1 %v10105_v62 }
 0x5a6   :  { %10021 = vmatprep.subr.bf16.mxu1 %v10106_v63 }
 0x5a9   :  { %10022 = vmatpush3.bf16.msra.mxu1 %v10107_v46 }
 0x5aa   :  { %10023 = vmatprep.subr.bf16.mxu1 %v10108_v39 }
 0x5ad   :  { %10024 = vmatpush3.bf16.msra.mxu1 %v10109_v27 }
 0x5ae   :  { %10025 = vmatprep.subr.bf16.mxu1 %v10110_v44 }
 0x5b1   :  { %10026 = vmatpush3.bf16.msra.mxu1 %v10111_v49 }
 0x5b4   :  { %v7918_v8 = vpop.f32.mrf.mxu1 }
 0x5b5   :  { %v7919_v22 = vadd.f32 %v7918_v8, %v7878_v59 }
 0x5b6   :  { %v7920_v37 = vpop.f32.mrf.mxu1 }
 0x5b7   :  { %v8101_v56 = vmul.f32 0.70710677, %v7919_v22  ;;  %v7921_v29 = vadd.f32 %v7920_v37, %v7880_v10  ;;  %v8093_v48 = vmul.f32 0.5, %v7919_v22  ;;  %v7960_v10 = vadd.f32 %v7959_v28, %v4860_v18 }
 0x5b8   :  { %v7922_v60 = vpop.f32.mrf.mxu1 }
 0x5b9   :  { %10152 = verf.f32 %v8101_v56  ;;  %v8102_v11 = vmul.f32 0.70710677, %v7921_v29  ;;  %v8094_v6 = vmul.f32 0.5, %v7921_v29 }
 0x5ba   :  { %v7923_v30 = vpop.f32.mrf.mxu1 }
 0x5bb   :  { %10154 = verf.f32 %v8102_v11 }
 0x5c6   :  { %v10153_v0 = vpop.eup %10152 }
 0x5c7   :  { %v8117_v58 = vadd.f32 1.0, %v10153_v0 }
 0x5c8   :  { %v10155_v4 = vpop.eup %10154 }
 0x5c9   :  { %v8118_v53 = vadd.f32 1.0, %v10155_v4  ;;  %v8125_v13 = vmul.f32 %v8117_v58, %v8093_v48 }
 0x5cb   :  { %v8126_v41 = vmul.f32 %v8118_v53, %v8094_v6  ;;  %v8133_v51 = vpack.c.bf16 %v8125_v13, %v8125_v13 }
 0x5cd   :  { %v8134_v2 = vpack.c.bf16 %v8126_v41, %v8126_v41 }
 0x5cf   :  { %8768 = vmatprep.mubr.bf16.mxu0 %v8134_v2 }
 0x5d0   :  { %8769 = vmatmul.mubr.bf16.vlgmr.msra.gmra.mxu0 %v8133_v51 }
 0x5d6   :  { %v8041_v43 = vpop.f32.mrf.mxu0 }
 0x5d8   :  { %v8043_v61 = vpop.f32.mrf.mxu0 }
 0x5da   :  { %v8045_v47 = vpop.f32.mrf.mxu0 }
 0x5dc   :  { %v8046_v59 = vpop.f32.mrf.mxu0 }
 0x5f4   :  { %v8000_v24 = vpop.f32.mrf.mxu1 }
 0x5f5   :  { %v8001_v34 = vadd.f32 %v8000_v24, %v7960_v10 }
 0x5f6   :  { %v8002_v3 = vpop.f32.mrf.mxu1  ;;  %v9961_v55 = vpop.f32.mrf.mxu0 }
 0x5f7   :  { %v8003_v38 = vadd.f32 %v8002_v3, %v7962_v33  ;;  %v8042_v21 = vadd.f32 %v8041_v43, %v8001_v34 }
 0x5f8   :  { %v8004_v40 = vpop.f32.mrf.mxu1  ;;  %v9962_v16 = vpop.f32.mrf.mxu0 }
 0x5f9   :  { %v9963_v45 = vadd.f32 %v9962_v16, %v9961_v55  ;;  %v8044_v19 = vadd.f32 %v8043_v61, %v8003_v38 }
 0x5fa   :  { %v8005_v52 = vpop.f32.mrf.mxu1  ;;  %v9964_v9 = vpop.f32.mrf.mxu0 }
 0x5fb   :  { %v8691_v11 = vadd.f32 %v9963_v45, %v9880_v57 }
 0x5fc   :  { %v9965_v7 = vpop.f32.mrf.mxu0 }
 0x634   :  { %v8082_v12 = vpop.f32.mrf.mxu1 }
 0x635   :  { %v8083_v5 = vadd.f32 %v8082_v12, %v8042_v21 }
 0x636   :  { %v8084_v50 = vpop.f32.mrf.mxu1 }
 0x637   :  { %v8103_v20 = vmul.f32 0.70710677, %v8083_v5  ;;  %v8085_v1 = vadd.f32 %v8084_v50, %v8044_v19  ;;  %v8095_v26 = vmul.f32 0.5, %v8083_v5 }
 0x638   :  { %v8086_v42 = vpop.f32.mrf.mxu1 }
 0x639   :  { %10156 = verf.f32 %v8103_v20  ;;  %v8104_v25 = vmul.f32 0.70710677, %v8085_v1  ;;  %v8096_v8 = vmul.f32 0.5, %v8085_v1 }
 0x63a   :  { %v8087_v28 = vpop.f32.mrf.mxu1 }
 0x63b   :  { %10158 = verf.f32 %v8104_v25 }
 0x646   :  { %v10157_v36 = vpop.eup %10156 }
 0x647   :  { %v8119_v23 = vadd.f32 1.0, %v10157_v36 }
 0x648   :  { %v10159_v15 = vpop.eup %10158 }
 0x649   :  { %v8120_v17 = vadd.f32 1.0, %v10159_v15  ;;  %v8127_v22 = vmul.f32 %v8119_v23, %v8095_v26 }
 0x64b   :  { %v8128_v37 = vmul.f32 %v8120_v17, %v8096_v8  ;;  %v8135_v29 = vpack.c.bf16 %v8127_v22, %v8127_v22 }
 0x64d   :  { %v8136_v56 = vpack.c.bf16 %v8128_v37, %v8128_v37 }
 0x64f   :  { %8808 = vmatprep.mubr.bf16.mxu1 %v8136_v56 }
 0x650   :  { %8809 = vmatmul.mubr.bf16.vlgmr.msra.gmra.mxu1 %v8135_v29 }
 0x654   :  { %v9983_v60 = vpop.f32.mrf.mxu1 }
 0x656   :  { %v9984_v35 = vpop.f32.mrf.mxu1 }
 0x657   :  { %v9985_v30 = vadd.f32 %v9984_v35, %v9983_v60 }
 0x658   :  { %v9986_v14 = vpop.f32.mrf.mxu1 }
 0x659   :  { %v8731_v31 = vadd.f32 %v9985_v30, %v8691_v11 }
 0x65a   :  { %v9987_v54 = vpop.f32.mrf.mxu1 }
 0x690   :  { %v10005_v62 = vpop.f32.mrf.mxu0 }
 0x692   :  { %v10006_v63 = vpop.f32.mrf.mxu0 }
 0x693   :  { %v10007_v46 = vadd.f32 %v10006_v63, %v10005_v62 }
 0x694   :  { %v10008_v0 = vpop.f32.mrf.mxu0 }
 0x695   :  { %v8771_v58 = vadd.f32 %v10007_v46, %v8731_v31 }
 0x696   :  { %v10009_v39 = vpop.f32.mrf.mxu0 }
 0x710   :  { %v10027_v4 = vpop.f32.mrf.mxu1 }
 0x712   :  { %v10028_v48 = vpop.f32.mrf.mxu1 }
 0x713   :  { %v10029_v27 = vadd.f32 %v10028_v48, %v10027_v4 }
 0x714   :  { %v10030_v6 = vpop.f32.mrf.mxu1 }
 0x715   :  { %v8811_v53 = vadd.f32 %v10029_v27, %v8771_v58 }
 0x716   :  { %v10031_v13 = vpop.f32.mrf.mxu1 }
 0x717   :  { %8816 = vst [vmem:[#allocation17] sm:$0xff] %v8811_v53 }
 0x718   :  { %10354 = shalt.err (!%p10351_p7)
}
 0x719   :  { %8826 = dma.vmem_to_hbm [thread:$0]  %s8824_s8, 128, %s10826_s9, [#allocation4]  }
 0x71a   :  { %10373 = dma.done.wait [#allocation4], 128  }
 0x71b   :  { %10374 = vsyncadd [#allocation4], 4294967168 }
 0x71c   :  { %8830 = vsyncpa [#allocation3], 1 }
 0x71d   :  { %8831 = vsyncpa [#allocation6], 1 }
 0x71e   :  { %8832 = vsyncpa [#allocation9], 1 }
 0x71f   :  { %8833 = vsyncpa [#allocation12], 1 }
 0x720   :  { %8834 = vsyncpa [#allocation15], 1 }
 0x721   :  { %8835 = vsyncpa [#allocation4], 1 }

</bundles_post_ra>
